<compile_context>
chip_gen: v7x
topology: tpu7x:2x2x1
jax: 0.10.0
libtpu: 0.0.40
codegen_flags: <defaults>
</compile_context>

<pallas_src>
import math
import re

import jax
import jax.numpy as jnp
from jax.experimental import pallas as pl
from jax.experimental.pallas import tpu as pltpu

NUM_HEADS = 8        # nn.TransformerEncoderLayer(nhead=8)
LN_EPS = 1e-5        # PyTorch LayerNorm default eps


# ----------------------------------------------------------------------------- kernel

def _layer_norm(x, w, b):
    mu = jnp.mean(x, axis=-1, keepdims=True)
    var = jnp.mean((x - mu) ** 2, axis=-1, keepdims=True)
    return (x - mu) * jax.lax.rsqrt(var + LN_EPS) * w + b


def fused_encoder_kernel(x_ref, wq_ref, wk_ref, wv_ref, bq_ref, bk_ref, bv_ref,
                         wo_ref, bo_ref, ln1w_ref, ln1b_ref, w1_ref, b1_ref,
                         w2_ref, b2_ref, ln2w_ref, ln2b_ref, fnw_ref, fnb_ref,
                         o_ref, act_ref):
    """grid = (batch_tiles, n_layers); activation resident in act_ref across layers."""
    l = pl.program_id(1)
    n_layers = pl.num_programs(1)

    B, S, D = x_ref.shape            # one batch tile of (cls+pos-embedded) activations
    M = B * S
    H = NUM_HEADS
    dh = D // H

    # layer 0: pull the input tile into the resident f32 activation scratch
    @pl.when(l == 0)
    def _():
        act_ref[...] = x_ref[...].reshape(M, D).astype(jnp.float32)

    x = act_ref[...]                                  # (M, D) f32 residual stream
    x_b = x.astype(jnp.bfloat16)

    # ---- multi-head self attention --------------------------------------------------
    # Heads are handled purely through the head-major weight layout: per-head q/k/v come
    # straight out of their own (M, D)@(D, dh) projection (no value slices, no concats,
    # no relayouts), and the out-projection is accumulated per head with an aligned
    # (dh, D) weight block.  1/sqrt(dh) is already folded into wq / bq.
    attn = None
    for h in range(H):                                # static unroll over heads
        q = jnp.dot(x_b, wq_ref[0, h], preferred_element_type=jnp.float32) + bq_ref[0, h]
        k = jnp.dot(x_b, wk_ref[0, h], preferred_element_type=jnp.float32) + bk_ref[0, h]
        v = jnp.dot(x_b, wv_ref[0, h], preferred_element_type=jnp.float32) + bv_ref[0, h]
        qb = q.reshape(B, S, dh)
        kb = k.reshape(B, S, dh)
        vb = v.reshape(B, S, dh)

        s = jnp.einsum('bqd,bkd->bqk', qb, kb,
                       preferred_element_type=jnp.float32)                     # (B, S, S)
        s = s - jnp.max(s, axis=-1, keepdims=True)
        p = jnp.exp(s)
        p = p * pl.reciprocal(jnp.sum(p, axis=-1, keepdims=True), approx=True)

        c = jnp.einsum('bqk,bkd->bqd', p, vb,
                       preferred_element_type=jnp.float32)                     # (B, S, dh)
        part = jnp.dot(c.reshape(M, dh).astype(jnp.bfloat16), wo_ref[0, h],
                       preferred_element_type=jnp.float32)                     # (M, D)
        attn = part if attn is None else attn + part
    attn = attn + bo_ref[0]

    # residual + LayerNorm1 (dropout = identity in eval mode)
    x = _layer_norm(x + attn, ln1w_ref[0], ln1b_ref[0])

    # ---- feed forward: linear2(relu(linear1(x))) -------------------------------------
    h1 = jnp.dot(x.astype(jnp.bfloat16), w1_ref[0],
                 preferred_element_type=jnp.float32) + b1_ref[0]               # (M, F)
    h1 = jnp.maximum(h1, 0.0)
    h2 = jnp.dot(h1.astype(jnp.bfloat16), w2_ref[0],
                 preferred_element_type=jnp.float32) + b2_ref[0]               # (M, D)

    # residual + LayerNorm2
    x = _layer_norm(x + h2, ln2w_ref[0], ln2b_ref[0])
    act_ref[...] = x

    # ---- final encoder LayerNorm, fused: CLS rows only (LN is per-token) -------------
    @pl.when(l == n_layers - 1)
    def _():
        cls = act_ref[pl.ds(0, B, stride=S), :]       # strided read of rows 0, S, 2S, ...
        mu = jnp.mean(cls, axis=-1, keepdims=True)
        var = jnp.mean((cls - mu) ** 2, axis=-1, keepdims=True)
        y = (cls - mu) * jax.lax.rsqrt(var + LN_EPS) * fnw_ref[...] + fnb_ref[...]
        o_ref[...] = y.reshape(B, 1, D).astype(o_ref.dtype)


# ----------------------------------------------------------------------------- tiling policy

def _tpu_generation():
    try:
        kind = jax.devices()[0].device_kind
    except Exception:
        return 0
    m = re.search(r"(\d+)", kind)
    return int(m.group(1)) if m else 0


def _vmem_capacity_bytes(gen):
    try:
        info = pltpu.get_tpu_info()
        for name in ("vmem_capacity_bytes", "vmem_size_bytes", "vmem_bytes"):
            v = getattr(info, name, None)
            if v:
                return int(v)
    except Exception:
        pass
    return (64 << 20) if gen >= 7 else (128 << 20)   # v7x: 64 MiB/TC; v5e/v6e: 128 MiB


def _workset_bytes(bt, S, D, F):
    """Rough per-grid-step VMEM footprint: resident f32 activation scratch, double-buffered
    input/output blocks, double-buffered per-layer weights, and the dominant f32
    intermediates (FFN hidden + residual/attn streams + bf16 copy)."""
    M = bt * S
    act_scratch = 4 * M * D
    io_blocks = 2 * 4 * M * D + 2 * 4 * bt * D
    w_layer = 2 * (4 * D * D + 2 * D * F) + 4 * (8 * D + F)   # bf16 weights + f32 biases/norms
    weights = 2 * w_layer                                      # double-buffered
    inter = M * (4 * F + 10 * D)
    return act_scratch + io_blocks + weights + inter


def _pick_batch_tile(N, S, D, F, gen, vmem_cap):
    """Largest batch tile (divisor of N) whose working set fits the VMEM budget, capped at a
    generation-dependent M = bt*S (v7x: ~512, fits 64 MiB and keeps both TCs fed; v5e/v6e:
    up to ~1024 so weight streaming is amortised).  On v7x prefer an even number of batch
    tiles so the 'parallel' axis can be split across the two TensorCores."""
    budget = int(0.72 * vmem_cap)
    max_m = 512 if gen >= 7 else 1024
    divs = sorted((d for d in range(1, N + 1) if N % d == 0), reverse=True)
    fits = [d for d in divs if d * S <= max_m and _workset_bytes(d, S, D, F) <= budget]
    if not fits:
        fits = [d for d in divs if _workset_bytes(d, S, D, F) <= budget] or [1]
    bt = fits[0]
    if gen >= 7:
        even = [d for d in fits if (N // d) % 2 == 0]
        if even:
            bt = even[0]
    return bt


def _vmem_limit_bytes(bt, S, D, F, vmem_cap):
    need = _workset_bytes(bt, S, D, F)
    return int(min(0.9 * vmem_cap, max(32 << 20, int(1.3 * need))))


# ----------------------------------------------------------------------------- wrappers

def _prepare_fused(params):
    """Stack per-layer weights along a layer axis in head-major, pre-transposed (K, N)
    layout, fold 1/sqrt(dh) into the q projection, cast matmul weights to bf16."""
    D = params['cls_token'].shape[-1]
    H = NUM_HEADS
    dh = D // H
    scale = 1.0 / math.sqrt(dh)

    def head_major_w(w):          # w: torch (D_out, D_in) -> (H, D_in, dh) bf16
        return jnp.transpose(w.T.reshape(D, H, dh), (1, 0, 2)).astype(jnp.bfloat16)

    def per_layer(p):
        wq, wk, wv = p['wqkv'][:D], p['wqkv'][D:2 * D], p['wqkv'][2 * D:]
        bq, bk, bv = p['bqkv'][0, :D], p['bqkv'][0, D:2 * D], p['bqkv'][0, 2 * D:]
        return dict(
            wq=head_major_w(wq * scale), wk=head_major_w(wk), wv=head_major_w(wv),
            bq=(bq * scale).reshape(H, 1, dh),
            bk=bk.reshape(H, 1, dh), bv=bv.reshape(H, 1, dh),
            wo=p['wo'].T.reshape(H, dh, D).astype(jnp.bfloat16),               # (H, dh, D)
            bo=p['bo'], ln1w=p['ln1w'], ln1b=p['ln1b'],
            w1=p['w1'].T.astype(jnp.bfloat16), b1=p['b1'],
            w2=p['w2'].T.astype(jnp.bfloat16), b2=p['b2'],
            ln2w=p['ln2w'], ln2b=p['ln2b'],
        )

    per = [per_layer(p) for p in params['layers']]
    return {k: jnp.stack([lyr[k] for lyr in per], axis=0) for k in per[0]}


def fused_encoder(h, fp, fnw, fnb):
    N, S, D = h.shape
    L, H = fp['wq'].shape[0], NUM_HEADS
    dh = D // H
    F = fp['w1'].shape[-1]

    gen = _tpu_generation()
    cap = _vmem_capacity_bytes(gen)
    bt = _pick_batch_tile(N, S, D, F, gen, cap)
    NB = N // bt
    vmem_limit = _vmem_limit_bytes(bt, S, D, F, cap)

    w4 = lambda nb, l: (l, 0, 0, 0)      # per-layer stacked 4-D weights
    w3 = lambda nb, l: (l, 0, 0)         # per-layer stacked 3-D weights
    act_map = lambda nb, l: (nb, 0, 0)   # activations / output: one batch tile, layer-invariant
    inv_map = lambda nb, l: (0, 0)       # grid-invariant (final norm params)

    out = pl.pallas_call(
        fused_encoder_kernel,
        out_shape=jax.ShapeDtypeStruct((N, 1, D), h.dtype),
        grid_spec=pltpu.PrefetchScalarGridSpec(
            num_scalar_prefetch=0,
            grid=(NB, L),
            in_specs=[
                pl.BlockSpec((bt, S, D), act_map),      # activations (loaded once per tile)
                pl.BlockSpec((1, H, D, dh), w4),        # wq (head-major, q pre-scaled)
                pl.BlockSpec((1, H, D, dh), w4),        # wk
                pl.BlockSpec((1, H, D, dh), w4),        # wv
                pl.BlockSpec((1, H, 1, dh), w4),        # bq
                pl.BlockSpec((1, H, 1, dh), w4),        # bk
                pl.BlockSpec((1, H, 1, dh), w4),        # bv
                pl.BlockSpec((1, H, dh, D), w4),        # wo (head-major rows)
                pl.BlockSpec((1, 1, D), w3),            # bo
                pl.BlockSpec((1, 1, D), w3),            # norm1 weight
                pl.BlockSpec((1, 1, D), w3),            # norm1 bias
                pl.BlockSpec((1, D, F), w3),            # linear1 weight (pre-T)
                pl.BlockSpec((1, 1, F), w3),            # linear1 bias
                pl.BlockSpec((1, F, D), w3),            # linear2 weight (pre-T)
                pl.BlockSpec((1, 1, D), w3),            # linear2 bias
                pl.BlockSpec((1, 1, D), w3),            # norm2 weight
                pl.BlockSpec((1, 1, D), w3),            # norm2 bias
                pl.BlockSpec((1, D), inv_map),          # final norm weight
                pl.BlockSpec((1, D), inv_map),          # final norm bias
            ],
            out_specs=pl.BlockSpec((bt, 1, D), act_map),
            scratch_shapes=[pltpu.VMEM((bt * S, D), jnp.float32)],  # resident activation
        ),
        compiler_params=pltpu.CompilerParams(
            dimension_semantics=("parallel", "arbitrary"),
            vmem_limit_bytes=vmem_limit,
        ),
    )(h, fp['wq'], fp['wk'], fp['wv'], fp['bq'], fp['bk'], fp['bv'],
      fp['wo'], fp['bo'], fp['ln1w'], fp['ln1b'], fp['w1'], fp['b1'],
      fp['w2'], fp['b2'], fp['ln2w'], fp['ln2b'], fnw, fnb)
    return out[:, 0, :]


def saggregate_forward(x, params, num_patchs):
    D = params['cls_token'].shape[-1]
    nvids = x.shape[0] // num_patchs
    h = x.reshape(nvids, num_patchs, D)                               # view((nvids, P, -1))
    cls = jnp.broadcast_to(params['cls_token'], (nvids, 1, D))        # cls_token.expand
    h = jnp.concatenate([cls, h], axis=1) + params['pos_embed']       # cat + pos_embed (p=0 drop)
    fp = _prepare_fused(params)
    return fused_encoder(h, fp, params['fnw'], params['fnb'])         # == o[0] (CLS token)


# ----------------------------------------------------------------------------- params

def trunc_normal(key, shape, std=0.02):
    return (std * jax.random.truncated_normal(key, -2.0, 2.0, shape)).astype(jnp.float32)


def init_params(key, num_patchs, embed_dim, n_layers, ffn_dim):
    D, F = embed_dim, ffn_dim
    keys = iter(jax.random.split(key, 2 + 4 * n_layers))
    params = {
        'cls_token': trunc_normal(next(keys), (1, 1, D)),
        'pos_embed': trunc_normal(next(keys), (1, num_patchs + 1, D)),
        'fnw': jnp.ones((1, D), jnp.float32),
        'fnb': jnp.zeros((1, D), jnp.float32),
        'layers': [],
    }
    for _ in range(n_layers):
        params['layers'].append({
            'wqkv': trunc_normal(next(keys), (3 * D, D)),
            'bqkv': jnp.zeros((1, 3 * D), jnp.float32),
            'wo': trunc_normal(next(keys), (D, D)),
            'bo': jnp.zeros((1, D), jnp.float32),
            'ln1w': jnp.ones((1, D), jnp.float32),
            'ln1b': jnp.zeros((1, D), jnp.float32),
            'w1': trunc_normal(next(keys), (F, D)),
            'b1': jnp.zeros((1, F), jnp.float32),
            'w2': trunc_normal(next(keys), (D, F)),
            'b2': jnp.zeros((1, D), jnp.float32),
            'ln2w': jnp.ones((1, D), jnp.float32),
            'ln2b': jnp.zeros((1, D), jnp.float32),
        })
    return params


# ----------------------------------------------------------------------------- reference (pure JAX, f32)

def reference_forward(x, params, num_patchs):
    D = params['cls_token'].shape[-1]
    nvids = x.shape[0] // num_patchs
    h = x.reshape(nvids, num_patchs, D)
    cls = jnp.broadcast_to(params['cls_token'], (nvids, 1, D))
    h = jnp.concatenate([cls, h], axis=1) + params['pos_embed']
    N, S, _ = h.shape
    dh = D // NUM_HEADS
    for p in params['layers']:
        qkv = h @ p['wqkv'].T + p['bqkv'][0]
        q, k, v = jnp.split(qkv, 3, axis=-1)
        qh = q.reshape(N, S, NUM_HEADS, dh).transpose(0, 2, 1, 3)
        kh = k.reshape(N, S, NUM_HEADS, dh).transpose(0, 2, 1, 3)
        vh = v.reshape(N, S, NUM_HEADS, dh).transpose(0, 2, 1, 3)
        s = (qh @ jnp.swapaxes(kh, -1, -2)) / math.sqrt(dh)
        attn = (jax.nn.softmax(s, axis=-1) @ vh).transpose(0, 2, 1, 3).reshape(N, S, D)
        attn = attn @ p['wo'].T + p['bo'][0]
        h = _layer_norm(h + attn, p['ln1w'][0], p['ln1b'][0])
        ff = jax.nn.relu(h @ p['w1'].T + p['b1'][0]) @ p['w2'].T + p['b2'][0]
        h = _layer_norm(h + ff, p['ln2w'][0], p['ln2b'][0])
    h = _layer_norm(h, params['fnw'][0], params['fnb'][0])
    return h[:, 0, :]


# ----------------------------------------------------------------------------- main

if __name__ == "__main__":
    NUM_PATCHS = 7       # -> sequence length P+1 = 8
    EMBED_DIM = 128      # small stand-in for 2048; nhead=8 -> head_dim=16
    N_LAYERS = 2         # small stand-in for 6
    FFN_DIM = 2048       # nn.TransformerEncoderLayer default dim_feedforward
    NVIDS = 2

    key = jax.random.PRNGKey(0)
    kx, kp = jax.random.split(key)
    x = jax.random.normal(kx, (NVIDS * NUM_PATCHS, EMBED_DIM), jnp.float32)
    params = init_params(kp, NUM_PATCHS, EMBED_DIM, N_LAYERS, FFN_DIM)

    out = jax.block_until_ready(saggregate_forward(x, params, NUM_PATCHS))
    ref = jax.block_until_ready(reference_forward(x, params, NUM_PATCHS))

    assert out.shape == (NVIDS, EMBED_DIM), out.shape
    max_err = float(jnp.max(jnp.abs(out - ref)))
    # bf16 weights / matmul operands vs the pure-f32 reference -> slightly looser tolerance
    assert jnp.allclose(out, ref, atol=2e-2, rtol=2e-2), max_err

    print("KERNEL_OK")
</pallas_src>

<mosaic_0001>
module attributes {stable_mosaic.version = 11 : i64} {
  func.func @fused_encoder_kernel(%arg0: i32, %arg1: i32, %arg2: memref<2x8x128xf32, #tpu.memory_space<vmem>>, %arg3: memref<1x8x128x16xbf16, #tpu.memory_space<vmem>>, %arg4: memref<1x8x128x16xbf16, #tpu.memory_space<vmem>>, %arg5: memref<1x8x128x16xbf16, #tpu.memory_space<vmem>>, %arg6: memref<1x8x1x16xf32, #tpu.memory_space<vmem>>, %arg7: memref<1x8x1x16xf32, #tpu.memory_space<vmem>>, %arg8: memref<1x8x1x16xf32, #tpu.memory_space<vmem>>, %arg9: memref<1x8x16x128xbf16, #tpu.memory_space<vmem>>, %arg10: memref<1x1x128xf32, #tpu.memory_space<vmem>>, %arg11: memref<1x1x128xf32, #tpu.memory_space<vmem>>, %arg12: memref<1x1x128xf32, #tpu.memory_space<vmem>>, %arg13: memref<1x128x2048xbf16, #tpu.memory_space<vmem>>, %arg14: memref<1x1x2048xf32, #tpu.memory_space<vmem>>, %arg15: memref<1x2048x128xbf16, #tpu.memory_space<vmem>>, %arg16: memref<1x1x128xf32, #tpu.memory_space<vmem>>, %arg17: memref<1x1x128xf32, #tpu.memory_space<vmem>>, %arg18: memref<1x1x128xf32, #tpu.memory_space<vmem>>, %arg19: memref<1x128xf32, #tpu.memory_space<vmem>>, %arg20: memref<1x128xf32, #tpu.memory_space<vmem>>, %arg21: memref<2x1x128xf32, #tpu.memory_space<vmem>>, %arg22: memref<16x128xf32, #tpu.memory_space<vmem>>) attributes {dimension_semantics = [#tpu.dimension_semantics<parallel>, #tpu.dimension_semantics<arbitrary>], iteration_bounds = array<i64: 1, 2>, scalar_prefetch = 0 : i64, scratch_operands = 1 : i64, tpu.core_type = #tpu.core_type<tc>, window_params = [{transform_indices = @transform_0, window_bounds = array<i64: 2, 8, 128>}, {transform_indices = @transform_1, window_bounds = array<i64: 1, 8, 128, 16>}, {transform_indices = @transform_2, window_bounds = array<i64: 1, 8, 128, 16>}, {transform_indices = @transform_3, window_bounds = array<i64: 1, 8, 128, 16>}, {transform_indices = @transform_4, window_bounds = array<i64: 1, 8, 1, 16>}, {transform_indices = @transform_5, window_bounds = array<i64: 1, 8, 1, 16>}, {transform_indices = @transform_6, window_bounds = array<i64: 1, 8, 1, 16>}, {transform_indices = @transform_7, window_bounds = array<i64: 1, 8, 16, 128>}, {transform_indices = @transform_8, window_bounds = array<i64: 1, 1, 128>}, {transform_indices = @transform_9, window_bounds = array<i64: 1, 1, 128>}, {transform_indices = @transform_10, window_bounds = array<i64: 1, 1, 128>}, {transform_indices = @transform_11, window_bounds = array<i64: 1, 128, 2048>}, {transform_indices = @transform_12, window_bounds = array<i64: 1, 1, 2048>}, {transform_indices = @transform_13, window_bounds = array<i64: 1, 2048, 128>}, {transform_indices = @transform_14, window_bounds = array<i64: 1, 1, 128>}, {transform_indices = @transform_15, window_bounds = array<i64: 1, 1, 128>}, {transform_indices = @transform_16, window_bounds = array<i64: 1, 1, 128>}, {pipeline_mode = #tpu.pipeline_mode<synchronous>, transform_indices = @transform_17, window_bounds = array<i64: 1, 128>}, {pipeline_mode = #tpu.pipeline_mode<synchronous>, transform_indices = @transform_18, window_bounds = array<i64: 1, 128>}, {transform_indices = @transform_19, window_bounds = array<i64: 2, 1, 128>}]} {
    %c0_i32 = arith.constant 0 : i32
    %0 = arith.cmpi eq, %arg1, %c0_i32 : i32
    %1 = arith.extui %0 : i1 to i32
    %c0_i32_0 = arith.constant 0 : i32
    %2 = arith.cmpi ne, %1, %c0_i32_0 : i32
    scf.if %2 {
      %c0_325 = arith.constant 0 : index
      %c0_326 = arith.constant 0 : index
      %c0_327 = arith.constant 0 : index
      %420 = vector.load %arg2[%c0_325, %c0_326, %c0_327] : memref<2x8x128xf32, #tpu.memory_space<vmem>>, vector<2x8x128xf32>
      %421 = vector.shape_cast %420 : vector<2x8x128xf32> to vector<16x128xf32>
      %c0_328 = arith.constant 0 : index
      %c0_329 = arith.constant 0 : index
      %422 = vector.load %arg22[%c0_328, %c0_329] : memref<16x128xf32, #tpu.memory_space<vmem>>, vector<16x128xf32>
      tpu.vector_store %arg22[%c0_328, %c0_329], %421 {strides = array<i32>} : memref<16x128xf32, #tpu.memory_space<vmem>>, vector<16x128xf32>,
    } else {
    }
    %c0 = arith.constant 0 : index
    %c0_1 = arith.constant 0 : index
    %3 = vector.load %arg22[%c0, %c0_1] : memref<16x128xf32, #tpu.memory_space<vmem>>, vector<16x128xf32>
    %4 = arith.truncf %3 : vector<16x128xf32> to vector<16x128xbf16>
    %c0_2 = arith.constant 0 : index
    %c0_3 = arith.constant 0 : index
    %c0_4 = arith.constant 0 : index
    %c0_5 = arith.constant 0 : index
    %5 = vector.load %arg3[%c0_2, %c0_3, %c0_4, %c0_5] : memref<1x8x128x16xbf16, #tpu.memory_space<vmem>>, vector<1x1x128x16xbf16>
    %6 = vector.shape_cast %5 : vector<1x1x128x16xbf16> to vector<128x16xbf16>
    %cst = arith.constant dense<0.000000e+00> : vector<16x16xf32>
    %7 = tpu.matmul %4, %6, %cst {dimension_numbers = #tpu.dot_dimension_numbers<[1], [0], [0], [1], [0, 0, 1, 1], [], []>} : vector<16x128xbf16>, vector<128x16xbf16>, vector<16x16xf32> -> vector<16x16xf32>
    %c0_6 = arith.constant 0 : index
    %c0_7 = arith.constant 0 : index
    %c0_8 = arith.constant 0 : index
    %c0_9 = arith.constant 0 : index
    %8 = vector.load %arg6[%c0_6, %c0_7, %c0_8, %c0_9] : memref<1x8x1x16xf32, #tpu.memory_space<vmem>>, vector<1x1x1x16xf32>
    %9 = vector.shape_cast %8 : vector<1x1x1x16xf32> to vector<1x16xf32>
    %10 = vector.broadcast %9 : vector<1x16xf32> to vector<16x16xf32>
    %11 = arith.addf %7, %10 : vector<16x16xf32>
    %c0_10 = arith.constant 0 : index
    %c0_11 = arith.constant 0 : index
    %c0_12 = arith.constant 0 : index
    %c0_13 = arith.constant 0 : index
    %12 = vector.load %arg4[%c0_10, %c0_11, %c0_12, %c0_13] : memref<1x8x128x16xbf16, #tpu.memory_space<vmem>>, vector<1x1x128x16xbf16>
    %13 = vector.shape_cast %12 : vector<1x1x128x16xbf16> to vector<128x16xbf16>
    %cst_14 = arith.constant dense<0.000000e+00> : vector<16x16xf32>
    %14 = tpu.matmul %4, %13, %cst_14 {dimension_numbers = #tpu.dot_dimension_numbers<[1], [0], [0], [1], [0, 0, 1, 1], [], []>} : vector<16x128xbf16>, vector<128x16xbf16>, vector<16x16xf32> -> vector<16x16xf32>
    %c0_15 = arith.constant 0 : index
    %c0_16 = arith.constant 0 : index
    %c0_17 = arith.constant 0 : index
    %c0_18 = arith.constant 0 : index
    %15 = vector.load %arg7[%c0_15, %c0_16, %c0_17, %c0_18] : memref<1x8x1x16xf32, #tpu.memory_space<vmem>>, vector<1x1x1x16xf32>
    %16 = vector.shape_cast %15 : vector<1x1x1x16xf32> to vector<1x16xf32>
    %17 = vector.broadcast %16 : vector<1x16xf32> to vector<16x16xf32>
    %18 = arith.addf %14, %17 : vector<16x16xf32>
    %c0_19 = arith.constant 0 : index
    %c0_20 = arith.constant 0 : index
    %c0_21 = arith.constant 0 : index
    %c0_22 = arith.constant 0 : index
    %19 = vector.load %arg5[%c0_19, %c0_20, %c0_21, %c0_22] : memref<1x8x128x16xbf16, #tpu.memory_space<vmem>>, vector<1x1x128x16xbf16>
    %20 = vector.shape_cast %19 : vector<1x1x128x16xbf16> to vector<128x16xbf16>
    %cst_23 = arith.constant dense<0.000000e+00> : vector<16x16xf32>
    %21 = tpu.matmul %4, %20, %cst_23 {dimension_numbers = #tpu.dot_dimension_numbers<[1], [0], [0], [1], [0, 0, 1, 1], [], []>} : vector<16x128xbf16>, vector<128x16xbf16>, vector<16x16xf32> -> vector<16x16xf32>
    %c0_24 = arith.constant 0 : index
    %c0_25 = arith.constant 0 : index
    %c0_26 = arith.constant 0 : index
    %c0_27 = arith.constant 0 : index
    %22 = vector.load %arg8[%c0_24, %c0_25, %c0_26, %c0_27] : memref<1x8x1x16xf32, #tpu.memory_space<vmem>>, vector<1x1x1x16xf32>
    %23 = vector.shape_cast %22 : vector<1x1x1x16xf32> to vector<1x16xf32>
    %24 = vector.broadcast %23 : vector<1x16xf32> to vector<16x16xf32>
    %25 = arith.addf %21, %24 : vector<16x16xf32>
    %26 = vector.shape_cast %11 : vector<16x16xf32> to vector<2x8x16xf32>
    %27 = vector.shape_cast %18 : vector<16x16xf32> to vector<2x8x16xf32>
    %28 = vector.shape_cast %25 : vector<16x16xf32> to vector<2x8x16xf32>
    "tpu.trace_start"() <{level = 10 : i32, message = "bqd,bkd->bqk"}> : () -> ()
    %cst_28 = arith.constant dense<0.000000e+00> : vector<2x8x8xf32>
    %29 = tpu.matmul %26, %27, %cst_28 {dimension_numbers = #tpu.dot_dimension_numbers<[2], [2], [1], [1], [0, 0, 0, 1, 1, 1], [0], [0]>} : vector<2x8x16xf32>, vector<2x8x16xf32>, vector<2x8x8xf32> -> vector<2x8x8xf32>
    "tpu.trace_stop"() : () -> ()
    %cst_29 = arith.constant dense<0xFF800000> : vector<2x8xf32>
    %30 = vector.multi_reduction <maximumf>, %29, %cst_29 [2] : vector<2x8x8xf32> to vector<2x8xf32>
    %31 = vector.shape_cast %30 : vector<2x8xf32> to vector<2x8x1xf32>
    %32 = vector.broadcast %31 : vector<2x8x1xf32> to vector<2x8x8xf32>
    %33 = arith.subf %29, %32 : vector<2x8x8xf32>
    %34 = math.exp %33 : vector<2x8x8xf32>
    %cst_30 = arith.constant dense<0.000000e+00> : vector<2x8xf32>
    %35 = vector.multi_reduction <add>, %34, %cst_30 [2] : vector<2x8x8xf32> to vector<2x8xf32>
    %36 = vector.shape_cast %35 : vector<2x8xf32> to vector<2x8x1xf32>
    %37 = tpu.reciprocal %36 {approx = true} : vector<2x8x1xf32> -> vector<2x8x1xf32>
    %38 = vector.broadcast %37 : vector<2x8x1xf32> to vector<2x8x8xf32>
    %39 = arith.mulf %34, %38 : vector<2x8x8xf32>
    "tpu.trace_start"() <{level = 10 : i32, message = "bqk,bkd->bqd"}> : () -> ()
    %cst_31 = arith.constant dense<0.000000e+00> : vector<2x8x16xf32>
    %40 = tpu.matmul %39, %28, %cst_31 {dimension_numbers = #tpu.dot_dimension_numbers<[2], [1], [1], [2], [0, 0, 0, 1, 1, 2], [0], [0]>} : vector<2x8x8xf32>, vector<2x8x16xf32>, vector<2x8x16xf32> -> vector<2x8x16xf32>
    "tpu.trace_stop"() : () -> ()
    %41 = vector.shape_cast %40 : vector<2x8x16xf32> to vector<16x16xf32>
    %42 = arith.truncf %41 : vector<16x16xf32> to vector<16x16xbf16>
    %c0_32 = arith.constant 0 : index
    %c0_33 = arith.constant 0 : index
    %c0_34 = arith.constant 0 : index
    %c0_35 = arith.constant 0 : index
    %43 = vector.load %arg9[%c0_32, %c0_33, %c0_34, %c0_35] : memref<1x8x16x128xbf16, #tpu.memory_space<vmem>>, vector<1x1x16x128xbf16>
    %44 = vector.shape_cast %43 : vector<1x1x16x128xbf16> to vector<16x128xbf16>
    %cst_36 = arith.constant dense<0.000000e+00> : vector<16x128xf32>
    %45 = tpu.matmul %42, %44, %cst_36 {dimension_numbers = #tpu.dot_dimension_numbers<[1], [0], [0], [1], [0, 0, 1, 1], [], []>} : vector<16x16xbf16>, vector<16x128xbf16>, vector<16x128xf32> -> vector<16x128xf32>
    %c0_37 = arith.constant 0 : index
    %c1 = arith.constant 1 : index
    %c0_38 = arith.constant 0 : index
    %c0_39 = arith.constant 0 : index
    %46 = vector.load %arg3[%c0_37, %c1, %c0_38, %c0_39] : memref<1x8x128x16xbf16, #tpu.memory_space<vmem>>, vector<1x1x128x16xbf16>
    %47 = vector.shape_cast %46 : vector<1x1x128x16xbf16> to vector<128x16xbf16>
    %cst_40 = arith.constant dense<0.000000e+00> : vector<16x16xf32>
    %48 = tpu.matmul %4, %47, %cst_40 {dimension_numbers = #tpu.dot_dimension_numbers<[1], [0], [0], [1], [0, 0, 1, 1], [], []>} : vector<16x128xbf16>, vector<128x16xbf16>, vector<16x16xf32> -> vector<16x16xf32>
    %c0_41 = arith.constant 0 : index
    %c1_42 = arith.constant 1 : index
    %c0_43 = arith.constant 0 : index
    %c0_44 = arith.constant 0 : index
    %49 = vector.load %arg6[%c0_41, %c1_42, %c0_43, %c0_44] : memref<1x8x1x16xf32, #tpu.memory_space<vmem>>, vector<1x1x1x16xf32>
    %50 = vector.shape_cast %49 : vector<1x1x1x16xf32> to vector<1x16xf32>
    %51 = vector.broadcast %50 : vector<1x16xf32> to vector<16x16xf32>
    %52 = arith.addf %48, %51 : vector<16x16xf32>
    %c0_45 = arith.constant 0 : index
    %c1_46 = arith.constant 1 : index
    %c0_47 = arith.constant 0 : index
    %c0_48 = arith.constant 0 : index
    %53 = vector.load %arg4[%c0_45, %c1_46, %c0_47, %c0_48] : memref<1x8x128x16xbf16, #tpu.memory_space<vmem>>, vector<1x1x128x16xbf16>
    %54 = vector.shape_cast %53 : vector<1x1x128x16xbf16> to vector<128x16xbf16>
    %cst_49 = arith.constant dense<0.000000e+00> : vector<16x16xf32>
    %55 = tpu.matmul %4, %54, %cst_49 {dimension_numbers = #tpu.dot_dimension_numbers<[1], [0], [0], [1], [0, 0, 1, 1], [], []>} : vector<16x128xbf16>, vector<128x16xbf16>, vector<16x16xf32> -> vector<16x16xf32>
    %c0_50 = arith.constant 0 : index
    %c1_51 = arith.constant 1 : index
    %c0_52 = arith.constant 0 : index
    %c0_53 = arith.constant 0 : index
    %56 = vector.load %arg7[%c0_50, %c1_51, %c0_52, %c0_53] : memref<1x8x1x16xf32, #tpu.memory_space<vmem>>, vector<1x1x1x16xf32>
    %57 = vector.shape_cast %56 : vector<1x1x1x16xf32> to vector<1x16xf32>
    %58 = vector.broadcast %57 : vector<1x16xf32> to vector<16x16xf32>
    %59 = arith.addf %55, %58 : vector<16x16xf32>
    %c0_54 = arith.constant 0 : index
    %c1_55 = arith.constant 1 : index
    %c0_56 = arith.constant 0 : index
    %c0_57 = arith.constant 0 : index
    %60 = vector.load %arg5[%c0_54, %c1_55, %c0_56, %c0_57] : memref<1x8x128x16xbf16, #tpu.memory_space<vmem>>, vector<1x1x128x16xbf16>
    %61 = vector.shape_cast %60 : vector<1x1x128x16xbf16> to vector<128x16xbf16>
    %cst_58 = arith.constant dense<0.000000e+00> : vector<16x16xf32>
    %62 = tpu.matmul %4, %61, %cst_58 {dimension_numbers = #tpu.dot_dimension_numbers<[1], [0], [0], [1], [0, 0, 1, 1], [], []>} : vector<16x128xbf16>, vector<128x16xbf16>, vector<16x16xf32> -> vector<16x16xf32>
    %c0_59 = arith.constant 0 : index
    %c1_60 = arith.constant 1 : index
    %c0_61 = arith.constant 0 : index
    %c0_62 = arith.constant 0 : index
    %63 = vector.load %arg8[%c0_59, %c1_60, %c0_61, %c0_62] : memref<1x8x1x16xf32, #tpu.memory_space<vmem>>, vector<1x1x1x16xf32>
    %64 = vector.shape_cast %63 : vector<1x1x1x16xf32> to vector<1x16xf32>
    %65 = vector.broadcast %64 : vector<1x16xf32> to vector<16x16xf32>
    %66 = arith.addf %62, %65 : vector<16x16xf32>
    %67 = vector.shape_cast %52 : vector<16x16xf32> to vector<2x8x16xf32>
    %68 = vector.shape_cast %59 : vector<16x16xf32> to vector<2x8x16xf32>
    %69 = vector.shape_cast %66 : vector<16x16xf32> to vector<2x8x16xf32>
    "tpu.trace_start"() <{level = 10 : i32, message = "bqd,bkd->bqk"}> : () -> ()
    %cst_63 = arith.constant dense<0.000000e+00> : vector<2x8x8xf32>
    %70 = tpu.matmul %67, %68, %cst_63 {dimension_numbers = #tpu.dot_dimension_numbers<[2], [2], [1], [1], [0, 0, 0, 1, 1, 1], [0], [0]>} : vector<2x8x16xf32>, vector<2x8x16xf32>, vector<2x8x8xf32> -> vector<2x8x8xf32>
    "tpu.trace_stop"() : () -> ()
    %cst_64 = arith.constant dense<0xFF800000> : vector<2x8xf32>
    %71 = vector.multi_reduction <maximumf>, %70, %cst_64 [2] : vector<2x8x8xf32> to vector<2x8xf32>
    %72 = vector.shape_cast %71 : vector<2x8xf32> to vector<2x8x1xf32>
    %73 = vector.broadcast %72 : vector<2x8x1xf32> to vector<2x8x8xf32>
    %74 = arith.subf %70, %73 : vector<2x8x8xf32>
    %75 = math.exp %74 : vector<2x8x8xf32>
    %cst_65 = arith.constant dense<0.000000e+00> : vector<2x8xf32>
    %76 = vector.multi_reduction <add>, %75, %cst_65 [2] : vector<2x8x8xf32> to vector<2x8xf32>
    %77 = vector.shape_cast %76 : vector<2x8xf32> to vector<2x8x1xf32>
    %78 = tpu.reciprocal %77 {approx = true} : vector<2x8x1xf32> -> vector<2x8x1xf32>
    %79 = vector.broadcast %78 : vector<2x8x1xf32> to vector<2x8x8xf32>
    %80 = arith.mulf %75, %79 : vector<2x8x8xf32>
    "tpu.trace_start"() <{level = 10 : i32, message = "bqk,bkd->bqd"}> : () -> ()
    %cst_66 = arith.constant dense<0.000000e+00> : vector<2x8x16xf32>
    %81 = tpu.matmul %80, %69, %cst_66 {dimension_numbers = #tpu.dot_dimension_numbers<[2], [1], [1], [2], [0, 0, 0, 1, 1, 2], [0], [0]>} : vector<2x8x8xf32>, vector<2x8x16xf32>, vector<2x8x16xf32> -> vector<2x8x16xf32>
    "tpu.trace_stop"() : () -> ()
    %82 = vector.shape_cast %81 : vector<2x8x16xf32> to vector<16x16xf32>
    %83 = arith.truncf %82 : vector<16x16xf32> to vector<16x16xbf16>
    %c0_67 = arith.constant 0 : index
    %c1_68 = arith.constant 1 : index
    %c0_69 = arith.constant 0 : index
    %c0_70 = arith.constant 0 : index
    %84 = vector.load %arg9[%c0_67, %c1_68, %c0_69, %c0_70] : memref<1x8x16x128xbf16, #tpu.memory_space<vmem>>, vector<1x1x16x128xbf16>
    %85 = vector.shape_cast %84 : vector<1x1x16x128xbf16> to vector<16x128xbf16>
    %cst_71 = arith.constant dense<0.000000e+00> : vector<16x128xf32>
    %86 = tpu.matmul %83, %85, %cst_71 {dimension_numbers = #tpu.dot_dimension_numbers<[1], [0], [0], [1], [0, 0, 1, 1], [], []>} : vector<16x16xbf16>, vector<16x128xbf16>, vector<16x128xf32> -> vector<16x128xf32>
    %87 = arith.addf %45, %86 : vector<16x128xf32>
    %c0_72 = arith.constant 0 : index
    %c2 = arith.constant 2 : index
    %c0_73 = arith.constant 0 : index
    %c0_74 = arith.constant 0 : index
    %88 = vector.load %arg3[%c0_72, %c2, %c0_73, %c0_74] : memref<1x8x128x16xbf16, #tpu.memory_space<vmem>>, vector<1x1x128x16xbf16>
    %89 = vector.shape_cast %88 : vector<1x1x128x16xbf16> to vector<128x16xbf16>
    %cst_75 = arith.constant dense<0.000000e+00> : vector<16x16xf32>
    %90 = tpu.matmul %4, %89, %cst_75 {dimension_numbers = #tpu.dot_dimension_numbers<[1], [0], [0], [1], [0, 0, 1, 1], [], []>} : vector<16x128xbf16>, vector<128x16xbf16>, vector<16x16xf32> -> vector<16x16xf32>
    %c0_76 = arith.constant 0 : index
    %c2_77 = arith.constant 2 : index
    %c0_78 = arith.constant 0 : index
    %c0_79 = arith.constant 0 : index
    %91 = vector.load %arg6[%c0_76, %c2_77, %c0_78, %c0_79] : memref<1x8x1x16xf32, #tpu.memory_space<vmem>>, vector<1x1x1x16xf32>
    %92 = vector.shape_cast %91 : vector<1x1x1x16xf32> to vector<1x16xf32>
    %93 = vector.broadcast %92 : vector<1x16xf32> to vector<16x16xf32>
    %94 = arith.addf %90, %93 : vector<16x16xf32>
    %c0_80 = arith.constant 0 : index
    %c2_81 = arith.constant 2 : index
    %c0_82 = arith.constant 0 : index
    %c0_83 = arith.constant 0 : index
    %95 = vector.load %arg4[%c0_80, %c2_81, %c0_82, %c0_83] : memref<1x8x128x16xbf16, #tpu.memory_space<vmem>>, vector<1x1x128x16xbf16>
    %96 = vector.shape_cast %95 : vector<1x1x128x16xbf16> to vector<128x16xbf16>
    %cst_84 = arith.constant dense<0.000000e+00> : vector<16x16xf32>
    %97 = tpu.matmul %4, %96, %cst_84 {dimension_numbers = #tpu.dot_dimension_numbers<[1], [0], [0], [1], [0, 0, 1, 1], [], []>} : vector<16x128xbf16>, vector<128x16xbf16>, vector<16x16xf32> -> vector<16x16xf32>
    %c0_85 = arith.constant 0 : index
    %c2_86 = arith.constant 2 : index
    %c0_87 = arith.constant 0 : index
    %c0_88 = arith.constant 0 : index
    %98 = vector.load %arg7[%c0_85, %c2_86, %c0_87, %c0_88] : memref<1x8x1x16xf32, #tpu.memory_space<vmem>>, vector<1x1x1x16xf32>
    %99 = vector.shape_cast %98 : vector<1x1x1x16xf32> to vector<1x16xf32>
    %100 = vector.broadcast %99 : vector<1x16xf32> to vector<16x16xf32>
    %101 = arith.addf %97, %100 : vector<16x16xf32>
    %c0_89 = arith.constant 0 : index
    %c2_90 = arith.constant 2 : index
    %c0_91 = arith.constant 0 : index
    %c0_92 = arith.constant 0 : index
    %102 = vector.load %arg5[%c0_89, %c2_90, %c0_91, %c0_92] : memref<1x8x128x16xbf16, #tpu.memory_space<vmem>>, vector<1x1x128x16xbf16>
    %103 = vector.shape_cast %102 : vector<1x1x128x16xbf16> to vector<128x16xbf16>
    %cst_93 = arith.constant dense<0.000000e+00> : vector<16x16xf32>
    %104 = tpu.matmul %4, %103, %cst_93 {dimension_numbers = #tpu.dot_dimension_numbers<[1], [0], [0], [1], [0, 0, 1, 1], [], []>} : vector<16x128xbf16>, vector<128x16xbf16>, vector<16x16xf32> -> vector<16x16xf32>
    %c0_94 = arith.constant 0 : index
    %c2_95 = arith.constant 2 : index
    %c0_96 = arith.constant 0 : index
    %c0_97 = arith.constant 0 : index
    %105 = vector.load %arg8[%c0_94, %c2_95, %c0_96, %c0_97] : memref<1x8x1x16xf32, #tpu.memory_space<vmem>>, vector<1x1x1x16xf32>
    %106 = vector.shape_cast %105 : vector<1x1x1x16xf32> to vector<1x16xf32>
    %107 = vector.broadcast %106 : vector<1x16xf32> to vector<16x16xf32>
    %108 = arith.addf %104, %107 : vector<16x16xf32>
    %109 = vector.shape_cast %94 : vector<16x16xf32> to vector<2x8x16xf32>
    %110 = vector.shape_cast %101 : vector<16x16xf32> to vector<2x8x16xf32>
    %111 = vector.shape_cast %108 : vector<16x16xf32> to vector<2x8x16xf32>
    "tpu.trace_start"() <{level = 10 : i32, message = "bqd,bkd->bqk"}> : () -> ()
    %cst_98 = arith.constant dense<0.000000e+00> : vector<2x8x8xf32>
    %112 = tpu.matmul %109, %110, %cst_98 {dimension_numbers = #tpu.dot_dimension_numbers<[2], [2], [1], [1], [0, 0, 0, 1, 1, 1], [0], [0]>} : vector<2x8x16xf32>, vector<2x8x16xf32>, vector<2x8x8xf32> -> vector<2x8x8xf32>
    "tpu.trace_stop"() : () -> ()
    %cst_99 = arith.constant dense<0xFF800000> : vector<2x8xf32>
    %113 = vector.multi_reduction <maximumf>, %112, %cst_99 [2] : vector<2x8x8xf32> to vector<2x8xf32>
    %114 = vector.shape_cast %113 : vector<2x8xf32> to vector<2x8x1xf32>
    %115 = vector.broadcast %114 : vector<2x8x1xf32> to vector<2x8x8xf32>
    %116 = arith.subf %112, %115 : vector<2x8x8xf32>
    %117 = math.exp %116 : vector<2x8x8xf32>
    %cst_100 = arith.constant dense<0.000000e+00> : vector<2x8xf32>
    %118 = vector.multi_reduction <add>, %117, %cst_100 [2] : vector<2x8x8xf32> to vector<2x8xf32>
    %119 = vector.shape_cast %118 : vector<2x8xf32> to vector<2x8x1xf32>
    %120 = tpu.reciprocal %119 {approx = true} : vector<2x8x1xf32> -> vector<2x8x1xf32>
    %121 = vector.broadcast %120 : vector<2x8x1xf32> to vector<2x8x8xf32>
    %122 = arith.mulf %117, %121 : vector<2x8x8xf32>
    "tpu.trace_start"() <{level = 10 : i32, message = "bqk,bkd->bqd"}> : () -> ()
    %cst_101 = arith.constant dense<0.000000e+00> : vector<2x8x16xf32>
    %123 = tpu.matmul %122, %111, %cst_101 {dimension_numbers = #tpu.dot_dimension_numbers<[2], [1], [1], [2], [0, 0, 0, 1, 1, 2], [0], [0]>} : vector<2x8x8xf32>, vector<2x8x16xf32>, vector<2x8x16xf32> -> vector<2x8x16xf32>
    "tpu.trace_stop"() : () -> ()
    %124 = vector.shape_cast %123 : vector<2x8x16xf32> to vector<16x16xf32>
    %125 = arith.truncf %124 : vector<16x16xf32> to vector<16x16xbf16>
    %c0_102 = arith.constant 0 : index
    %c2_103 = arith.constant 2 : index
    %c0_104 = arith.constant 0 : index
    %c0_105 = arith.constant 0 : index
    %126 = vector.load %arg9[%c0_102, %c2_103, %c0_104, %c0_105] : memref<1x8x16x128xbf16, #tpu.memory_space<vmem>>, vector<1x1x16x128xbf16>
    %127 = vector.shape_cast %126 : vector<1x1x16x128xbf16> to vector<16x128xbf16>
    %cst_106 = arith.constant dense<0.000000e+00> : vector<16x128xf32>
    %128 = tpu.matmul %125, %127, %cst_106 {dimension_numbers = #tpu.dot_dimension_numbers<[1], [0], [0], [1], [0, 0, 1, 1], [], []>} : vector<16x16xbf16>, vector<16x128xbf16>, vector<16x128xf32> -> vector<16x128xf32>
    %129 = arith.addf %87, %128 : vector<16x128xf32>
    %c0_107 = arith.constant 0 : index
    %c3 = arith.constant 3 : index
    %c0_108 = arith.constant 0 : index
    %c0_109 = arith.constant 0 : index
    %130 = vector.load %arg3[%c0_107, %c3, %c0_108, %c0_109] : memref<1x8x128x16xbf16, #tpu.memory_space<vmem>>, vector<1x1x128x16xbf16>
    %131 = vector.shape_cast %130 : vector<1x1x128x16xbf16> to vector<128x16xbf16>
    %cst_110 = arith.constant dense<0.000000e+00> : vector<16x16xf32>
    %132 = tpu.matmul %4, %131, %cst_110 {dimension_numbers = #tpu.dot_dimension_numbers<[1], [0], [0], [1], [0, 0, 1, 1], [], []>} : vector<16x128xbf16>, vector<128x16xbf16>, vector<16x16xf32> -> vector<16x16xf32>
    %c0_111 = arith.constant 0 : index
    %c3_112 = arith.constant 3 : index
    %c0_113 = arith.constant 0 : index
    %c0_114 = arith.constant 0 : index
    %133 = vector.load %arg6[%c0_111, %c3_112, %c0_113, %c0_114] : memref<1x8x1x16xf32, #tpu.memory_space<vmem>>, vector<1x1x1x16xf32>
    %134 = vector.shape_cast %133 : vector<1x1x1x16xf32> to vector<1x16xf32>
    %135 = vector.broadcast %134 : vector<1x16xf32> to vector<16x16xf32>
    %136 = arith.addf %132, %135 : vector<16x16xf32>
    %c0_115 = arith.constant 0 : index
    %c3_116 = arith.constant 3 : index
    %c0_117 = arith.constant 0 : index
    %c0_118 = arith.constant 0 : index
    %137 = vector.load %arg4[%c0_115, %c3_116, %c0_117, %c0_118] : memref<1x8x128x16xbf16, #tpu.memory_space<vmem>>, vector<1x1x128x16xbf16>
    %138 = vector.shape_cast %137 : vector<1x1x128x16xbf16> to vector<128x16xbf16>
    %cst_119 = arith.constant dense<0.000000e+00> : vector<16x16xf32>
    %139 = tpu.matmul %4, %138, %cst_119 {dimension_numbers = #tpu.dot_dimension_numbers<[1], [0], [0], [1], [0, 0, 1, 1], [], []>} : vector<16x128xbf16>, vector<128x16xbf16>, vector<16x16xf32> -> vector<16x16xf32>
    %c0_120 = arith.constant 0 : index
    %c3_121 = arith.constant 3 : index
    %c0_122 = arith.constant 0 : index
    %c0_123 = arith.constant 0 : index
    %140 = vector.load %arg7[%c0_120, %c3_121, %c0_122, %c0_123] : memref<1x8x1x16xf32, #tpu.memory_space<vmem>>, vector<1x1x1x16xf32>
    %141 = vector.shape_cast %140 : vector<1x1x1x16xf32> to vector<1x16xf32>
    %142 = vector.broadcast %141 : vector<1x16xf32> to vector<16x16xf32>
    %143 = arith.addf %139, %142 : vector<16x16xf32>
    %c0_124 = arith.constant 0 : index
    %c3_125 = arith.constant 3 : index
    %c0_126 = arith.constant 0 : index
    %c0_127 = arith.constant 0 : index
    %144 = vector.load %arg5[%c0_124, %c3_125, %c0_126, %c0_127] : memref<1x8x128x16xbf16, #tpu.memory_space<vmem>>, vector<1x1x128x16xbf16>
    %145 = vector.shape_cast %144 : vector<1x1x128x16xbf16> to vector<128x16xbf16>
    %cst_128 = arith.constant dense<0.000000e+00> : vector<16x16xf32>
    %146 = tpu.matmul %4, %145, %cst_128 {dimension_numbers = #tpu.dot_dimension_numbers<[1], [0], [0], [1], [0, 0, 1, 1], [], []>} : vector<16x128xbf16>, vector<128x16xbf16>, vector<16x16xf32> -> vector<16x16xf32>
    %c0_129 = arith.constant 0 : index
    %c3_130 = arith.constant 3 : index
    %c0_131 = arith.constant 0 : index
    %c0_132 = arith.constant 0 : index
    %147 = vector.load %arg8[%c0_129, %c3_130, %c0_131, %c0_132] : memref<1x8x1x16xf32, #tpu.memory_space<vmem>>, vector<1x1x1x16xf32>
    %148 = vector.shape_cast %147 : vector<1x1x1x16xf32> to vector<1x16xf32>
    %149 = vector.broadcast %148 : vector<1x16xf32> to vector<16x16xf32>
    %150 = arith.addf %146, %149 : vector<16x16xf32>
    %151 = vector.shape_cast %136 : vector<16x16xf32> to vector<2x8x16xf32>
    %152 = vector.shape_cast %143 : vector<16x16xf32> to vector<2x8x16xf32>
    %153 = vector.shape_cast %150 : vector<16x16xf32> to vector<2x8x16xf32>
    "tpu.trace_start"() <{level = 10 : i32, message = "bqd,bkd->bqk"}> : () -> ()
    %cst_133 = arith.constant dense<0.000000e+00> : vector<2x8x8xf32>
    %154 = tpu.matmul %151, %152, %cst_133 {dimension_numbers = #tpu.dot_dimension_numbers<[2], [2], [1], [1], [0, 0, 0, 1, 1, 1], [0], [0]>} : vector<2x8x16xf32>, vector<2x8x16xf32>, vector<2x8x8xf32> -> vector<2x8x8xf32>
    "tpu.trace_stop"() : () -> ()
    %cst_134 = arith.constant dense<0xFF800000> : vector<2x8xf32>
    %155 = vector.multi_reduction <maximumf>, %154, %cst_134 [2] : vector<2x8x8xf32> to vector<2x8xf32>
    %156 = vector.shape_cast %155 : vector<2x8xf32> to vector<2x8x1xf32>
    %157 = vector.broadcast %156 : vector<2x8x1xf32> to vector<2x8x8xf32>
    %158 = arith.subf %154, %157 : vector<2x8x8xf32>
    %159 = math.exp %158 : vector<2x8x8xf32>
    %cst_135 = arith.constant dense<0.000000e+00> : vector<2x8xf32>
    %160 = vector.multi_reduction <add>, %159, %cst_135 [2] : vector<2x8x8xf32> to vector<2x8xf32>
    %161 = vector.shape_cast %160 : vector<2x8xf32> to vector<2x8x1xf32>
    %162 = tpu.reciprocal %161 {approx = true} : vector<2x8x1xf32> -> vector<2x8x1xf32>
    %163 = vector.broadcast %162 : vector<2x8x1xf32> to vector<2x8x8xf32>
    %164 = arith.mulf %159, %163 : vector<2x8x8xf32>
    "tpu.trace_start"() <{level = 10 : i32, message = "bqk,bkd->bqd"}> : () -> ()
    %cst_136 = arith.constant dense<0.000000e+00> : vector<2x8x16xf32>
    %165 = tpu.matmul %164, %153, %cst_136 {dimension_numbers = #tpu.dot_dimension_numbers<[2], [1], [1], [2], [0, 0, 0, 1, 1, 2], [0], [0]>} : vector<2x8x8xf32>, vector<2x8x16xf32>, vector<2x8x16xf32> -> vector<2x8x16xf32>
    "tpu.trace_stop"() : () -> ()
    %166 = vector.shape_cast %165 : vector<2x8x16xf32> to vector<16x16xf32>
    %167 = arith.truncf %166 : vector<16x16xf32> to vector<16x16xbf16>
    %c0_137 = arith.constant 0 : index
    %c3_138 = arith.constant 3 : index
    %c0_139 = arith.constant 0 : index
    %c0_140 = arith.constant 0 : index
    %168 = vector.load %arg9[%c0_137, %c3_138, %c0_139, %c0_140] : memref<1x8x16x128xbf16, #tpu.memory_space<vmem>>, vector<1x1x16x128xbf16>
    %169 = vector.shape_cast %168 : vector<1x1x16x128xbf16> to vector<16x128xbf16>
    %cst_141 = arith.constant dense<0.000000e+00> : vector<16x128xf32>
    %170 = tpu.matmul %167, %169, %cst_141 {dimension_numbers = #tpu.dot_dimension_numbers<[1], [0], [0], [1], [0, 0, 1, 1], [], []>} : vector<16x16xbf16>, vector<16x128xbf16>, vector<16x128xf32> -> vector<16x128xf32>
    %171 = arith.addf %129, %170 : vector<16x128xf32>
    %c0_142 = arith.constant 0 : index
    %c4 = arith.constant 4 : index
    %c0_143 = arith.constant 0 : index
    %c0_144 = arith.constant 0 : index
    %172 = vector.load %arg3[%c0_142, %c4, %c0_143, %c0_144] : memref<1x8x128x16xbf16, #tpu.memory_space<vmem>>, vector<1x1x128x16xbf16>
    %173 = vector.shape_cast %172 : vector<1x1x128x16xbf16> to vector<128x16xbf16>
    %cst_145 = arith.constant dense<0.000000e+00> : vector<16x16xf32>
    %174 = tpu.matmul %4, %173, %cst_145 {dimension_numbers = #tpu.dot_dimension_numbers<[1], [0], [0], [1], [0, 0, 1, 1], [], []>} : vector<16x128xbf16>, vector<128x16xbf16>, vector<16x16xf32> -> vector<16x16xf32>
    %c0_146 = arith.constant 0 : index
    %c4_147 = arith.constant 4 : index
    %c0_148 = arith.constant 0 : index
    %c0_149 = arith.constant 0 : index
    %175 = vector.load %arg6[%c0_146, %c4_147, %c0_148, %c0_149] : memref<1x8x1x16xf32, #tpu.memory_space<vmem>>, vector<1x1x1x16xf32>
    %176 = vector.shape_cast %175 : vector<1x1x1x16xf32> to vector<1x16xf32>
    %177 = vector.broadcast %176 : vector<1x16xf32> to vector<16x16xf32>
    %178 = arith.addf %174, %177 : vector<16x16xf32>
    %c0_150 = arith.constant 0 : index
    %c4_151 = arith.constant 4 : index
    %c0_152 = arith.constant 0 : index
    %c0_153 = arith.constant 0 : index
    %179 = vector.load %arg4[%c0_150, %c4_151, %c0_152, %c0_153] : memref<1x8x128x16xbf16, #tpu.memory_space<vmem>>, vector<1x1x128x16xbf16>
    %180 = vector.shape_cast %179 : vector<1x1x128x16xbf16> to vector<128x16xbf16>
    %cst_154 = arith.constant dense<0.000000e+00> : vector<16x16xf32>
    %181 = tpu.matmul %4, %180, %cst_154 {dimension_numbers = #tpu.dot_dimension_numbers<[1], [0], [0], [1], [0, 0, 1, 1], [], []>} : vector<16x128xbf16>, vector<128x16xbf16>, vector<16x16xf32> -> vector<16x16xf32>
    %c0_155 = arith.constant 0 : index
    %c4_156 = arith.constant 4 : index
    %c0_157 = arith.constant 0 : index
    %c0_158 = arith.constant 0 : index
    %182 = vector.load %arg7[%c0_155, %c4_156, %c0_157, %c0_158] : memref<1x8x1x16xf32, #tpu.memory_space<vmem>>, vector<1x1x1x16xf32>
    %183 = vector.shape_cast %182 : vector<1x1x1x16xf32> to vector<1x16xf32>
    %184 = vector.broadcast %183 : vector<1x16xf32> to vector<16x16xf32>
    %185 = arith.addf %181, %184 : vector<16x16xf32>
    %c0_159 = arith.constant 0 : index
    %c4_160 = arith.constant 4 : index
    %c0_161 = arith.constant 0 : index
    %c0_162 = arith.constant 0 : index
    %186 = vector.load %arg5[%c0_159, %c4_160, %c0_161, %c0_162] : memref<1x8x128x16xbf16, #tpu.memory_space<vmem>>, vector<1x1x128x16xbf16>
    %187 = vector.shape_cast %186 : vector<1x1x128x16xbf16> to vector<128x16xbf16>
    %cst_163 = arith.constant dense<0.000000e+00> : vector<16x16xf32>
    %188 = tpu.matmul %4, %187, %cst_163 {dimension_numbers = #tpu.dot_dimension_numbers<[1], [0], [0], [1], [0, 0, 1, 1], [], []>} : vector<16x128xbf16>, vector<128x16xbf16>, vector<16x16xf32> -> vector<16x16xf32>
    %c0_164 = arith.constant 0 : index
    %c4_165 = arith.constant 4 : index
    %c0_166 = arith.constant 0 : index
    %c0_167 = arith.constant 0 : index
    %189 = vector.load %arg8[%c0_164, %c4_165, %c0_166, %c0_167] : memref<1x8x1x16xf32, #tpu.memory_space<vmem>>, vector<1x1x1x16xf32>
    %190 = vector.shape_cast %189 : vector<1x1x1x16xf32> to vector<1x16xf32>
    %191 = vector.broadcast %190 : vector<1x16xf32> to vector<16x16xf32>
    %192 = arith.addf %188, %191 : vector<16x16xf32>
    %193 = vector.shape_cast %178 : vector<16x16xf32> to vector<2x8x16xf32>
    %194 = vector.shape_cast %185 : vector<16x16xf32> to vector<2x8x16xf32>
    %195 = vector.shape_cast %192 : vector<16x16xf32> to vector<2x8x16xf32>
    "tpu.trace_start"() <{level = 10 : i32, message = "bqd,bkd->bqk"}> : () -> ()
    %cst_168 = arith.constant dense<0.000000e+00> : vector<2x8x8xf32>
    %196 = tpu.matmul %193, %194, %cst_168 {dimension_numbers = #tpu.dot_dimension_numbers<[2], [2], [1], [1], [0, 0, 0, 1, 1, 1], [0], [0]>} : vector<2x8x16xf32>, vector<2x8x16xf32>, vector<2x8x8xf32> -> vector<2x8x8xf32>
    "tpu.trace_stop"() : () -> ()
    %cst_169 = arith.constant dense<0xFF800000> : vector<2x8xf32>
    %197 = vector.multi_reduction <maximumf>, %196, %cst_169 [2] : vector<2x8x8xf32> to vector<2x8xf32>
    %198 = vector.shape_cast %197 : vector<2x8xf32> to vector<2x8x1xf32>
    %199 = vector.broadcast %198 : vector<2x8x1xf32> to vector<2x8x8xf32>
    %200 = arith.subf %196, %199 : vector<2x8x8xf32>
    %201 = math.exp %200 : vector<2x8x8xf32>
    %cst_170 = arith.constant dense<0.000000e+00> : vector<2x8xf32>
    %202 = vector.multi_reduction <add>, %201, %cst_170 [2] : vector<2x8x8xf32> to vector<2x8xf32>
    %203 = vector.shape_cast %202 : vector<2x8xf32> to vector<2x8x1xf32>
    %204 = tpu.reciprocal %203 {approx = true} : vector<2x8x1xf32> -> vector<2x8x1xf32>
    %205 = vector.broadcast %204 : vector<2x8x1xf32> to vector<2x8x8xf32>
    %206 = arith.mulf %201, %205 : vector<2x8x8xf32>
    "tpu.trace_start"() <{level = 10 : i32, message = "bqk,bkd->bqd"}> : () -> ()
    %cst_171 = arith.constant dense<0.000000e+00> : vector<2x8x16xf32>
    %207 = tpu.matmul %206, %195, %cst_171 {dimension_numbers = #tpu.dot_dimension_numbers<[2], [1], [1], [2], [0, 0, 0, 1, 1, 2], [0], [0]>} : vector<2x8x8xf32>, vector<2x8x16xf32>, vector<2x8x16xf32> -> vector<2x8x16xf32>
    "tpu.trace_stop"() : () -> ()
    %208 = vector.shape_cast %207 : vector<2x8x16xf32> to vector<16x16xf32>
    %209 = arith.truncf %208 : vector<16x16xf32> to vector<16x16xbf16>
    %c0_172 = arith.constant 0 : index
    %c4_173 = arith.constant 4 : index
    %c0_174 = arith.constant 0 : index
    %c0_175 = arith.constant 0 : index
    %210 = vector.load %arg9[%c0_172, %c4_173, %c0_174, %c0_175] : memref<1x8x16x128xbf16, #tpu.memory_space<vmem>>, vector<1x1x16x128xbf16>
    %211 = vector.shape_cast %210 : vector<1x1x16x128xbf16> to vector<16x128xbf16>
    %cst_176 = arith.constant dense<0.000000e+00> : vector<16x128xf32>
    %212 = tpu.matmul %209, %211, %cst_176 {dimension_numbers = #tpu.dot_dimension_numbers<[1], [0], [0], [1], [0, 0, 1, 1], [], []>} : vector<16x16xbf16>, vector<16x128xbf16>, vector<16x128xf32> -> vector<16x128xf32>
    %213 = arith.addf %171, %212 : vector<16x128xf32>
    %c0_177 = arith.constant 0 : index
    %c5 = arith.constant 5 : index
    %c0_178 = arith.constant 0 : index
    %c0_179 = arith.constant 0 : index
    %214 = vector.load %arg3[%c0_177, %c5, %c0_178, %c0_179] : memref<1x8x128x16xbf16, #tpu.memory_space<vmem>>, vector<1x1x128x16xbf16>
    %215 = vector.shape_cast %214 : vector<1x1x128x16xbf16> to vector<128x16xbf16>
    %cst_180 = arith.constant dense<0.000000e+00> : vector<16x16xf32>
    %216 = tpu.matmul %4, %215, %cst_180 {dimension_numbers = #tpu.dot_dimension_numbers<[1], [0], [0], [1], [0, 0, 1, 1], [], []>} : vector<16x128xbf16>, vector<128x16xbf16>, vector<16x16xf32> -> vector<16x16xf32>
    %c0_181 = arith.constant 0 : index
    %c5_182 = arith.constant 5 : index
    %c0_183 = arith.constant 0 : index
    %c0_184 = arith.constant 0 : index
    %217 = vector.load %arg6[%c0_181, %c5_182, %c0_183, %c0_184] : memref<1x8x1x16xf32, #tpu.memory_space<vmem>>, vector<1x1x1x16xf32>
    %218 = vector.shape_cast %217 : vector<1x1x1x16xf32> to vector<1x16xf32>
    %219 = vector.broadcast %218 : vector<1x16xf32> to vector<16x16xf32>
    %220 = arith.addf %216, %219 : vector<16x16xf32>
    %c0_185 = arith.constant 0 : index
    %c5_186 = arith.constant 5 : index
    %c0_187 = arith.constant 0 : index
    %c0_188 = arith.constant 0 : index
    %221 = vector.load %arg4[%c0_185, %c5_186, %c0_187, %c0_188] : memref<1x8x128x16xbf16, #tpu.memory_space<vmem>>, vector<1x1x128x16xbf16>
    %222 = vector.shape_cast %221 : vector<1x1x128x16xbf16> to vector<128x16xbf16>
    %cst_189 = arith.constant dense<0.000000e+00> : vector<16x16xf32>
    %223 = tpu.matmul %4, %222, %cst_189 {dimension_numbers = #tpu.dot_dimension_numbers<[1], [0], [0], [1], [0, 0, 1, 1], [], []>} : vector<16x128xbf16>, vector<128x16xbf16>, vector<16x16xf32> -> vector<16x16xf32>
    %c0_190 = arith.constant 0 : index
    %c5_191 = arith.constant 5 : index
    %c0_192 = arith.constant 0 : index
    %c0_193 = arith.constant 0 : index
    %224 = vector.load %arg7[%c0_190, %c5_191, %c0_192, %c0_193] : memref<1x8x1x16xf32, #tpu.memory_space<vmem>>, vector<1x1x1x16xf32>
    %225 = vector.shape_cast %224 : vector<1x1x1x16xf32> to vector<1x16xf32>
    %226 = vector.broadcast %225 : vector<1x16xf32> to vector<16x16xf32>
    %227 = arith.addf %223, %226 : vector<16x16xf32>
    %c0_194 = arith.constant 0 : index
    %c5_195 = arith.constant 5 : index
    %c0_196 = arith.constant 0 : index
    %c0_197 = arith.constant 0 : index
    %228 = vector.load %arg5[%c0_194, %c5_195, %c0_196, %c0_197] : memref<1x8x128x16xbf16, #tpu.memory_space<vmem>>, vector<1x1x128x16xbf16>
    %229 = vector.shape_cast %228 : vector<1x1x128x16xbf16> to vector<128x16xbf16>
    %cst_198 = arith.constant dense<0.000000e+00> : vector<16x16xf32>
    %230 = tpu.matmul %4, %229, %cst_198 {dimension_numbers = #tpu.dot_dimension_numbers<[1], [0], [0], [1], [0, 0, 1, 1], [], []>} : vector<16x128xbf16>, vector<128x16xbf16>, vector<16x16xf32> -> vector<16x16xf32>
    %c0_199 = arith.constant 0 : index
    %c5_200 = arith.constant 5 : index
    %c0_201 = arith.constant 0 : index
    %c0_202 = arith.constant 0 : index
    %231 = vector.load %arg8[%c0_199, %c5_200, %c0_201, %c0_202] : memref<1x8x1x16xf32, #tpu.memory_space<vmem>>, vector<1x1x1x16xf32>
    %232 = vector.shape_cast %231 : vector<1x1x1x16xf32> to vector<1x16xf32>
    %233 = vector.broadcast %232 : vector<1x16xf32> to vector<16x16xf32>
    %234 = arith.addf %230, %233 : vector<16x16xf32>
    %235 = vector.shape_cast %220 : vector<16x16xf32> to vector<2x8x16xf32>
    %236 = vector.shape_cast %227 : vector<16x16xf32> to vector<2x8x16xf32>
    %237 = vector.shape_cast %234 : vector<16x16xf32> to vector<2x8x16xf32>
    "tpu.trace_start"() <{level = 10 : i32, message = "bqd,bkd->bqk"}> : () -> ()
    %cst_203 = arith.constant dense<0.000000e+00> : vector<2x8x8xf32>
    %238 = tpu.matmul %235, %236, %cst_203 {dimension_numbers = #tpu.dot_dimension_numbers<[2], [2], [1], [1], [0, 0, 0, 1, 1, 1], [0], [0]>} : vector<2x8x16xf32>, vector<2x8x16xf32>, vector<2x8x8xf32> -> vector<2x8x8xf32>
    "tpu.trace_stop"() : () -> ()
    %cst_204 = arith.constant dense<0xFF800000> : vector<2x8xf32>
    %239 = vector.multi_reduction <maximumf>, %238, %cst_204 [2] : vector<2x8x8xf32> to vector<2x8xf32>
    %240 = vector.shape_cast %239 : vector<2x8xf32> to vector<2x8x1xf32>
    %241 = vector.broadcast %240 : vector<2x8x1xf32> to vector<2x8x8xf32>
    %242 = arith.subf %238, %241 : vector<2x8x8xf32>
    %243 = math.exp %242 : vector<2x8x8xf32>
    %cst_205 = arith.constant dense<0.000000e+00> : vector<2x8xf32>
    %244 = vector.multi_reduction <add>, %243, %cst_205 [2] : vector<2x8x8xf32> to vector<2x8xf32>
    %245 = vector.shape_cast %244 : vector<2x8xf32> to vector<2x8x1xf32>
    %246 = tpu.reciprocal %245 {approx = true} : vector<2x8x1xf32> -> vector<2x8x1xf32>
    %247 = vector.broadcast %246 : vector<2x8x1xf32> to vector<2x8x8xf32>
    %248 = arith.mulf %243, %247 : vector<2x8x8xf32>
    "tpu.trace_start"() <{level = 10 : i32, message = "bqk,bkd->bqd"}> : () -> ()
    %cst_206 = arith.constant dense<0.000000e+00> : vector<2x8x16xf32>
    %249 = tpu.matmul %248, %237, %cst_206 {dimension_numbers = #tpu.dot_dimension_numbers<[2], [1], [1], [2], [0, 0, 0, 1, 1, 2], [0], [0]>} : vector<2x8x8xf32>, vector<2x8x16xf32>, vector<2x8x16xf32> -> vector<2x8x16xf32>
    "tpu.trace_stop"() : () -> ()
    %250 = vector.shape_cast %249 : vector<2x8x16xf32> to vector<16x16xf32>
    %251 = arith.truncf %250 : vector<16x16xf32> to vector<16x16xbf16>
    %c0_207 = arith.constant 0 : index
    %c5_208 = arith.constant 5 : index
    %c0_209 = arith.constant 0 : index
    %c0_210 = arith.constant 0 : index
    %252 = vector.load %arg9[%c0_207, %c5_208, %c0_209, %c0_210] : memref<1x8x16x128xbf16, #tpu.memory_space<vmem>>, vector<1x1x16x128xbf16>
    %253 = vector.shape_cast %252 : vector<1x1x16x128xbf16> to vector<16x128xbf16>
    %cst_211 = arith.constant dense<0.000000e+00> : vector<16x128xf32>
    %254 = tpu.matmul %251, %253, %cst_211 {dimension_numbers = #tpu.dot_dimension_numbers<[1], [0], [0], [1], [0, 0, 1, 1], [], []>} : vector<16x16xbf16>, vector<16x128xbf16>, vector<16x128xf32> -> vector<16x128xf32>
    %255 = arith.addf %213, %254 : vector<16x128xf32>
    %c0_212 = arith.constant 0 : index
    %c6 = arith.constant 6 : index
    %c0_213 = arith.constant 0 : index
    %c0_214 = arith.constant 0 : index
    %256 = vector.load %arg3[%c0_212, %c6, %c0_213, %c0_214] : memref<1x8x128x16xbf16, #tpu.memory_space<vmem>>, vector<1x1x128x16xbf16>
    %257 = vector.shape_cast %256 : vector<1x1x128x16xbf16> to vector<128x16xbf16>
    %cst_215 = arith.constant dense<0.000000e+00> : vector<16x16xf32>
    %258 = tpu.matmul %4, %257, %cst_215 {dimension_numbers = #tpu.dot_dimension_numbers<[1], [0], [0], [1], [0, 0, 1, 1], [], []>} : vector<16x128xbf16>, vector<128x16xbf16>, vector<16x16xf32> -> vector<16x16xf32>
    %c0_216 = arith.constant 0 : index
    %c6_217 = arith.constant 6 : index
    %c0_218 = arith.constant 0 : index
    %c0_219 = arith.constant 0 : index
    %259 = vector.load %arg6[%c0_216, %c6_217, %c0_218, %c0_219] : memref<1x8x1x16xf32, #tpu.memory_space<vmem>>, vector<1x1x1x16xf32>
    %260 = vector.shape_cast %259 : vector<1x1x1x16xf32> to vector<1x16xf32>
    %261 = vector.broadcast %260 : vector<1x16xf32> to vector<16x16xf32>
    %262 = arith.addf %258, %261 : vector<16x16xf32>
    %c0_220 = arith.constant 0 : index
    %c6_221 = arith.constant 6 : index
    %c0_222 = arith.constant 0 : index
    %c0_223 = arith.constant 0 : index
    %263 = vector.load %arg4[%c0_220, %c6_221, %c0_222, %c0_223] : memref<1x8x128x16xbf16, #tpu.memory_space<vmem>>, vector<1x1x128x16xbf16>
    %264 = vector.shape_cast %263 : vector<1x1x128x16xbf16> to vector<128x16xbf16>
    %cst_224 = arith.constant dense<0.000000e+00> : vector<16x16xf32>
    %265 = tpu.matmul %4, %264, %cst_224 {dimension_numbers = #tpu.dot_dimension_numbers<[1], [0], [0], [1], [0, 0, 1, 1], [], []>} : vector<16x128xbf16>, vector<128x16xbf16>, vector<16x16xf32> -> vector<16x16xf32>
    %c0_225 = arith.constant 0 : index
    %c6_226 = arith.constant 6 : index
    %c0_227 = arith.constant 0 : index
    %c0_228 = arith.constant 0 : index
    %266 = vector.load %arg7[%c0_225, %c6_226, %c0_227, %c0_228] : memref<1x8x1x16xf32, #tpu.memory_space<vmem>>, vector<1x1x1x16xf32>
    %267 = vector.shape_cast %266 : vector<1x1x1x16xf32> to vector<1x16xf32>
    %268 = vector.broadcast %267 : vector<1x16xf32> to vector<16x16xf32>
    %269 = arith.addf %265, %268 : vector<16x16xf32>
    %c0_229 = arith.constant 0 : index
    %c6_230 = arith.constant 6 : index
    %c0_231 = arith.constant 0 : index
    %c0_232 = arith.constant 0 : index
    %270 = vector.load %arg5[%c0_229, %c6_230, %c0_231, %c0_232] : memref<1x8x128x16xbf16, #tpu.memory_space<vmem>>, vector<1x1x128x16xbf16>
    %271 = vector.shape_cast %270 : vector<1x1x128x16xbf16> to vector<128x16xbf16>
    %cst_233 = arith.constant dense<0.000000e+00> : vector<16x16xf32>
    %272 = tpu.matmul %4, %271, %cst_233 {dimension_numbers = #tpu.dot_dimension_numbers<[1], [0], [0], [1], [0, 0, 1, 1], [], []>} : vector<16x128xbf16>, vector<128x16xbf16>, vector<16x16xf32> -> vector<16x16xf32>
    %c0_234 = arith.constant 0 : index
    %c6_235 = arith.constant 6 : index
    %c0_236 = arith.constant 0 : index
    %c0_237 = arith.constant 0 : index
    %273 = vector.load %arg8[%c0_234, %c6_235, %c0_236, %c0_237] : memref<1x8x1x16xf32, #tpu.memory_space<vmem>>, vector<1x1x1x16xf32>
    %274 = vector.shape_cast %273 : vector<1x1x1x16xf32> to vector<1x16xf32>
    %275 = vector.broadcast %274 : vector<1x16xf32> to vector<16x16xf32>
    %276 = arith.addf %272, %275 : vector<16x16xf32>
    %277 = vector.shape_cast %262 : vector<16x16xf32> to vector<2x8x16xf32>
    %278 = vector.shape_cast %269 : vector<16x16xf32> to vector<2x8x16xf32>
    %279 = vector.shape_cast %276 : vector<16x16xf32> to vector<2x8x16xf32>
    "tpu.trace_start"() <{level = 10 : i32, message = "bqd,bkd->bqk"}> : () -> ()
    %cst_238 = arith.constant dense<0.000000e+00> : vector<2x8x8xf32>
    %280 = tpu.matmul %277, %278, %cst_238 {dimension_numbers = #tpu.dot_dimension_numbers<[2], [2], [1], [1], [0, 0, 0, 1, 1, 1], [0], [0]>} : vector<2x8x16xf32>, vector<2x8x16xf32>, vector<2x8x8xf32> -> vector<2x8x8xf32>
    "tpu.trace_stop"() : () -> ()
    %cst_239 = arith.constant dense<0xFF800000> : vector<2x8xf32>
    %281 = vector.multi_reduction <maximumf>, %280, %cst_239 [2] : vector<2x8x8xf32> to vector<2x8xf32>
    %282 = vector.shape_cast %281 : vector<2x8xf32> to vector<2x8x1xf32>
    %283 = vector.broadcast %282 : vector<2x8x1xf32> to vector<2x8x8xf32>
    %284 = arith.subf %280, %283 : vector<2x8x8xf32>
    %285 = math.exp %284 : vector<2x8x8xf32>
    %cst_240 = arith.constant dense<0.000000e+00> : vector<2x8xf32>
    %286 = vector.multi_reduction <add>, %285, %cst_240 [2] : vector<2x8x8xf32> to vector<2x8xf32>
    %287 = vector.shape_cast %286 : vector<2x8xf32> to vector<2x8x1xf32>
    %288 = tpu.reciprocal %287 {approx = true} : vector<2x8x1xf32> -> vector<2x8x1xf32>
    %289 = vector.broadcast %288 : vector<2x8x1xf32> to vector<2x8x8xf32>
    %290 = arith.mulf %285, %289 : vector<2x8x8xf32>
    "tpu.trace_start"() <{level = 10 : i32, message = "bqk,bkd->bqd"}> : () -> ()
    %cst_241 = arith.constant dense<0.000000e+00> : vector<2x8x16xf32>
    %291 = tpu.matmul %290, %279, %cst_241 {dimension_numbers = #tpu.dot_dimension_numbers<[2], [1], [1], [2], [0, 0, 0, 1, 1, 2], [0], [0]>} : vector<2x8x8xf32>, vector<2x8x16xf32>, vector<2x8x16xf32> -> vector<2x8x16xf32>
    "tpu.trace_stop"() : () -> ()
    %292 = vector.shape_cast %291 : vector<2x8x16xf32> to vector<16x16xf32>
    %293 = arith.truncf %292 : vector<16x16xf32> to vector<16x16xbf16>
    %c0_242 = arith.constant 0 : index
    %c6_243 = arith.constant 6 : index
    %c0_244 = arith.constant 0 : index
    %c0_245 = arith.constant 0 : index
    %294 = vector.load %arg9[%c0_242, %c6_243, %c0_244, %c0_245] : memref<1x8x16x128xbf16, #tpu.memory_space<vmem>>, vector<1x1x16x128xbf16>
    %295 = vector.shape_cast %294 : vector<1x1x16x128xbf16> to vector<16x128xbf16>
    %cst_246 = arith.constant dense<0.000000e+00> : vector<16x128xf32>
    %296 = tpu.matmul %293, %295, %cst_246 {dimension_numbers = #tpu.dot_dimension_numbers<[1], [0], [0], [1], [0, 0, 1, 1], [], []>} : vector<16x16xbf16>, vector<16x128xbf16>, vector<16x128xf32> -> vector<16x128xf32>
    %297 = arith.addf %255, %296 : vector<16x128xf32>
    %c0_247 = arith.constant 0 : index
    %c7 = arith.constant 7 : index
    %c0_248 = arith.constant 0 : index
    %c0_249 = arith.constant 0 : index
    %298 = vector.load %arg3[%c0_247, %c7, %c0_248, %c0_249] : memref<1x8x128x16xbf16, #tpu.memory_space<vmem>>, vector<1x1x128x16xbf16>
    %299 = vector.shape_cast %298 : vector<1x1x128x16xbf16> to vector<128x16xbf16>
    %cst_250 = arith.constant dense<0.000000e+00> : vector<16x16xf32>
    %300 = tpu.matmul %4, %299, %cst_250 {dimension_numbers = #tpu.dot_dimension_numbers<[1], [0], [0], [1], [0, 0, 1, 1], [], []>} : vector<16x128xbf16>, vector<128x16xbf16>, vector<16x16xf32> -> vector<16x16xf32>
    %c0_251 = arith.constant 0 : index
    %c7_252 = arith.constant 7 : index
    %c0_253 = arith.constant 0 : index
    %c0_254 = arith.constant 0 : index
    %301 = vector.load %arg6[%c0_251, %c7_252, %c0_253, %c0_254] : memref<1x8x1x16xf32, #tpu.memory_space<vmem>>, vector<1x1x1x16xf32>
    %302 = vector.shape_cast %301 : vector<1x1x1x16xf32> to vector<1x16xf32>
    %303 = vector.broadcast %302 : vector<1x16xf32> to vector<16x16xf32>
    %304 = arith.addf %300, %303 : vector<16x16xf32>
    %c0_255 = arith.constant 0 : index
    %c7_256 = arith.constant 7 : index
    %c0_257 = arith.constant 0 : index
    %c0_258 = arith.constant 0 : index
    %305 = vector.load %arg4[%c0_255, %c7_256, %c0_257, %c0_258] : memref<1x8x128x16xbf16, #tpu.memory_space<vmem>>, vector<1x1x128x16xbf16>
    %306 = vector.shape_cast %305 : vector<1x1x128x16xbf16> to vector<128x16xbf16>
    %cst_259 = arith.constant dense<0.000000e+00> : vector<16x16xf32>
    %307 = tpu.matmul %4, %306, %cst_259 {dimension_numbers = #tpu.dot_dimension_numbers<[1], [0], [0], [1], [0, 0, 1, 1], [], []>} : vector<16x128xbf16>, vector<128x16xbf16>, vector<16x16xf32> -> vector<16x16xf32>
    %c0_260 = arith.constant 0 : index
    %c7_261 = arith.constant 7 : index
    %c0_262 = arith.constant 0 : index
    %c0_263 = arith.constant 0 : index
    %308 = vector.load %arg7[%c0_260, %c7_261, %c0_262, %c0_263] : memref<1x8x1x16xf32, #tpu.memory_space<vmem>>, vector<1x1x1x16xf32>
    %309 = vector.shape_cast %308 : vector<1x1x1x16xf32> to vector<1x16xf32>
    %310 = vector.broadcast %309 : vector<1x16xf32> to vector<16x16xf32>
    %311 = arith.addf %307, %310 : vector<16x16xf32>
    %c0_264 = arith.constant 0 : index
    %c7_265 = arith.constant 7 : index
    %c0_266 = arith.constant 0 : index
    %c0_267 = arith.constant 0 : index
    %312 = vector.load %arg5[%c0_264, %c7_265, %c0_266, %c0_267] : memref<1x8x128x16xbf16, #tpu.memory_space<vmem>>, vector<1x1x128x16xbf16>
    %313 = vector.shape_cast %312 : vector<1x1x128x16xbf16> to vector<128x16xbf16>
    %cst_268 = arith.constant dense<0.000000e+00> : vector<16x16xf32>
    %314 = tpu.matmul %4, %313, %cst_268 {dimension_numbers = #tpu.dot_dimension_numbers<[1], [0], [0], [1], [0, 0, 1, 1], [], []>} : vector<16x128xbf16>, vector<128x16xbf16>, vector<16x16xf32> -> vector<16x16xf32>
    %c0_269 = arith.constant 0 : index
    %c7_270 = arith.constant 7 : index
    %c0_271 = arith.constant 0 : index
    %c0_272 = arith.constant 0 : index
    %315 = vector.load %arg8[%c0_269, %c7_270, %c0_271, %c0_272] : memref<1x8x1x16xf32, #tpu.memory_space<vmem>>, vector<1x1x1x16xf32>
    %316 = vector.shape_cast %315 : vector<1x1x1x16xf32> to vector<1x16xf32>
    %317 = vector.broadcast %316 : vector<1x16xf32> to vector<16x16xf32>
    %318 = arith.addf %314, %317 : vector<16x16xf32>
    %319 = vector.shape_cast %304 : vector<16x16xf32> to vector<2x8x16xf32>
    %320 = vector.shape_cast %311 : vector<16x16xf32> to vector<2x8x16xf32>
    %321 = vector.shape_cast %318 : vector<16x16xf32> to vector<2x8x16xf32>
    "tpu.trace_start"() <{level = 10 : i32, message = "bqd,bkd->bqk"}> : () -> ()
    %cst_273 = arith.constant dense<0.000000e+00> : vector<2x8x8xf32>
    %322 = tpu.matmul %319, %320, %cst_273 {dimension_numbers = #tpu.dot_dimension_numbers<[2], [2], [1], [1], [0, 0, 0, 1, 1, 1], [0], [0]>} : vector<2x8x16xf32>, vector<2x8x16xf32>, vector<2x8x8xf32> -> vector<2x8x8xf32>
    "tpu.trace_stop"() : () -> ()
    %cst_274 = arith.constant dense<0xFF800000> : vector<2x8xf32>
    %323 = vector.multi_reduction <maximumf>, %322, %cst_274 [2] : vector<2x8x8xf32> to vector<2x8xf32>
    %324 = vector.shape_cast %323 : vector<2x8xf32> to vector<2x8x1xf32>
    %325 = vector.broadcast %324 : vector<2x8x1xf32> to vector<2x8x8xf32>
    %326 = arith.subf %322, %325 : vector<2x8x8xf32>
    %327 = math.exp %326 : vector<2x8x8xf32>
    %cst_275 = arith.constant dense<0.000000e+00> : vector<2x8xf32>
    %328 = vector.multi_reduction <add>, %327, %cst_275 [2] : vector<2x8x8xf32> to vector<2x8xf32>
    %329 = vector.shape_cast %328 : vector<2x8xf32> to vector<2x8x1xf32>
    %330 = tpu.reciprocal %329 {approx = true} : vector<2x8x1xf32> -> vector<2x8x1xf32>
    %331 = vector.broadcast %330 : vector<2x8x1xf32> to vector<2x8x8xf32>
    %332 = arith.mulf %327, %331 : vector<2x8x8xf32>
    "tpu.trace_start"() <{level = 10 : i32, message = "bqk,bkd->bqd"}> : () -> ()
    %cst_276 = arith.constant dense<0.000000e+00> : vector<2x8x16xf32>
    %333 = tpu.matmul %332, %321, %cst_276 {dimension_numbers = #tpu.dot_dimension_numbers<[2], [1], [1], [2], [0, 0, 0, 1, 1, 2], [0], [0]>} : vector<2x8x8xf32>, vector<2x8x16xf32>, vector<2x8x16xf32> -> vector<2x8x16xf32>
    "tpu.trace_stop"() : () -> ()
    %334 = vector.shape_cast %333 : vector<2x8x16xf32> to vector<16x16xf32>
    %335 = arith.truncf %334 : vector<16x16xf32> to vector<16x16xbf16>
    %c0_277 = arith.constant 0 : index
    %c7_278 = arith.constant 7 : index
    %c0_279 = arith.constant 0 : index
    %c0_280 = arith.constant 0 : index
    %336 = vector.load %arg9[%c0_277, %c7_278, %c0_279, %c0_280] : memref<1x8x16x128xbf16, #tpu.memory_space<vmem>>, vector<1x1x16x128xbf16>
    %337 = vector.shape_cast %336 : vector<1x1x16x128xbf16> to vector<16x128xbf16>
    %cst_281 = arith.constant dense<0.000000e+00> : vector<16x128xf32>
    %338 = tpu.matmul %335, %337, %cst_281 {dimension_numbers = #tpu.dot_dimension_numbers<[1], [0], [0], [1], [0, 0, 1, 1], [], []>} : vector<16x16xbf16>, vector<16x128xbf16>, vector<16x128xf32> -> vector<16x128xf32>
    %339 = arith.addf %297, %338 : vector<16x128xf32>
    %c0_282 = arith.constant 0 : index
    %c0_283 = arith.constant 0 : index
    %c0_284 = arith.constant 0 : index
    %340 = vector.load %arg10[%c0_282, %c0_283, %c0_284] : memref<1x1x128xf32, #tpu.memory_space<vmem>>, vector<1x1x128xf32>
    %341 = vector.shape_cast %340 : vector<1x1x128xf32> to vector<1x128xf32>
    %342 = vector.broadcast %341 : vector<1x128xf32> to vector<16x128xf32>
    %343 = arith.addf %339, %342 : vector<16x128xf32>
    %344 = arith.addf %3, %343 : vector<16x128xf32>
    %c0_285 = arith.constant 0 : index
    %c0_286 = arith.constant 0 : index
    %c0_287 = arith.constant 0 : index
    %345 = vector.load %arg11[%c0_285, %c0_286, %c0_287] : memref<1x1x128xf32, #tpu.memory_space<vmem>>, vector<1x1x128xf32>
    %346 = vector.shape_cast %345 : vector<1x1x128xf32> to vector<1x128xf32>
    %c0_288 = arith.constant 0 : index
    %c0_289 = arith.constant 0 : index
    %c0_290 = arith.constant 0 : index
    %347 = vector.load %arg12[%c0_288, %c0_289, %c0_290] : memref<1x1x128xf32, #tpu.memory_space<vmem>>, vector<1x1x128xf32>
    %348 = vector.shape_cast %347 : vector<1x1x128xf32> to vector<1x128xf32>
    %cst_291 = arith.constant dense<0.000000e+00> : vector<16xf32>
    %349 = vector.multi_reduction <add>, %344, %cst_291 [1] : vector<16x128xf32> to vector<16xf32>
    %350 = vector.shape_cast %349 : vector<16xf32> to vector<16x1xf32>
    %cst_292 = arith.constant 1.280000e+02 : f32
    %351 = vector.broadcast %cst_292 : f32 to vector<16x1xf32>
    %352 = arith.divf %350, %351 : vector<16x1xf32>
    %353 = vector.broadcast %352 : vector<16x1xf32> to vector<16x128xf32>
    %354 = arith.subf %344, %353 : vector<16x128xf32>
    %355 = arith.mulf %354, %354 : vector<16x128xf32>
    %cst_293 = arith.constant dense<0.000000e+00> : vector<16xf32>
    %356 = vector.multi_reduction <add>, %355, %cst_293 [1] : vector<16x128xf32> to vector<16xf32>
    %357 = vector.shape_cast %356 : vector<16xf32> to vector<16x1xf32>
    %cst_294 = arith.constant 1.280000e+02 : f32
    %358 = vector.broadcast %cst_294 : f32 to vector<16x1xf32>
    %359 = arith.divf %357, %358 : vector<16x1xf32>
    %360 = vector.broadcast %352 : vector<16x1xf32> to vector<16x128xf32>
    %361 = arith.subf %344, %360 : vector<16x128xf32>
    %cst_295 = arith.constant 9.99999974E-6 : f32
    %362 = vector.broadcast %cst_295 : f32 to vector<16x1xf32>
    %363 = arith.addf %359, %362 : vector<16x1xf32>
    %364 = math.rsqrt %363 : vector<16x1xf32>
    %365 = vector.broadcast %364 : vector<16x1xf32> to vector<16x128xf32>
    %366 = arith.mulf %361, %365 : vector<16x128xf32>
    %367 = vector.broadcast %346 : vector<1x128xf32> to vector<16x128xf32>
    %368 = arith.mulf %366, %367 : vector<16x128xf32>
    %369 = vector.broadcast %348 : vector<1x128xf32> to vector<16x128xf32>
    %370 = arith.addf %368, %369 : vector<16x128xf32>
    %371 = arith.truncf %370 : vector<16x128xf32> to vector<16x128xbf16>
    %c0_296 = arith.constant 0 : index
    %c0_297 = arith.constant 0 : index
    %c0_298 = arith.constant 0 : index
    %372 = vector.load %arg13[%c0_296, %c0_297, %c0_298] : memref<1x128x2048xbf16, #tpu.memory_space<vmem>>, vector<1x128x2048xbf16>
    %373 = vector.shape_cast %372 : vector<1x128x2048xbf16> to vector<128x2048xbf16>
    %cst_299 = arith.constant dense<0.000000e+00> : vector<16x2048xf32>
    %374 = tpu.matmul %371, %373, %cst_299 {dimension_numbers = #tpu.dot_dimension_numbers<[1], [0], [0], [1], [0, 0, 1, 1], [], []>} : vector<16x128xbf16>, vector<128x2048xbf16>, vector<16x2048xf32> -> vector<16x2048xf32>
    %c0_300 = arith.constant 0 : index
    %c0_301 = arith.constant 0 : index
    %c0_302 = arith.constant 0 : index
    %375 = vector.load %arg14[%c0_300, %c0_301, %c0_302] : memref<1x1x2048xf32, #tpu.memory_space<vmem>>, vector<1x1x2048xf32>
    %376 = vector.shape_cast %375 : vector<1x1x2048xf32> to vector<1x2048xf32>
    %377 = vector.broadcast %376 : vector<1x2048xf32> to vector<16x2048xf32>
    %378 = arith.addf %374, %377 : vector<16x2048xf32>
    %cst_303 = arith.constant 0.000000e+00 : f32
    %379 = vector.broadcast %cst_303 : f32 to vector<16x2048xf32>
    %380 = arith.maximumf %378, %379 : vector<16x2048xf32>
    %381 = arith.truncf %380 : vector<16x2048xf32> to vector<16x2048xbf16>
    %c0_304 = arith.constant 0 : index
    %c0_305 = arith.constant 0 : index
    %c0_306 = arith.constant 0 : index
    %382 = vector.load %arg15[%c0_304, %c0_305, %c0_306] : memref<1x2048x128xbf16, #tpu.memory_space<vmem>>, vector<1x2048x128xbf16>
    %383 = vector.shape_cast %382 : vector<1x2048x128xbf16> to vector<2048x128xbf16>
    %cst_307 = arith.constant dense<0.000000e+00> : vector<16x128xf32>
    %384 = tpu.matmul %381, %383, %cst_307 {dimension_numbers = #tpu.dot_dimension_numbers<[1], [0], [0], [1], [0, 0, 1, 1], [], []>} : vector<16x2048xbf16>, vector<2048x128xbf16>, vector<16x128xf32> -> vector<16x128xf32>
    %c0_308 = arith.constant 0 : index
    %c0_309 = arith.constant 0 : index
    %c0_310 = arith.constant 0 : index
    %385 = vector.load %arg16[%c0_308, %c0_309, %c0_310] : memref<1x1x128xf32, #tpu.memory_space<vmem>>, vector<1x1x128xf32>
    %386 = vector.shape_cast %385 : vector<1x1x128xf32> to vector<1x128xf32>
    %387 = vector.broadcast %386 : vector<1x128xf32> to vector<16x128xf32>
    %388 = arith.addf %384, %387 : vector<16x128xf32>
    %389 = arith.addf %370, %388 : vector<16x128xf32>
    %c0_311 = arith.constant 0 : index
    %c0_312 = arith.constant 0 : index
    %c0_313 = arith.constant 0 : index
    %390 = vector.load %arg17[%c0_311, %c0_312, %c0_313] : memref<1x1x128xf32, #tpu.memory_space<vmem>>, vector<1x1x128xf32>
    %391 = vector.shape_cast %390 : vector<1x1x128xf32> to vector<1x128xf32>
    %c0_314 = arith.constant 0 : index
    %c0_315 = arith.constant 0 : index
    %c0_316 = arith.constant 0 : index
    %392 = vector.load %arg18[%c0_314, %c0_315, %c0_316] : memref<1x1x128xf32, #tpu.memory_space<vmem>>, vector<1x1x128xf32>
    %393 = vector.shape_cast %392 : vector<1x1x128xf32> to vector<1x128xf32>
    %cst_317 = arith.constant dense<0.000000e+00> : vector<16xf32>
    %394 = vector.multi_reduction <add>, %389, %cst_317 [1] : vector<16x128xf32> to vector<16xf32>
    %395 = vector.shape_cast %394 : vector<16xf32> to vector<16x1xf32>
    %cst_318 = arith.constant 1.280000e+02 : f32
    %396 = vector.broadcast %cst_318 : f32 to vector<16x1xf32>
    %397 = arith.divf %395, %396 : vector<16x1xf32>
    %398 = vector.broadcast %397 : vector<16x1xf32> to vector<16x128xf32>
    %399 = arith.subf %389, %398 : vector<16x128xf32>
    %400 = arith.mulf %399, %399 : vector<16x128xf32>
    %cst_319 = arith.constant dense<0.000000e+00> : vector<16xf32>
    %401 = vector.multi_reduction <add>, %400, %cst_319 [1] : vector<16x128xf32> to vector<16xf32>
    %402 = vector.shape_cast %401 : vector<16xf32> to vector<16x1xf32>
    %cst_320 = arith.constant 1.280000e+02 : f32
    %403 = vector.broadcast %cst_320 : f32 to vector<16x1xf32>
    %404 = arith.divf %402, %403 : vector<16x1xf32>
    %405 = vector.broadcast %397 : vector<16x1xf32> to vector<16x128xf32>
    %406 = arith.subf %389, %405 : vector<16x128xf32>
    %cst_321 = arith.constant 9.99999974E-6 : f32
    %407 = vector.broadcast %cst_321 : f32 to vector<16x1xf32>
    %408 = arith.addf %404, %407 : vector<16x1xf32>
    %409 = math.rsqrt %408 : vector<16x1xf32>
    %410 = vector.broadcast %409 : vector<16x1xf32> to vector<16x128xf32>
    %411 = arith.mulf %406, %410 : vector<16x128xf32>
    %412 = vector.broadcast %391 : vector<1x128xf32> to vector<16x128xf32>
    %413 = arith.mulf %411, %412 : vector<16x128xf32>
    %414 = vector.broadcast %393 : vector<1x128xf32> to vector<16x128xf32>
    %415 = arith.addf %413, %414 : vector<16x128xf32>
    %c0_322 = arith.constant 0 : index
    %c0_323 = arith.constant 0 : index
    %416 = vector.load %arg22[%c0_322, %c0_323] : memref<16x128xf32, #tpu.memory_space<vmem>>, vector<16x128xf32>
    tpu.vector_store %arg22[%c0_322, %c0_323], %415 {strides = array<i32>} : memref<16x128xf32, #tpu.memory_space<vmem>>, vector<16x128xf32>,
    %c1_i32 = arith.constant 1 : i32
    %417 = arith.cmpi eq, %arg1, %c1_i32 : i32
    %418 = arith.extui %417 : i1 to i32
    %c0_i32_324 = arith.constant 0 : i32
    %419 = arith.cmpi ne, %418, %c0_i32_324 : i32
    scf.if %419 {
      %c0_325 = arith.constant 0 : index
      %c0_326 = arith.constant 0 : index
      %420 = tpu.strided_load %arg22[%c0_325, %c0_326] {strides = array<i32: 8, 1>} : memref<16x128xf32, #tpu.memory_space<vmem>>, vector<2x128xf32>
      %cst_327 = arith.constant dense<0.000000e+00> : vector<2xf32>
      %421 = vector.multi_reduction <add>, %420, %cst_327 [1] : vector<2x128xf32> to vector<2xf32>
      %422 = vector.shape_cast %421 : vector<2xf32> to vector<2x1xf32>
      %cst_328 = arith.constant 1.280000e+02 : f32
      %423 = vector.broadcast %cst_328 : f32 to vector<2x1xf32>
      %424 = arith.divf %422, %423 : vector<2x1xf32>
      %425 = vector.broadcast %424 : vector<2x1xf32> to vector<2x128xf32>
      %426 = arith.subf %420, %425 : vector<2x128xf32>
      %427 = arith.mulf %426, %426 : vector<2x128xf32>
      %cst_329 = arith.constant dense<0.000000e+00> : vector<2xf32>
      %428 = vector.multi_reduction <add>, %427, %cst_329 [1] : vector<2x128xf32> to vector<2xf32>
      %429 = vector.shape_cast %428 : vector<2xf32> to vector<2x1xf32>
      %cst_330 = arith.constant 1.280000e+02 : f32
      %430 = vector.broadcast %cst_330 : f32 to vector<2x1xf32>
      %431 = arith.divf %429, %430 : vector<2x1xf32>
      %432 = vector.broadcast %424 : vector<2x1xf32> to vector<2x128xf32>
      %433 = arith.subf %420, %432 : vector<2x128xf32>
      %cst_331 = arith.constant 9.99999974E-6 : f32
      %434 = vector.broadcast %cst_331 : f32 to vector<2x1xf32>
      %435 = arith.addf %431, %434 : vector<2x1xf32>
      %436 = math.rsqrt %435 : vector<2x1xf32>
      %437 = vector.broadcast %436 : vector<2x1xf32> to vector<2x128xf32>
      %438 = arith.mulf %433, %437 : vector<2x128xf32>
      %c0_332 = arith.constant 0 : index
      %c0_333 = arith.constant 0 : index
      %439 = vector.load %arg19[%c0_332, %c0_333] : memref<1x128xf32, #tpu.memory_space<vmem>>, vector<1x128xf32>
      %440 = vector.broadcast %439 : vector<1x128xf32> to vector<2x128xf32>
      %441 = arith.mulf %438, %440 : vector<2x128xf32>
      %c0_334 = arith.constant 0 : index
      %c0_335 = arith.constant 0 : index
      %442 = vector.load %arg20[%c0_334, %c0_335] : memref<1x128xf32, #tpu.memory_space<vmem>>, vector<1x128xf32>
      %443 = vector.broadcast %442 : vector<1x128xf32> to vector<2x128xf32>
      %444 = arith.addf %441, %443 : vector<2x128xf32>
      %445 = vector.shape_cast %444 : vector<2x128xf32> to vector<2x1x128xf32>
      %c0_336 = arith.constant 0 : index
      %c0_337 = arith.constant 0 : index
      %c0_338 = arith.constant 0 : index
      %446 = vector.load %arg21[%c0_336, %c0_337, %c0_338] : memref<2x1x128xf32, #tpu.memory_space<vmem>>, vector<2x1x128xf32>
      tpu.vector_store %arg21[%c0_336, %c0_337, %c0_338], %445 {strides = array<i32>} : memref<2x1x128xf32, #tpu.memory_space<vmem>>, vector<2x1x128xf32>,
    } else {
    }
    return
  }
  func.func @transform_0(%arg0: i32, %arg1: i32) -> (i32, i32, i32) {
    %c0_i32 = arith.constant 0 : i32
    %c0_i32_0 = arith.constant 0 : i32
    %c0_i32_1 = arith.constant 0 : i32
    return %arg0, %c0_i32, %c0_i32_0 : i32, i32, i32
  }
  func.func @transform_1(%arg0: i32, %arg1: i32) -> (i32, i32, i32, i32) {
    %c0_i32 = arith.constant 0 : i32
    %c0_i32_0 = arith.constant 0 : i32
    %c0_i32_1 = arith.constant 0 : i32
    %c0_i32_2 = arith.constant 0 : i32
    return %arg1, %c0_i32, %c0_i32_0, %c0_i32_1 : i32, i32, i32, i32
  }
  func.func @transform_2(%arg0: i32, %arg1: i32) -> (i32, i32, i32, i32) {
    %c0_i32 = arith.constant 0 : i32
    %c0_i32_0 = arith.constant 0 : i32
    %c0_i32_1 = arith.constant 0 : i32
    %c0_i32_2 = arith.constant 0 : i32
    return %arg1, %c0_i32, %c0_i32_0, %c0_i32_1 : i32, i32, i32, i32
  }
  func.func @transform_3(%arg0: i32, %arg1: i32) -> (i32, i32, i32, i32) {
    %c0_i32 = arith.constant 0 : i32
    %c0_i32_0 = arith.constant 0 : i32
    %c0_i32_1 = arith.constant 0 : i32
    %c0_i32_2 = arith.constant 0 : i32
    return %arg1, %c0_i32, %c0_i32_0, %c0_i32_1 : i32, i32, i32, i32
  }
  func.func @transform_4(%arg0: i32, %arg1: i32) -> (i32, i32, i32, i32) {
    %c0_i32 = arith.constant 0 : i32
    %c0_i32_0 = arith.constant 0 : i32
    %c0_i32_1 = arith.constant 0 : i32
    %c0_i32_2 = arith.constant 0 : i32
    return %arg1, %c0_i32, %c0_i32_0, %c0_i32_1 : i32, i32, i32, i32
  }
  func.func @transform_5(%arg0: i32, %arg1: i32) -> (i32, i32, i32, i32) {
    %c0_i32 = arith.constant 0 : i32
    %c0_i32_0 = arith.constant 0 : i32
    %c0_i32_1 = arith.constant 0 : i32
    %c0_i32_2 = arith.constant 0 : i32
    return %arg1, %c0_i32, %c0_i32_0, %c0_i32_1 : i32, i32, i32, i32
  }
  func.func @transform_6(%arg0: i32, %arg1: i32) -> (i32, i32, i32, i32) {
    %c0_i32 = arith.constant 0 : i32
    %c0_i32_0 = arith.constant 0 : i32
    %c0_i32_1 = arith.constant 0 : i32
    %c0_i32_2 = arith.constant 0 : i32
    return %arg1, %c0_i32, %c0_i32_0, %c0_i32_1 : i32, i32, i32, i32
  }
  func.func @transform_7(%arg0: i32, %arg1: i32) -> (i32, i32, i32, i32) {
    %c0_i32 = arith.constant 0 : i32
    %c0_i32_0 = arith.constant 0 : i32
    %c0_i32_1 = arith.constant 0 : i32
    %c0_i32_2 = arith.constant 0 : i32
    return %arg1, %c0_i32, %c0_i32_0, %c0_i32_1 : i32, i32, i32, i32
  }
  func.func @transform_8(%arg0: i32, %arg1: i32) -> (i32, i32, i32) {
    %c0_i32 = arith.constant 0 : i32
    %c0_i32_0 = arith.constant 0 : i32
    %c0_i32_1 = arith.constant 0 : i32
    return %arg1, %c0_i32, %c0_i32_0 : i32, i32, i32
  }
  func.func @transform_9(%arg0: i32, %arg1: i32) -> (i32, i32, i32) {
    %c0_i32 = arith.constant 0 : i32
    %c0_i32_0 = arith.constant 0 : i32
    %c0_i32_1 = arith.constant 0 : i32
    return %arg1, %c0_i32, %c0_i32_0 : i32, i32, i32
  }
  func.func @transform_10(%arg0: i32, %arg1: i32) -> (i32, i32, i32) {
    %c0_i32 = arith.constant 0 : i32
    %c0_i32_0 = arith.constant 0 : i32
    %c0_i32_1 = arith.constant 0 : i32
    return %arg1, %c0_i32, %c0_i32_0 : i32, i32, i32
  }
  func.func @transform_11(%arg0: i32, %arg1: i32) -> (i32, i32, i32) {
    %c0_i32 = arith.constant 0 : i32
    %c0_i32_0 = arith.constant 0 : i32
    %c0_i32_1 = arith.constant 0 : i32
    return %arg1, %c0_i32, %c0_i32_0 : i32, i32, i32
  }
  func.func @transform_12(%arg0: i32, %arg1: i32) -> (i32, i32, i32) {
    %c0_i32 = arith.constant 0 : i32
    %c0_i32_0 = arith.constant 0 : i32
    %c0_i32_1 = arith.constant 0 : i32
    return %arg1, %c0_i32, %c0_i32_0 : i32, i32, i32
  }
  func.func @transform_13(%arg0: i32, %arg1: i32) -> (i32, i32, i32) {
    %c0_i32 = arith.constant 0 : i32
    %c0_i32_0 = arith.constant 0 : i32
    %c0_i32_1 = arith.constant 0 : i32
    return %arg1, %c0_i32, %c0_i32_0 : i32, i32, i32
  }
  func.func @transform_14(%arg0: i32, %arg1: i32) -> (i32, i32, i32) {
    %c0_i32 = arith.constant 0 : i32
    %c0_i32_0 = arith.constant 0 : i32
    %c0_i32_1 = arith.constant 0 : i32
    return %arg1, %c0_i32, %c0_i32_0 : i32, i32, i32
  }
  func.func @transform_15(%arg0: i32, %arg1: i32) -> (i32, i32, i32) {
    %c0_i32 = arith.constant 0 : i32
    %c0_i32_0 = arith.constant 0 : i32
    %c0_i32_1 = arith.constant 0 : i32
    return %arg1, %c0_i32, %c0_i32_0 : i32, i32, i32
  }
  func.func @transform_16(%arg0: i32, %arg1: i32) -> (i32, i32, i32) {
    %c0_i32 = arith.constant 0 : i32
    %c0_i32_0 = arith.constant 0 : i32
    %c0_i32_1 = arith.constant 0 : i32
    return %arg1, %c0_i32, %c0_i32_0 : i32, i32, i32
  }
  func.func @transform_17(%arg0: i32, %arg1: i32) -> (i32, i32) {
    %c0_i32 = arith.constant 0 : i32
    %c0_i32_0 = arith.constant 0 : i32
    %c0_i32_1 = arith.constant 0 : i32
    return %c0_i32, %c0_i32_0 : i32, i32
  }
  func.func @transform_18(%arg0: i32, %arg1: i32) -> (i32, i32) {
    %c0_i32 = arith.constant 0 : i32
    %c0_i32_0 = arith.constant 0 : i32
    %c0_i32_1 = arith.constant 0 : i32
    return %c0_i32, %c0_i32_0 : i32, i32
  }
  func.func @transform_19(%arg0: i32, %arg1: i32) -> (i32, i32, i32) {
    %c0_i32 = arith.constant 0 : i32
    %c0_i32_0 = arith.constant 0 : i32
    %c0_i32_1 = arith.constant 0 : i32
    return %arg0, %c0_i32, %c0_i32_0 : i32, i32, i32
  }
}

</mosaic_0001>

<bundles_post_ra>
// kernel: tpu_custom_call.1
= control target key start
LH: loop header
LB: loop body
LE: loop exit
PB: predicated region body
PF: predicated region fallthrough
CT: control target
= control target key end

     0   :  { %s13838_s0 = inlined_call_operand.vmem [shape: f32[2,8,128], index: 0, kind: input, shape index: {}]   ;;  %s13839_s1 = inlined_call_operand.vmem [shape: bf16[2,8,128,16], index: 1, kind: input, shape index: {}]   ;;  %s13840_s2 = inlined_call_operand.vmem [shape: bf16[2,8,128,16], index: 2, kind: input, shape index: {}]   ;;  %s13841_s3 = inlined_call_operand.vmem [shape: bf16[2,8,128,16], index: 3, kind: input, shape index: {}]   ;;  %s13842_s4 = inlined_call_operand.vmem [shape: f32[2,8,1,16], index: 4, kind: input, shape index: {}]   ;;  %s13843_s5 = inlined_call_operand.vmem [shape: f32[2,8,1,16], index: 5, kind: input, shape index: {}]   ;;  %s13844_s6 = inlined_call_operand.vmem [shape: f32[2,8,1,16], index: 6, kind: input, shape index: {}]   ;;  %s13845_s7 = inlined_call_operand.vmem [shape: bf16[2,8,16,128], index: 7, kind: input, shape index: {}]   ;;  %s13846_s8 = inlined_call_operand.vmem [shape: f32[2,1,128], index: 8, kind: input, shape index: {}]   ;;  %s13847_s9 = inlined_call_operand.vmem [shape: f32[2,1,128], index: 9, kind: input, shape index: {}]   ;;  %s13848_s10 = inlined_call_operand.vmem [shape: f32[2,1,128], index: 10, kind: input, shape index: {}]   ;;  %s13849_s11 = inlined_call_operand.vmem [shape: bf16[2,128,2048], index: 11, kind: input, shape index: {}]   ;;  %s13850_s12 = inlined_call_operand.vmem [shape: f32[2,1,2048], index: 12, kind: input, shape index: {}]   ;;  %s13851_s13 = inlined_call_operand.hbm [shape: bf16[2,2048,128], index: 13, kind: input, shape index: {}]   ;;  %s13852_s14 = inlined_call_operand.vmem [shape: f32[2,1,128], index: 14, kind: input, shape index: {}]   ;;  %s13853_s15 = inlined_call_operand.vmem [shape: f32[2,1,128], index: 15, kind: input, shape index: {}]   ;;  %s13854_s16 = inlined_call_operand.vmem [shape: f32[2,1,128], index: 16, kind: input, shape index: {}]   ;;  %s13855_s17 = inlined_call_operand.vmem [shape: f32[1,128], index: 17, kind: input, shape index: {}]   ;;  %s13856_s18 = inlined_call_operand.vmem [shape: f32[1,128], index: 18, kind: input, shape index: {}]   ;;  %s13857_s19 = inlined_call_operand.hbm [shape: f32[2,1,128], index: 19, kind: output, shape index: {}]  }
   0x1   :  { %13869 = sst [smem:[#allocation18_spill]] %s13838_s0 }
   0x2   :  { %13870 = sst [smem:[#allocation19_spill]] %s13839_s1 }
   0x3   :  { %13871 = sst [smem:[#allocation20_spill]] %s13840_s2 }
   0x4   :  { %13872 = sst [smem:[#allocation21_spill]] %s13841_s3 }
   0x5   :  { %13873 = sst [smem:[#allocation22_spill]] %s13842_s4 }
   0x6   :  { %13874 = sst [smem:[#allocation23_spill]] %s13843_s5 }
   0x7   :  { %13875 = sst [smem:[#allocation24_spill]] %s13844_s6 }
   0x8   :  { %13876 = sst [smem:[#allocation25_spill]] %s13845_s7 }
   0x9   :  { %13877 = sst [smem:[#allocation26_spill]] %s13849_s11 }
   0xa   :  { %13878 = sst [smem:[#allocation27_spill]] %s13851_s13 }
   0xb   :  { %13879 = sst [smem:[#allocation28_spill]] %s13854_s16 }
   0xc   :  { %13880 = sst [smem:[#allocation29_spill]] %s13855_s17 }
   0xd   :  { %13881 = sst [smem:[#allocation30_spill]] %s13856_s18 }
   0xe   :  { %13882 = sst [smem:[#allocation31_spill]] %s13857_s19 }
   0xf   :  { %24 = vsyncpa [#allocation4], 0 }
  0x10   :  { %26 = vsyncpa [#allocation4 + $0x1], 0 }
  0x11   :  { %27 = vsyncpa [#allocation5], 0  ;;  %s12468_s0 = smov 0   ;;  %s12470_s30 = smov 0  }
  0x12   :  { %s12472_s20 = smov 0   ;;  %s12474_s21 = smov 0  }
  0x13   :  { %s12476_s1 = smov 0   ;;  %s12478_s22 = smov 0  }
  0x14 LB: > { %13883 = sst [smem:[#allocation9_spill]] %s12340_s30  ;;  %s13860_s2 = sadd.s32 4294967295, %s12356_s22   ;;  %s12356_s22 = sphi %s12478_s22, %s33_s22   ;;  %s12352_s1 = sphi %s12476_s1, %s13925_s1   ;;  %s12348_s21 = sphi %s12474_s21, %s13924_s21   ;;  %s12344_s20 = sphi %s12472_s20, %s13923_s20   ;;  %s12340_s30 = sphi %s12470_s30, %s13922_s30   ;;  %s12336_s0 = sphi %s12468_s0, %s13921_s0  }
  0x15   : > { %13884 = sst [smem:[#allocation10_spill]] %s12344_s20  ;;  %s42_s23 = sadd.s32 1, %s12352_s1 }
  0x16   : > { %13885 = sst [smem:[#allocation11_spill]] %s12352_s1  ;;  %p43_p0 = scmp.ge.s32.totalorder %s42_s23, 2 }
  0x17   : > { %13886 = sst [smem:[#allocation12_spill]] %s12356_s22  ;;  %s390_s24 = sadd.s32 1, %s12344_s20 }
  0x18   : > { %p397_p1 = scmp.ne.s32.totalorder %s12344_s20, %s12340_s30  ;;  %p398_p2 = scmp.eq.s32.totalorder %s12356_s22, 0 }
  0x19   : > { %s13927_s23 = smov (%p43_p0, %s42_s23), 0  ;;  %p403_p4 = scmp.ne.s32.totalorder %s12340_s30, %s12336_s0 }
  0x1a   : > { %13887 = sst [smem:[#allocation13_spill]] %s13927_s23  ;;  %p12504_p3 = por %p398_p2, %p397_p1 }
  0x1b   : > { %s387_s3 = ssub.s32 %s12352_s1, %s13927_s23  ;;  %p404_p5 = scmp.eq.s32.totalorder %s13860_s2, 0 }
  0x1c   : > { %p388_p6 = scmp.eq.s32.totalorder %s387_s3, 0  ;;  %p11782_p8 = scmp.lt.s32.totalorder %s12356_s22, 2 }
  0x1d   : > { %p12513_p7 = por %p404_p5, %p403_p4  ;;  %s674_s28 = sand.u32 1, %s12344_s20  }
  0x1e   : > { %s12519_s27 = scalar_select %p388_p6, %s12344_s20, %s390_s24  }
  0x1f   : > { %s10606_s29 = sshll.u32 %s12352_s1, 14  ;;  %s9664_s19 = sshll.u32 %s674_s28, 10 }
  0x20   : > { %13890 = sst [smem:[#allocation14_spill]] %s12519_s27  ;;  %s13891_s13 = sld [smem:[#allocation27_spill]] }
  0x21   : > { %s678_s0 = scalar_lea.vmem [#allocation3], %s9664_s19  ;;  %p12530_p9 = pnand %p11782_p8, %p12504_p3 }
  0x22   : > { %s685_s3 = sshll.u32 %s678_s0, 4  ;;  %s12536_s24 = scalar_lea.sflag [#allocation4], %s674_s28  ;;  %s12534_s3 = int_to_ptr.vmem [resolvable:$true] %s685_s3 }
  0x23   : > { %p12248_p11 = pneg %p12530_p9 }
  0x26   : > { %s12526_s16 = scalar_lea.hbm %s13891_s13, %s10606_s29  ;;  %s12251_s25 = scalar_lea.hbm %s13891_s13, 32768 }
  0x27   : > { %s12246_s17 = scalar_lea.hbm %s12526_s16, 16384  ;;  %p12252_p0 = scmp.lt.u32.totalorder %s12526_s16, %s13891_s13 }
  0x28   : > { %p12247_p10 = scmp.ne.s32.totalorder %s12526_s16, %s12246_s17  ;;  %p12253_p1 = scmp.lt.u32.totalorder %s12251_s25, %s12246_s17 }
  0x29   : > { %p12255_p3 = scmp.lt.u32.totalorder %s12246_s17, %s12526_s16 }
  0x2a   : > { %p12249_p12 = pnand %p12248_p11, %p12247_p10  ;;  %p12254_p2 = por %p12253_p1, %p12252_p0 }
  0x2c   : > { %p12250_p13 = pneg %p12249_p12  ;;  %p12256_p4 = por %p12255_p3, %p12254_p2 }
  0x2e   : > { %p12257_p5 = pnand %p12256_p4, %p12250_p13 }
  0x30   : > { %12260 = shalt.err (!%p12257_p5)
}
  0x31   : > { %s12261_s28 = scalar_lea.vmem %s12534_s3, 16384  ;;  %s12358_s18 = smov [#allocation3]  }
  0x32   : > { %p12262_p6 = scmp.ne.s32.totalorder %s12534_s3, %s12261_s28  ;;  %s12266_s19 = sshll.u32 %s12358_s18, 4  ;;  %s12267_s19 = int_to_ptr.vmem [resolvable:$false] %s12266_s19 }
  0x33   : > { %s12268_s29 = scalar_lea.vmem %s12267_s19, 32768  ;;  %p12269_p12 = scmp.lt.s32.totalorder %s12534_s3, %s12267_s19 }
  0x34   : > { %p12264_p8 = pnand %p12262_p6, %p12248_p11  ;;  %p12270_p0 = scmp.lt.s32.totalorder %s12268_s29, %s12261_s28 }
  0x36   : > { %p12265_p10 = pneg %p12264_p8  ;;  %p12271_p1 = por %p12270_p0, %p12269_p12 }
  0x38   : > { %p12272_p2 = pnand %p12271_p1, %p12265_p10 }
  0x3a   : > { %12275 = shalt.err (!%p12272_p2)
}
  0x3b   : > { %s12359_s17 = smov 64   ;;  %s12360_s25 = smov 4  }
  0x3c   : > { %11781 = dma.hbm_to_vmem [thread:$0]  (!%p12530_p9), %s12526_s16, 16384, %s12534_s3, %s12536_s24, %s12359_s17, %s12359_s17, %s12360_s25  }
  0x3d   : > { %p9667_p11 = scmp.ge.s32.totalorder %s12356_s22, 1  ;;  %p711_p13 = scmp.lt.s32.totalorder %s12356_s22, 3 }
  0x3f   : > { %p712_p3 = pnand %p9667_p11, %p711_p13 }
  0x41   : > { %715 = sbr.rel (%p712_p3) target bundleno = 9559 (0x2557), region = 96 }
  0x48   : > { %s717_s0 = sand.u32 1, %s12340_s30  }
  0x49   : > { %s9668_s28 = sshll.u32 %s717_s0, 10  ;;  %s718_s18 = scalar_lea.sflag [#allocation4], %s717_s0 }
  0x4a   : > { %s12567_s19 = scalar_lea.vmem [#allocation3], %s9668_s28 }
  0x4b   : > { %13893 = sst [smem:[#allocation15_spill]] %s12567_s19 }
  0x4c   : > { %12327 = dma.done.wait (%p12513_p7), %s718_s18, 16384  }
  0x4d   : > { %12329 = vsyncadd (%p12513_p7), %s718_s18, 4294950912  ;;  %p841_p4 = scmp.lt.s32.totalorder %s12348_s21, 1  ;;  %s13894_s17 = sld [smem:[#allocation19_spill]] }
  0x4e   : > { %s13895_s28 = sld [smem:[#allocation20_spill]]  ;;  %s13896_s1 = sld [smem:[#allocation21_spill]] }
  0x4f   : > { %s12575_s16 = scalar_select %p841_p4, %s12348_s21, 1 }
  0x50   : > { %s13898_s4 = sld [smem:[#allocation22_spill]]  ;;  %s13899_s5 = sld [smem:[#allocation23_spill]] }
  0x51   : > { %s10607_s2 = sshll.u32 %s12575_s16, 9  ;;  %s9675_s3 = sshll.u32 %s12575_s16, 3 }
  0x52   : > { %s13900_s6 = sld [smem:[#allocation24_spill]]  ;;  %s10610_s19 = sshll.u32 %s12575_s16, 6 }
  0x53   : > { %s12582_s26 = scalar_lea.vmem %s13894_s17, %s10607_s2  ;;  %s13902_s7 = sld [smem:[#allocation25_spill]] }
  0x54   : > { %s12587_s18 = scalar_lea.vmem %s13895_s28, %s10607_s2  ;;  %s12592_s27 = scalar_lea.vmem %s13896_s1, %s10607_s2 }
  0x55   : > { %13897 = sst [smem:[#allocation16_spill]] %s12592_s27  ;;  %s13903_s11 = sld [smem:[#allocation26_spill]] }
  0x56   : > { %s12597_s22 = scalar_lea.vmem %s13898_s4, %s9675_s3  ;;  %s12602_s17 = scalar_lea.vmem %s13899_s5, %s9675_s3 }
  0x57   : > { %s9682_s13 = sshll.u32 %s12575_s16, 4  ;;  %s893_s4 = scalar_lea.vmem %s13852_s14, %s12575_s16 }
  0x58   : > { %s12607_s28 = scalar_lea.vmem %s13900_s6, %s9675_s3  ;;  %s10611_s3 = sshll.u32 %s12575_s16, 10 }
  0x59   : > { %13901 = sst [smem:[#allocation17_spill]] %s12607_s28  ;;  %s12617_s30 = scalar_lea.vmem %s13902_s7, %s10610_s19 }
  0x5a   : > { %s12637_s27 = scalar_lea.vmem %s13850_s12, %s9682_s13  ;;  %s896_s5 = scalar_lea.vmem %s13853_s15, %s12575_s16 }
  0x5b   : > { %s12631_s28 = scalar_lea.vmem %s13903_s11, %s10611_s3  ;;  %s13904_s7 = sld [smem:[#allocation28_spill]] }
  0x5c   : > { %p9683_p7 = scmp.ne.s32.totalorder %s12348_s21, 0 }
  0x5d   : > { %s13905_s1 = sld [smem:[#allocation18_spill]] (!%p9683_p7) }
  0x5e   : > { %905 = sbr.rel (%p9683_p7) target bundleno = 102 (0x66), region = 104 }
  0x61   : > { %s899_s6 = scalar_lea.vmem %s13904_s7, %s12575_s16 }
  0x63   : > { %s13906_s23 = smov (!%p9683_p7), %s13905_s1  ;;  %v906_v0 = vld [vmem:[%s13905_s1] sm:$0xff] (!%p9683_p7) }
  0x64   : > { %v907_v1 = vld [vmem:[%s13906_s23 + $0x8] sm:$0xff] (!%p9683_p7)  ;;  %908 = vst [vmem:[#allocation2] sm:$0xff] (!%p9683_p7), %v906_v0 }
  0x65   : > { %909 = vst [vmem:[#allocation2 + $0x8] sm:$0xff] %v907_v1 }
  0x66 PF: > { %v11842_v2 = vld [vmem:[%s12587_s18] sm:$0xff]   ;;  %v12361_v3 = vmov 0.0   ;;  %v11844_v5 = vld [vmem:[%s12587_s18 + $0x8] sm:$0xff]   ;;  %vm12362_vm0 = vmmov 0   ;;  %v11846_v7 = vld [vmem:[%s12587_s18 + $0x10] sm:$0xff]   ;;  %vm1249_vm1 = vcmask 130048   ;;  %s13910_s24 = scalar_lea.vmem %s13847_s9, %s12575_s16  ;;  %s13911_s2 = scalar_lea.vmem %s13848_s10, %s12575_s16 }
  0x67   : > { %11104 = vmatprep.subr.bf16.mxu1 %v12361_v3  ;;  %11084 = vmatprep.subr.bf16.mxu0 %v12361_v3  ;;  %v11843_v4 = vld [vmem:[%s12582_s26] sm:$0xff]   ;;  %v11845_v6 = vld [vmem:[%s12582_s26 + $0x8] sm:$0xff]   ;;  %v11847_v8 = vld [vmem:[%s12582_s26 + $0x10] sm:$0xff]   ;;  %s13907_s7 = sld [smem:[#allocation16_spill]]  ;;  %vm1402_vm2 = vcmask 64512   ;;  %s13908_s11 = sld [smem:[#allocation17_spill]] }
  0x68   : > { %11105 = vmatpush3.bf16.msra.mxu1 %v11842_v2  ;;  %11120 = vmatprep.mubr.msk.bf16.mxu1 %vm12362_vm0, %v12361_v3  ;;  %v11848_v9 = vld [vmem:[%s12587_s18 + $0x18] sm:$0xff]   ;;  %v11850_v11 = vld [vmem:[%s12587_s18 + $0x20] sm:$0xff]   ;;  %v11852_v13 = vld [vmem:[%s12587_s18 + $0x28] sm:$0xff]   ;;  %s13912_s20 = sld [smem:[#allocation15_spill]]  ;;  %p10597_p9 = scmp.ne.s32.totalorder %s12348_s21, 1 }
  0x69   : > { %11085 = vmatpush3.bf16.msra.mxu0 %v11843_v4  ;;  %11106 = vmatprep.subr.bf16.mxu1 %v12361_v3  ;;  %v11849_v10 = vld [vmem:[%s12582_s26 + $0x18] sm:$0xff]   ;;  %v11851_v12 = vld [vmem:[%s12582_s26 + $0x20] sm:$0xff]   ;;  %v11853_v14 = vld [vmem:[%s12582_s26 + $0x28] sm:$0xff]   ;;  %vm9353_vm3 = vcmask (!%p10597_p9), 1041408  }
  0x6a   : > { %11086 = vmatprep.subr.bf16.mxu0 %v12361_v3  ;;  %11100 = vmatprep.mubr.msk.bf16.mxu0 %vm12362_vm0, %v12361_v3  ;;  %v11854_v15 = vld [vmem:[%s12587_s18 + $0x30] sm:$0xff]   ;;  %v11856_v17 = vld [vmem:[%s12587_s18 + $0x38] sm:$0xff]   ;;  %v9693_v22 = vld [vmem:[%s12602_s17] ss:$0 sm:$0xff] }
  0x6b   : > { %v11855_v16 = vld [vmem:[%s12582_s26 + $0x30] sm:$0xff]   ;;  %v11857_v20 = vld [vmem:[%s12582_s26 + $0x38] sm:$0xff]   ;;  %v9684_v23 = vld [vmem:[%s12597_s22] ss:$0 sm:$0xff] }
  0x6c   : > { %11107 = vmatpush3.bf16.msra.mxu1 %v11844_v5  ;;  %v910_v18 = vld [vmem:[#allocation2] sm:$0xff]  ;;  %v911_v19 = vld [vmem:[#allocation2 + $0x8] sm:$0xff] }
  0x6d   : > { %11087 = vmatpush3.bf16.msra.mxu0 %v11845_v6  ;;  %11108 = vmatprep.subr.bf16.mxu1 %v12361_v3  ;;  %v12694_v21 = vpack.c.bf16 %v911_v19, %v910_v18  ;;  %v11858_v36 = vld [vmem:[%s13907_s7] sm:$0xff]   ;;  %v11859_v37 = vld [vmem:[%s13907_s7 + $0x8] sm:$0xff]   ;;  %v11860_v38 = vld [vmem:[%s13907_s7 + $0x10] sm:$0xff]  }
  0x6e   : > { %11088 = vmatprep.subr.bf16.mxu0 %v12361_v3  ;;  %v11861_v39 = vld [vmem:[%s13907_s7 + $0x18] sm:$0xff]   ;;  %v11862_v40 = vld [vmem:[%s13907_s7 + $0x20] sm:$0xff]   ;;  %v11863_v41 = vld [vmem:[%s13907_s7 + $0x28] sm:$0xff]  }
  0x6f   : > { %v11864_v42 = vld [vmem:[%s13907_s7 + $0x30] sm:$0xff]   ;;  %v11865_v43 = vld [vmem:[%s13907_s7 + $0x38] sm:$0xff]   ;;  %v9702_v62 = vld [vmem:[%s13908_s11] ss:$0 sm:$0xff] }
  0x70   : > { %11109 = vmatpush3.bf16.msra.mxu1 %v11846_v7  ;;  %v11866_v2 = vld [vmem:[%s12587_s18 + $0x40] sm:$0xff]   ;;  %v11867_v5 = vld [vmem:[%s12587_s18 + $0x48] sm:$0xff]   ;;  %v11869_v6 = vld [vmem:[%s12587_s18 + $0x50] sm:$0xff]  }
  0x71   : > { %11089 = vmatpush3.bf16.msra.mxu0 %v11847_v8  ;;  %11110 = vmatprep.subr.bf16.mxu1 %v12361_v3  ;;  %v11871_v7 = vld [vmem:[%s12587_s18 + $0x58] sm:$0xff]   ;;  %v11873_v8 = vld [vmem:[%s12587_s18 + $0x60] sm:$0xff]   ;;  %v11870_v19 = vld [vmem:[%s12582_s26 + $0x48] sm:$0xff]  }
  0x72   : > { %11090 = vmatprep.subr.bf16.mxu0 %v12361_v3 }
  0x74   : > { %11111 = vmatpush3.bf16.msra.mxu1 %v11848_v9  ;;  %v11875_v9 = vld [vmem:[%s12587_s18 + $0x68] sm:$0xff]  }
  0x75   : > { %11091 = vmatpush3.bf16.msra.mxu0 %v11849_v10  ;;  %11112 = vmatprep.subr.bf16.mxu1 %v12361_v3  ;;  %v11877_v10 = vld [vmem:[%s12587_s18 + $0x70] sm:$0xff]  }
  0x76   : > { %11092 = vmatprep.subr.bf16.mxu0 %v12361_v3 }
  0x78   : > { %11113 = vmatpush3.bf16.msra.mxu1 %v11850_v11  ;;  %v11879_v11 = vld [vmem:[%s12587_s18 + $0x78] sm:$0xff]  }
  0x79   : > { %11093 = vmatpush3.bf16.msra.mxu0 %v11851_v12  ;;  %11114 = vmatprep.subr.bf16.mxu1 %v12361_v3 }
  0x7a   : > { %11094 = vmatprep.subr.bf16.mxu0 %v12361_v3 }
  0x7c   : > { %11115 = vmatpush3.bf16.msra.mxu1 %v11852_v13 }
  0x7d   : > { %11095 = vmatpush3.bf16.msra.mxu0 %v11853_v14  ;;  %11116 = vmatprep.subr.bf16.mxu1 %v12361_v3 }
  0x7e   : > { %11096 = vmatprep.subr.bf16.mxu0 %v12361_v3 }
  0x80   : > { %11117 = vmatpush3.bf16.msra.mxu1 %v11854_v15 }
  0x81   : > { %11097 = vmatpush3.bf16.msra.mxu0 %v11855_v16  ;;  %11118 = vmatprep.subr.bf16.mxu1 %v12361_v3 }
  0x82   : > { %11098 = vmatprep.subr.bf16.mxu0 %v12361_v3 }
  0x84   : > { %11119 = vmatpush3.bf16.msra.mxu1 %v11856_v17  ;;  %v11868_v17 = vld [vmem:[%s12582_s26 + $0x40] sm:$0xff]  }
  0x85   : > { %11099 = vmatpush3.bf16.msra.mxu0 %v11857_v20  ;;  %11144 = vmatprep.subr.mxu1 %v12361_v3  ;;  %v11872_v20 = vld [vmem:[%s12582_s26 + $0x50] sm:$0xff]  }
  0x86   : > { %11124 = vmatprep.subr.bf16.mxu0 %v12361_v3 }
  0x87   : > { %11121 = vmatmul.mubr.bf16.vlgmr.msra.gmra.mrb[0].mxu1 %v12694_v21 }
  0x88   : > { %11101 = vmatmul.mubr.bf16.vlgmr.msra.gmra.mrb[0].mxu0 %v12694_v21  ;;  %11146 = vmatprep.mubr.msk.f32.mxu1 %vm12362_vm0, %v12361_v3 }
  0x89   : > { %11140 = vmatprep.mubr.msk.bf16.mxu0 %vm12362_vm0, %v12361_v3  ;;  %11125 = vmatpush3.bf16.msra.mxu0 %v11858_v36  ;;  %v9760_v36 = vld [vmem:[%s12602_s17 + $0x1] ss:$0 sm:$0xff] }
  0x8a   : > { %11126 = vmatprep.subr.bf16.mxu0 %v12361_v3 }
  0x8d   : > { %11127 = vmatpush3.bf16.msra.mxu0 %v11859_v37 }
  0x8e   : > { %11128 = vmatprep.subr.bf16.mxu0 %v12361_v3 }
  0x91   : > { %11129 = vmatpush3.bf16.msra.mxu0 %v11860_v38 }
  0x92   : > { %11130 = vmatprep.subr.bf16.mxu0 %v12361_v3 }
  0x95   : > { %11131 = vmatpush3.bf16.msra.mxu0 %v11861_v39 }
  0x96   : > { %11132 = vmatprep.subr.bf16.mxu0 %v12361_v3 }
  0x99   : > { %11133 = vmatpush3.bf16.msra.mxu0 %v11862_v40 }
  0x9a   : > { %11134 = vmatprep.subr.bf16.mxu0 %v12361_v3 }
  0x9d   : > { %11135 = vmatpush3.bf16.msra.mxu0 %v11863_v41 }
  0x9e   : > { %11136 = vmatprep.subr.bf16.mxu0 %v12361_v3 }
  0xa1   : > { %11137 = vmatpush3.bf16.msra.mxu0 %v11864_v42 }
  0xa2   : > { %11138 = vmatprep.subr.bf16.mxu0 %v12361_v3 }
  0xa5   : > { %11139 = vmatpush3.bf16.msra.mxu0 %v11865_v43 }
  0xa6   : > { %11184 = vmatprep.subr.bf16.mxu0 %v12361_v3 }
  0xa8   : > { %11141 = vmatmul.mubr.bf16.vlgmr.msra.gmra.mrb[4].mxu0 %v12694_v21 }
  0xa9   : > { %11200 = vmatprep.mubr.msk.bf16.mxu0 %vm12362_vm0, %v12361_v3  ;;  %11185 = vmatpush3.bf16.msra.mxu0 %v11866_v2 }
  0xaa   : > { %11186 = vmatprep.subr.bf16.mxu0 %v12361_v3 }
  0xad   : > { %11187 = vmatpush3.bf16.msra.mxu0 %v11867_v5 }
  0xae   : > { %11188 = vmatprep.subr.bf16.mxu0 %v12361_v3 }
  0xb1   : > { %11189 = vmatpush3.bf16.msra.mxu0 %v11869_v6 }
  0xb2   : > { %11190 = vmatprep.subr.bf16.mxu0 %v12361_v3 }
  0xb5   : > { %11191 = vmatpush3.bf16.msra.mxu0 %v11871_v7 }
  0xb6   : > { %11192 = vmatprep.subr.bf16.mxu0 %v12361_v3 }
  0xb9   : > { %11193 = vmatpush3.bf16.msra.mxu0 %v11873_v8 }
  0xba   : > { %11194 = vmatprep.subr.bf16.mxu0 %v12361_v3 }
  0xbd   : > { %11195 = vmatpush3.bf16.msra.mxu0 %v11875_v9 }
  0xbe   : > { %11196 = vmatprep.subr.bf16.mxu0 %v12361_v3 }
  0xc1   : > { %11197 = vmatpush3.bf16.msra.mxu0 %v11877_v10 }
  0xc2   : > { %11198 = vmatprep.subr.bf16.mxu0 %v12361_v3 }
  0xc5   : > { %11199 = vmatpush3.bf16.msra.mxu0 %v11879_v11 }
  0xc6   : > { %11224 = vmatprep.subr.mxu0 %v12361_v3 }
  0xc8   : > { %11201 = vmatmul.mubr.bf16.vlgmr.msra.gmra.mrb[8].mxu0 %v12694_v21 }
  0xc9   : > { %11226 = vmatprep.mubr.msk.f32.mxu0 %vm12362_vm0, %v12361_v3 }
 0x15a   : > { %v1130_v24 = vpop.f32.mrb[0].mxu1 }
 0x15b   : > { %v1131_v25 = vadd.f32 %v9693_v22, %v1130_v24  ;;  %v11122_v26 = vpop.f32.mrb[1].mxu1  ;;  %v1018_v27 = vpop.f32.mrb[0].mxu0  ;;  %v11878_v24 = vld [vmem:[%s12582_s26 + $0x68] sm:$0xff]  }
 0x15c   : > { %v1133_v28 = vpop.f32.mrb[2].mxu1  ;;  %v1019_v29 = vadd.f32 %v9684_v23, %v1018_v27  ;;  %v11102_v30 = vpop.f32.mrb[1].mxu0  ;;  %v11881_v26 = vld [vmem:[%s12582_s26 + $0x78] sm:$0xff]   ;;  %v11882_v27 = vld [vmem:[%s13907_s7 + $0x40] sm:$0xff]  }
 0x15d   : > { %v11123_v31 = vpop.f32.mrb[3].mxu1  ;;  %11145 = vmatpush3.xpose.msk.msra.mxu1 %vm1249_vm1, %v1131_v25  ;;  %v1021_v32 = vpop.f32.mrb[2].mxu0  ;;  %v1134_v34 = vadd.f32 %v9693_v22, %v1133_v28  ;;  %v11874_v22 = vld [vmem:[%s12582_s26 + $0x58] sm:$0xff]   ;;  %v11880_v25 = vld [vmem:[%s12582_s26 + $0x70] sm:$0xff]   ;;  %v11883_v28 = vld [vmem:[%s13907_s7 + $0x48] sm:$0xff]  }
 0x15e   : > { %11149 = vmatprep.subr.mxu1 %v12361_v3  ;;  %v11103_v33 = vpop.f32.mrb[3].mxu0  ;;  %v1022_v35 = vadd.f32 %v9684_v23, %v1021_v32  ;;  %v11876_v23 = vld [vmem:[%s12582_s26 + $0x60] sm:$0xff]   ;;  %v11885_v30 = vld [vmem:[%s13907_s7 + $0x58] sm:$0xff]   ;;  %v11887_v32 = vld [vmem:[%s13907_s7 + $0x68] sm:$0xff]  }
 0x15f   : > { %v11886_v31 = vld [vmem:[%s13907_s7 + $0x60] sm:$0xff]   ;;  %v11888_v33 = vld [vmem:[%s13907_s7 + $0x70] sm:$0xff]  }
 0x160   : > { %11147 = vmatmul.mubr.msk.f32.vlgmr.msra.gmra.mrb[4].mxu1 %vm1249_vm1, %v1019_v29  ;;  %v11884_v29 = vld [vmem:[%s13907_s7 + $0x50] sm:$0xff]  }
 0x161   : > { %11150 = vmatpush3.xpose.msk.msra.mxu1 %vm1249_vm1, %v1134_v34  ;;  %11151 = vmatprep.mubr.msk.f32.mxu1 %vm12362_vm0, %v12361_v3  ;;  %v11889_v34 = vld [vmem:[%s13907_s7 + $0x78] sm:$0xff]  }
 0x162   : > { %11154 = vmatprep.subr.mxu1 %v12361_v3 }
 0x164   : > { %11152 = vmatmul.mubr.msk.f32.vlgmr.msra.gmra.mrb[6].mxu1 %vm1249_vm1, %v1022_v35  ;;  %v11890_v35 = vld [vmem:[%s12617_s30] sm:$0xff]  }
 0x165   : > { %11156 = vmatprep.mubr.msk.f32.mxu1 %vm12362_vm0, %v12361_v3 }
 0x17b   : > { %v1242_v60 = vpop.f32.mrb[4].mxu0 }
 0x17c   : > { %v11142_v61 = vpop.f32.mrb[5].mxu0  ;;  %v1243_v0 = vadd.f32 %v9702_v62, %v1242_v60 }
 0x17d   : > { %v1245_v63 = vpop.f32.mrb[6].mxu0 }
 0x17e   : > { %v11143_v1 = vpop.f32.mrb[7].mxu0  ;;  %v1246_v4 = vadd.f32 %v9702_v62, %v1245_v63  ;;  %11155 = vmatpush3.msra.mxu1 %v1243_v0 }
 0x17f   : > { %11159 = vmatprep.subr.mxu1 %v12361_v3 }
 0x19b   : > { %v1795_v37 = vpop.f32.mrb[8].mxu0 }
 0x19c   : > { %v1796_v38 = vadd.f32 %v9760_v36, %v1795_v37  ;;  %v11202_v39 = vpop.f32.mrb[9].mxu0 }
 0x19d   : > { %v1798_v40 = vpop.f32.mrb[10].mxu0 }
 0x19e   : > { %v1799_v41 = vadd.f32 %v9760_v36, %v1798_v40  ;;  %v11203_v42 = vpop.f32.mrb[11].mxu0  ;;  %11225 = vmatpush3.xpose.msk.msra.mxu0 %vm1249_vm1, %v1796_v38  ;;  %v11894_v38 = vld [vmem:[%s12582_s26 + $0x80] sm:$0xff]  }
 0x19f   : > { %11229 = vmatprep.subr.mxu0 %v12361_v3  ;;  %v11898_v42 = vld [vmem:[%s12582_s26 + $0x90] sm:$0xff]  }
 0x233   : > { %v1322_v44 = vpop.f32.mrb[4].mxu1 }
 0x234   : > { %v1403_v45 = vsel %vm1402_vm2, %v1322_v44, -inf  ;;  %v11148_v46 = vpop.f32.mrb[5].mxu1 }
 0x235   : > { %1404 = vmax.xlane.f32.xlu0 %v1403_v45 }
 0x237   : > { %v1398_v47 = vpop.f32.mrb[6].mxu1 }
 0x238   : > { %v11153_v48 = vpop.f32.mrb[7].mxu1  ;;  %v1406_v49 = vsel %vm1402_vm2, %v1398_v47, -inf }
 0x239   : > { %1407 = vmax.xlane.f32.xlu0 %v1406_v49  ;;  %v9734_v48 = vld [vmem:[%s12597_s22 + $0x1] ss:$0 sm:$0xff] }
 0x2c2   : > { %v1405_v50 = vpop.xlane.xlu0 %1404 }
 0x2c3   : > { %v1409_v51 = vsub.f32 %v1322_v44, %v1405_v50 }
 0x2c5   : > { %v1411_v52 = vmul.f32 1.442695, %v1409_v51 }
 0x2c6   : > { %v1408_v53 = vpop.xlane.xlu0 %1407 }
 0x2c7   : > { %12170 = vpow2.f32 %v1411_v52  ;;  %v1410_v54 = vsub.f32 %v1398_v47, %v1408_v53 }
 0x2c9   : > { %v1413_v55 = vmul.f32 1.442695, %v1410_v54 }
 0x2cb   : > { %12172 = vpow2.f32 %v1413_v55  ;;  %v9786_v55 = vld [vmem:[%s13908_s11 + $0x1] ss:$0 sm:$0xff] }
 0x2d1   : > { %v12171_v56 = vpop.eup %12170 }
 0x2d2   : > { %v1415_v57 = vsel %vm1402_vm2, %v12171_v56, 0.0 }
 0x2d3   : > { %1416 = vadd.xlane.f32.xlu1 %v1415_v57 }
 0x2d5   : > { %v12173_v58 = vpop.eup %12172 }
 0x2d6   : > { %v1418_v59 = vsel %vm1402_vm2, %v12173_v58, 0.0 }
 0x2d7   : > { %1419 = vadd.xlane.f32.xlu1 %v1418_v59 }
 0x360   : > { %v1417_v12 = vpop.xlane.xlu1 %1416 }
 0x361   : > { %12174 = vrcp.f32 %v1417_v12 }
 0x364   : > { %v1420_v13 = vpop.xlane.xlu1 %1419 }
 0x365   : > { %12176 = vrcp.f32 %v1420_v13 }
 0x36b   : > { %v12175_v14 = vpop.eup %12174 }
 0x36c   : > { %v1423_v15 = vmul.f32 %v12175_v14, %v12171_v56 }
 0x36e   : > { %11157 = vmatmul.mubr.msk.f32.vlgmr.msra.gmra.mrb[8].mxu1 %vm1402_vm2, %v1423_v15 }
 0x36f   : > { %v12177_v16 = vpop.eup %12176  ;;  %11160 = vmatpush3.msra.mxu1 %v1246_v4  ;;  %11161 = vmatprep.mubr.msk.f32.mxu1 %vm12362_vm0, %v12361_v3 }
 0x370   : > { %v1424_v18 = vmul.f32 %v12177_v16, %v12173_v58  ;;  %11164 = vmatprep.subr.bf16.mxu1 %v12361_v3 }
 0x372   : > { %11162 = vmatmul.mubr.msk.f32.vlgmr.msra.gmra.mrb[10].mxu1 %vm1402_vm2, %v1424_v18 }
 0x373   : > { %11165 = vmatpush3.bf16.msra.mxu1 %v11868_v17  ;;  %11180 = vmatprep.mubr.msk.bf16.mxu1 %vm12362_vm0, %v12361_v3 }
 0x374   : > { %11166 = vmatprep.subr.bf16.mxu1 %v12361_v3 }
 0x377   : > { %11167 = vmatpush3.bf16.msra.mxu1 %v11870_v19 }
 0x378   : > { %11168 = vmatprep.subr.bf16.mxu1 %v12361_v3 }
 0x37b   : > { %11169 = vmatpush3.bf16.msra.mxu1 %v11872_v20 }
 0x37c   : > { %11170 = vmatprep.subr.bf16.mxu1 %v12361_v3 }
 0x37f   : > { %11171 = vmatpush3.bf16.msra.mxu1 %v11874_v22 }
 0x380   : > { %11172 = vmatprep.subr.bf16.mxu1 %v12361_v3 }
 0x383   : > { %11173 = vmatpush3.bf16.msra.mxu1 %v11876_v23 }
 0x384   : > { %11174 = vmatprep.subr.bf16.mxu1 %v12361_v3 }
 0x387   : > { %11175 = vmatpush3.bf16.msra.mxu1 %v11878_v24 }
 0x388   : > { %11176 = vmatprep.subr.bf16.mxu1 %v12361_v3 }
 0x38b   : > { %11177 = vmatpush3.bf16.msra.mxu1 %v11880_v25 }
 0x38c   : > { %11178 = vmatprep.subr.bf16.mxu1 %v12361_v3 }
 0x38f   : > { %11179 = vmatpush3.bf16.msra.mxu1 %v11881_v26  ;;  %v11891_v26 = vld [vmem:[%s12587_s18 + $0x80] sm:$0xff]  }
 0x390   : > { %11204 = vmatprep.subr.bf16.mxu1 %v12361_v3 }
 0x392   : > { %11181 = vmatmul.mubr.bf16.vlgmr.msra.gmra.mrb[12].mxu1 %v12694_v21 }
 0x393   : > { %11205 = vmatpush3.bf16.msra.mxu1 %v11882_v27  ;;  %11220 = vmatprep.mubr.msk.bf16.mxu1 %vm12362_vm0, %v12361_v3  ;;  %v11892_v27 = vld [vmem:[%s12617_s30 + $0x8] sm:$0xff]  }
 0x394   : > { %11206 = vmatprep.subr.bf16.mxu1 %v12361_v3 }
 0x397   : > { %11207 = vmatpush3.bf16.msra.mxu1 %v11883_v28  ;;  %v11893_v28 = vld [vmem:[%s12587_s18 + $0x88] sm:$0xff]  }
 0x398   : > { %11208 = vmatprep.subr.bf16.mxu1 %v12361_v3 }
 0x39b   : > { %11209 = vmatpush3.bf16.msra.mxu1 %v11884_v29  ;;  %v11895_v29 = vld [vmem:[%s12587_s18 + $0x90] sm:$0xff]  }
 0x39c   : > { %11210 = vmatprep.subr.bf16.mxu1 %v12361_v3 }
 0x39f   : > { %11211 = vmatpush3.bf16.msra.mxu1 %v11885_v30  ;;  %v11897_v30 = vld [vmem:[%s12587_s18 + $0x98] sm:$0xff]  }
 0x3a0   : > { %11212 = vmatprep.subr.bf16.mxu1 %v12361_v3 }
 0x3a3   : > { %11213 = vmatpush3.bf16.msra.mxu1 %v11886_v31  ;;  %v11899_v31 = vld [vmem:[%s12587_s18 + $0xa0] sm:$0xff]  }
 0x3a4   : > { %11214 = vmatprep.subr.bf16.mxu1 %v12361_v3 }
 0x3a7   : > { %11215 = vmatpush3.bf16.msra.mxu1 %v11887_v32  ;;  %v11901_v32 = vld [vmem:[%s12587_s18 + $0xa8] sm:$0xff]  }
 0x3a8   : > { %11216 = vmatprep.subr.bf16.mxu1 %v12361_v3 }
 0x3ab   : > { %11217 = vmatpush3.bf16.msra.mxu1 %v11888_v33  ;;  %v11903_v33 = vld [vmem:[%s12587_s18 + $0xb0] sm:$0xff]  }
 0x3ac   : > { %11218 = vmatprep.subr.bf16.mxu1 %v12361_v3 }
 0x3af   : > { %11219 = vmatpush3.bf16.msra.mxu1 %v11889_v34  ;;  %v11905_v34 = vld [vmem:[%s12587_s18 + $0xb8] sm:$0xff]  }
 0x3b0   : > { %11250 = vmatprep.subr.bf16.mxu1 %v12361_v3 }
 0x3b2   : > { %11221 = vmatmul.mubr.bf16.vlgmr.msra.gmra.mrb[16].mxu1 %v12694_v21 }
 0x3b3   : > { %11252 = vmatprep.mubr.msk.bf16.mxu1 %vm12362_vm0, %v12361_v3  ;;  %11251 = vmatpush3.bf16.msra.mxu1 %v11890_v35 }
 0x3b4   : > { %11276 = vmatprep.subr.bf16.mxu1 %v12361_v3 }
 0x441   : > { %v1494_v43 = vpop.f32.mrb[8].mxu1 }
 0x442   : > { %v11158_v44 = vpop.f32.mrb[9].mxu1 }
 0x443   : > { %v11902_v44 = vld [vmem:[%s12582_s26 + $0xa0] sm:$0xff]  }
 0x445   : > { %v1567_v45 = vpop.f32.mrb[10].mxu1 }
 0x446   : > { %v1571_v46 = vpack.c.bf16 %v1567_v45, %v1494_v43  ;;  %v11163_v47 = vpop.f32.mrb[11].mxu1  ;;  %v11900_v43 = vld [vmem:[%s12582_s26 + $0x98] sm:$0xff]   ;;  %v11904_v45 = vld [vmem:[%s12582_s26 + $0xa8] sm:$0xff]  }
 0x447   : > { %v11907_v47 = vld [vmem:[%s12582_s26 + $0xb8] sm:$0xff]  }
 0x448   : > { %11253 = vmatmul.mubr.msk.bf16.vlgmr.msra.gmra.mrb[20].mxu1 %vm1249_vm1, %v1571_v46  ;;  %v11906_v46 = vld [vmem:[%s12582_s26 + $0xb0] sm:$0xff]  }
 0x449   : > { %11292 = vmatprep.mubr.msk.bf16.mxu1 %vm12362_vm0, %v12361_v3  ;;  %11277 = vmatpush3.bf16.msra.mxu1 %v11891_v26 }
 0x44a   : > { %11278 = vmatprep.subr.bf16.mxu1 %v12361_v3 }
 0x44d   : > { %11279 = vmatpush3.bf16.msra.mxu1 %v11893_v28 }
 0x44e   : > { %11280 = vmatprep.subr.bf16.mxu1 %v12361_v3 }
 0x451   : > { %11281 = vmatpush3.bf16.msra.mxu1 %v11895_v29 }
 0x452   : > { %11282 = vmatprep.subr.bf16.mxu1 %v12361_v3 }
 0x455   : > { %11283 = vmatpush3.bf16.msra.mxu1 %v11897_v30 }
 0x456   : > { %11284 = vmatprep.subr.bf16.mxu1 %v12361_v3 }
 0x459   : > { %11285 = vmatpush3.bf16.msra.mxu1 %v11899_v31 }
 0x45a   : > { %11286 = vmatprep.subr.bf16.mxu1 %v12361_v3 }
 0x45d   : > { %11287 = vmatpush3.bf16.msra.mxu1 %v11901_v32  ;;  %v9876_v32 = vld [vmem:[%s13908_s11 + $0x2] ss:$0 sm:$0xff] }
 0x45e   : > { %11288 = vmatprep.subr.bf16.mxu1 %v12361_v3 }
 0x461   : > { %11289 = vmatpush3.bf16.msra.mxu1 %v11903_v33 }
 0x462   : > { %11290 = vmatprep.subr.bf16.mxu1 %v12361_v3 }
 0x465   : > { %v1681_v49 = vpop.f32.mrb[12].mxu1  ;;  %11291 = vmatpush3.bf16.msra.mxu1 %v11905_v34 }
 0x466   : > { %v1682_v50 = vadd.f32 %v9734_v48, %v1681_v49  ;;  %v11182_v51 = vpop.f32.mrb[13].mxu1  ;;  %11316 = vmatprep.subr.mxu1 %v12361_v3 }
 0x467   : > { %v1684_v52 = vpop.f32.mrb[14].mxu1 }
 0x468   : > { %11227 = vmatmul.mubr.msk.f32.vlgmr.msra.gmra.mrb[12].mxu0 %vm1249_vm1, %v1682_v50  ;;  %v11183_v53 = vpop.f32.mrb[15].mxu1  ;;  %v1685_v54 = vadd.f32 %v9734_v48, %v1684_v52  ;;  %11293 = vmatmul.mubr.bf16.vlgmr.msra.gmra.mrb[24].mxu1 %v12694_v21  ;;  %v9850_v48 = vld [vmem:[%s12602_s17 + $0x2] ss:$0 sm:$0xff] }
 0x469   : > { %11230 = vmatpush3.xpose.msk.msra.mxu0 %vm1249_vm1, %v1799_v41  ;;  %11231 = vmatprep.mubr.msk.f32.mxu0 %vm12362_vm0, %v12361_v3  ;;  %v11896_v41 = vld [vmem:[%s12582_s26 + $0x88] sm:$0xff]  }
 0x46a   : > { %11234 = vmatprep.subr.mxu0 %v12361_v3  ;;  %11318 = vmatprep.mubr.msk.f32.mxu1 %vm12362_vm0, %v12361_v3 }
 0x46c   : > { %11232 = vmatmul.mubr.msk.f32.vlgmr.msra.gmra.mrb[14].mxu0 %vm1249_vm1, %v1685_v54 }
 0x46d   : > { %11236 = vmatprep.mubr.msk.f32.mxu0 %vm12362_vm0, %v12361_v3 }
 0x485   : > { %v1909_v56 = vpop.f32.mrb[16].mxu1 }
 0x486   : > { %v1910_v57 = vadd.f32 %v9786_v55, %v1909_v56  ;;  %v11222_v58 = vpop.f32.mrb[17].mxu1 }
 0x487   : > { %v1912_v59 = vpop.f32.mrb[18].mxu1 }
 0x488   : > { %v1913_v60 = vadd.f32 %v9786_v55, %v1912_v59  ;;  %v11223_v61 = vpop.f32.mrb[19].mxu1  ;;  %11235 = vmatpush3.msra.mxu0 %v1910_v57 }
 0x489   : > { %11239 = vmatprep.subr.mxu0 %v12361_v3  ;;  %v9824_v61 = vld [vmem:[%s12597_s22 + $0x2] ss:$0 sm:$0xff] }
 0x51b   : > { %v12824_v62 = vpop.f32.mrb[20].mxu1 }
 0x51c   : > { %v11254_v63 = vpop.f32.mrb[21].mxu1 }
 0x51d   : > { %v12826_v0 = vpop.f32.mrb[22].mxu1 }
 0x51e   : > { %v11255_v1 = vpop.f32.mrb[23].mxu1 }
 0x53b   : > { %v1988_v2 = vpop.f32.mrb[12].mxu0  ;;  %v2561_v49 = vpop.f32.mrb[24].mxu1 }
 0x53c   : > { %v2068_v4 = vsel %vm1402_vm2, %v1988_v2, -inf  ;;  %v11228_v5 = vpop.f32.mrb[13].mxu0  ;;  %v2562_v50 = vadd.f32 %v9850_v48, %v2561_v49  ;;  %v11294_v51 = vpop.f32.mrb[25].mxu1  ;;  %v11926_v49 = vld [vmem:[%s12587_s18 + $0xe8] sm:$0xff]  }
 0x53d   : > { %2069 = vmax.xlane.f32.xlu0 %v2068_v4  ;;  %v2564_v52 = vpop.f32.mrb[26].mxu1  ;;  %v11930_v51 = vld [vmem:[%s12587_s18 + $0xf8] sm:$0xff]  }
 0x53e   : > { %v2565_v53 = vadd.f32 %v9850_v48, %v2564_v52  ;;  %v11295_v54 = vpop.f32.mrb[27].mxu1  ;;  %11317 = vmatpush3.xpose.msk.msra.mxu1 %vm1249_vm1, %v2562_v50  ;;  %v11924_v48 = vld [vmem:[%s12587_s18 + $0xe0] sm:$0xff]   ;;  %v11928_v50 = vld [vmem:[%s12587_s18 + $0xf0] sm:$0xff]  }
 0x53f   : > { %v2064_v6 = vpop.f32.mrb[14].mxu0  ;;  %11321 = vmatprep.subr.mxu1 %v12361_v3 }
 0x540   : > { %v11233_v7 = vpop.f32.mrb[15].mxu0  ;;  %v2071_v8 = vsel %vm1402_vm2, %v2064_v6, -inf }
 0x541   : > { %2072 = vmax.xlane.f32.xlu1 %v2071_v8  ;;  %v11910_v7 = vld [vmem:[%s13907_s7 + $0x90] sm:$0xff]   ;;  %v11911_v8 = vld [vmem:[%s13907_s7 + $0x98] sm:$0xff]  }
 0x5ca   : > { %v2070_v9 = vpop.xlane.xlu0 %2069 }
 0x5cb   : > { %v2074_v10 = vsub.f32 %v1988_v2, %v2070_v9  ;;  %v11912_v9 = vld [vmem:[%s13907_s7 + $0xa0] sm:$0xff]  }
 0x5cd   : > { %v2076_v11 = vmul.f32 1.442695, %v2074_v10  ;;  %v11913_v10 = vld [vmem:[%s13907_s7 + $0xa8] sm:$0xff]  }
 0x5ce   : > { %v2073_v12 = vpop.xlane.xlu1 %2072 }
 0x5cf   : > { %12178 = vpow2.f32 %v2076_v11  ;;  %v2075_v13 = vsub.f32 %v2064_v6, %v2073_v12  ;;  %v11909_v6 = vld [vmem:[%s13907_s7 + $0x88] sm:$0xff]   ;;  %v11914_v11 = vld [vmem:[%s13907_s7 + $0xb0] sm:$0xff]   ;;  %v11915_v12 = vld [vmem:[%s13907_s7 + $0xb8] sm:$0xff]  }
 0x5d1   : > { %v2078_v14 = vmul.f32 1.442695, %v2075_v13 }
 0x5d3   : > { %12180 = vpow2.f32 %v2078_v14 }
 0x5d9   : > { %v12179_v15 = vpop.eup %12178 }
 0x5da   : > { %v2080_v16 = vsel %vm1402_vm2, %v12179_v15, 0.0 }
 0x5db   : > { %2081 = vadd.xlane.f32.xlu0 %v2080_v16 }
 0x5dd   : > { %v12181_v17 = vpop.eup %12180 }
 0x5de   : > { %v2083_v18 = vsel %vm1402_vm2, %v12181_v17, 0.0 }
 0x5df   : > { %2084 = vadd.xlane.f32.xlu1 %v2083_v18 }
 0x668   : > { %v2082_v19 = vpop.xlane.xlu0 %2081 }
 0x669   : > { %12182 = vrcp.f32 %v2082_v19 }
 0x66c   : > { %v2085_v20 = vpop.xlane.xlu1 %2084 }
 0x66d   : > { %12184 = vrcp.f32 %v2085_v20 }
 0x673   : > { %v12183_v22 = vpop.eup %12182 }
 0x674   : > { %v2088_v23 = vmul.f32 %v12183_v22, %v12179_v15 }
 0x676   : > { %11237 = vmatmul.mubr.msk.f32.vlgmr.msra.gmra.mrb[16].mxu0 %vm1402_vm2, %v2088_v23 }
 0x677   : > { %v12185_v24 = vpop.eup %12184  ;;  %11240 = vmatpush3.msra.mxu0 %v1913_v60  ;;  %11241 = vmatprep.mubr.msk.f32.mxu0 %vm12362_vm0, %v12361_v3 }
 0x678   : > { %v2089_v25 = vmul.f32 %v12185_v24, %v12181_v17  ;;  %11244 = vmatprep.subr.bf16.mxu0 %v12361_v3 }
 0x67a   : > { %11242 = vmatmul.mubr.msk.f32.vlgmr.msra.gmra.mrb[18].mxu0 %vm1402_vm2, %v2089_v25 }
 0x67b   : > { %11246 = vmatprep.mubr.msk.bf16.mxu0 %vm12362_vm0, %v12361_v3  ;;  %11245 = vmatpush3.bf16.msra.mxu0 %v11892_v27 }
 0x67c   : > { %11256 = vmatprep.subr.bf16.mxu0 %v12361_v3 }
 0x749   : > { %v2159_v35 = vpop.f32.mrb[16].mxu0 }
 0x74a   : > { %v11238_v36 = vpop.f32.mrb[17].mxu0 }
 0x74d   : > { %v2232_v37 = vpop.f32.mrb[18].mxu0 }
 0x74e   : > { %v2236_v39 = vpack.c.bf16 %v2232_v37, %v2159_v35  ;;  %v11243_v40 = vpop.f32.mrb[19].mxu0 }
 0x750   : > { %11247 = vmatmul.mubr.msk.bf16.vlgmr.msra.gmra.mrb[20].mxu0 %vm1249_vm1, %v2236_v39 }
 0x751   : > { %11257 = vmatpush3.bf16.msra.mxu0 %v11894_v38  ;;  %11272 = vmatprep.mubr.msk.bf16.mxu0 %vm12362_vm0, %v12361_v3 }
 0x752   : > { %11258 = vmatprep.subr.bf16.mxu0 %v12361_v3 }
 0x755   : > { %11259 = vmatpush3.bf16.msra.mxu0 %v11896_v41 }
 0x756   : > { %11260 = vmatprep.subr.bf16.mxu0 %v12361_v3 }
 0x759   : > { %11261 = vmatpush3.bf16.msra.mxu0 %v11898_v42 }
 0x75a   : > { %11262 = vmatprep.subr.bf16.mxu0 %v12361_v3 }
 0x75d   : > { %11263 = vmatpush3.bf16.msra.mxu0 %v11900_v43  ;;  %v11916_v43 = vld [vmem:[%s12587_s18 + $0xc0] sm:$0xff]  }
 0x75e   : > { %11264 = vmatprep.subr.bf16.mxu0 %v12361_v3 }
 0x761   : > { %11265 = vmatpush3.bf16.msra.mxu0 %v11902_v44  ;;  %v11917_v44 = vld [vmem:[%s12617_s30 + $0x10] sm:$0xff]  }
 0x762   : > { %11266 = vmatprep.subr.bf16.mxu0 %v12361_v3 }
 0x765   : > { %11267 = vmatpush3.bf16.msra.mxu0 %v11904_v45  ;;  %v11918_v45 = vld [vmem:[%s12587_s18 + $0xc8] sm:$0xff]  }
 0x766   : > { %11268 = vmatprep.subr.bf16.mxu0 %v12361_v3 }
 0x769   : > { %11269 = vmatpush3.bf16.msra.mxu0 %v11906_v46  ;;  %v11920_v46 = vld [vmem:[%s12587_s18 + $0xd0] sm:$0xff]  }
 0x76a   : > { %11270 = vmatprep.subr.bf16.mxu0 %v12361_v3 }
 0x76d   : > { %11271 = vmatpush3.bf16.msra.mxu0 %v11907_v47  ;;  %v11922_v47 = vld [vmem:[%s12587_s18 + $0xd8] sm:$0xff]  }
 0x76e   : > { %11296 = vmatprep.subr.bf16.mxu0 %v12361_v3 }
 0x770   : > { %11273 = vmatmul.mubr.bf16.vlgmr.msra.gmra.mrb[24].mxu0 %v12694_v21 }
 0x771   : > { %11312 = vmatprep.mubr.msk.bf16.mxu0 %vm12362_vm0, %v12361_v3 }
 0x823   : > { %v2283_v55 = vpop.f32.mrb[20].mxu0 }
 0x824   : > { %v12886_v56 = vadd.f32 %v12824_v62, %v2283_v55  ;;  %v11248_v57 = vpop.f32.mrb[21].mxu0  ;;  %v11919_v55 = vld [vmem:[%s12582_s26 + $0xc0] sm:$0xff]  }
 0x825   : > { %v2286_v58 = vpop.f32.mrb[22].mxu0 }
 0x826   : > { %v12889_v59 = vadd.f32 %v12826_v0, %v2286_v58  ;;  %v11249_v60 = vpop.f32.mrb[23].mxu0  ;;  %v11908_v0 = vld [vmem:[%s13907_s7 + $0x80] sm:$0xff]  }
 0x827   : > { %11297 = vmatpush3.bf16.msra.mxu0 %v11908_v0  ;;  %v11921_v60 = vld [vmem:[%s12582_s26 + $0xc8] sm:$0xff]  }
 0x828   : > { %11298 = vmatprep.subr.bf16.mxu0 %v12361_v3 }
 0x82b   : > { %11299 = vmatpush3.bf16.msra.mxu0 %v11909_v6 }
 0x82c   : > { %11300 = vmatprep.subr.bf16.mxu0 %v12361_v3 }
 0x82f   : > { %11301 = vmatpush3.bf16.msra.mxu0 %v11910_v7 }
 0x830   : > { %11302 = vmatprep.subr.bf16.mxu0 %v12361_v3 }
 0x833   : > { %11303 = vmatpush3.bf16.msra.mxu0 %v11911_v8 }
 0x834   : > { %11304 = vmatprep.subr.bf16.mxu0 %v12361_v3 }
 0x837   : > { %11305 = vmatpush3.bf16.msra.mxu0 %v11912_v9 }
 0x838   : > { %11306 = vmatprep.subr.bf16.mxu0 %v12361_v3 }
 0x83b   : > { %11307 = vmatpush3.bf16.msra.mxu0 %v11913_v10 }
 0x83c   : > { %11308 = vmatprep.subr.bf16.mxu0 %v12361_v3 }
 0x83f   : > { %11309 = vmatpush3.bf16.msra.mxu0 %v11914_v11 }
 0x840   : > { %11310 = vmatprep.subr.bf16.mxu0 %v12361_v3 }
 0x843   : > { %v2447_v63 = vpop.f32.mrb[24].mxu0  ;;  %11311 = vmatpush3.bf16.msra.mxu0 %v11915_v12 }
 0x844   : > { %v2448_v1 = vadd.f32 %v9824_v61, %v2447_v63  ;;  %v11274_v2 = vpop.f32.mrb[25].mxu0  ;;  %11362 = vmatprep.subr.bf16.mxu0 %v12361_v3  ;;  %v11925_v63 = vld [vmem:[%s12582_s26 + $0xd8] sm:$0xff]  }
 0x845   : > { %v2450_v4 = vpop.f32.mrb[26].mxu0  ;;  %v11929_v2 = vld [vmem:[%s12582_s26 + $0xe8] sm:$0xff]  }
 0x846   : > { %11319 = vmatmul.mubr.msk.f32.vlgmr.msra.gmra.mrb[28].mxu1 %vm1249_vm1, %v2448_v1  ;;  %v11275_v5 = vpop.f32.mrb[27].mxu0  ;;  %v2451_v62 = vadd.f32 %v9824_v61, %v2450_v4  ;;  %11313 = vmatmul.mubr.bf16.vlgmr.msra.gmra.mrb[28].mxu0 %v12694_v21  ;;  %v11923_v61 = vld [vmem:[%s12582_s26 + $0xd0] sm:$0xff]   ;;  %v11927_v1 = vld [vmem:[%s12582_s26 + $0xe0] sm:$0xff]  }
 0x847   : > { %11322 = vmatpush3.xpose.msk.msra.mxu1 %vm1249_vm1, %v2565_v53  ;;  %11323 = vmatprep.mubr.msk.f32.mxu1 %vm12362_vm0, %v12361_v3  ;;  %v11931_v4 = vld [vmem:[%s12582_s26 + $0xf0] sm:$0xff]   ;;  %v11932_v5 = vld [vmem:[%s12582_s26 + $0xf8] sm:$0xff]  }
 0x848   : > { %11326 = vmatprep.subr.mxu1 %v12361_v3  ;;  %11378 = vmatprep.mubr.msk.bf16.mxu0 %vm12362_vm0, %v12361_v3 }
 0x849   : > { %11363 = vmatpush3.bf16.msra.mxu0 %v11916_v43 }
 0x84a   : > { %11324 = vmatmul.mubr.msk.f32.vlgmr.msra.gmra.mrb[30].mxu1 %vm1249_vm1, %v2451_v62  ;;  %11364 = vmatprep.subr.bf16.mxu0 %v12361_v3  ;;  %v9938_v62 = vld [vmem:[%s12602_s17 + $0x3] ss:$0 sm:$0xff] }
 0x84b   : > { %11328 = vmatprep.mubr.msk.f32.mxu1 %vm12362_vm0, %v12361_v3 }
 0x84d   : > { %11365 = vmatpush3.bf16.msra.mxu0 %v11918_v45 }
 0x84e   : > { %11366 = vmatprep.subr.bf16.mxu0 %v12361_v3 }
 0x851   : > { %11367 = vmatpush3.bf16.msra.mxu0 %v11920_v46 }
 0x852   : > { %11368 = vmatprep.subr.bf16.mxu0 %v12361_v3 }
 0x855   : > { %11369 = vmatpush3.bf16.msra.mxu0 %v11922_v47 }
 0x856   : > { %11370 = vmatprep.subr.bf16.mxu0 %v12361_v3 }
 0x859   : > { %11371 = vmatpush3.bf16.msra.mxu0 %v11924_v48 }
 0x85a   : > { %11372 = vmatprep.subr.bf16.mxu0 %v12361_v3 }
 0x85d   : > { %11373 = vmatpush3.bf16.msra.mxu0 %v11926_v49  ;;  %v9964_v49 = vld [vmem:[%s13908_s11 + $0x3] ss:$0 sm:$0xff] }
 0x85e   : > { %11374 = vmatprep.subr.bf16.mxu0 %v12361_v3 }
 0x861   : > { %11375 = vmatpush3.bf16.msra.mxu0 %v11928_v50 }
 0x862   : > { %11376 = vmatprep.subr.bf16.mxu0 %v12361_v3 }
 0x865   : > { %11377 = vmatpush3.bf16.msra.mxu0 %v11930_v51 }
 0x866   : > { %11402 = vmatprep.subr.mxu0 %v12361_v3 }
 0x868   : > { %11379 = vmatmul.mubr.bf16.vlgmr.msra.gmra.mrb[32].mxu0 %v12694_v21 }
 0x869   : > { %11404 = vmatprep.mubr.msk.f32.mxu0 %vm12362_vm0, %v12361_v3 }
 0x919   : > { %v2754_v13 = vpop.f32.mrb[28].mxu1  ;;  %v2675_v30 = vpop.f32.mrb[28].mxu0 }
 0x91a   : > { %v2834_v14 = vsel %vm1402_vm2, %v2754_v13, -inf  ;;  %v11320_v15 = vpop.f32.mrb[29].mxu1  ;;  %v11314_v31 = vpop.f32.mrb[29].mxu0  ;;  %v2676_v34 = vadd.f32 %v9876_v32, %v2675_v30  ;;  %v11940_v30 = vld [vmem:[%s13907_s7 + $0xf8] sm:$0xff]  }
 0x91b   : > { %2835 = vmax.xlane.f32.xlu0 %v2834_v14  ;;  %v2678_v33 = vpop.f32.mrb[30].mxu0 }
 0x91c   : > { %v11315_v35 = vpop.f32.mrb[31].mxu0  ;;  %v2679_v36 = vadd.f32 %v9876_v32, %v2678_v33  ;;  %11327 = vmatpush3.msra.mxu1 %v2676_v34 }
 0x91d   : > { %v2830_v16 = vpop.f32.mrb[30].mxu1  ;;  %11331 = vmatprep.subr.mxu1 %v12361_v3 }
 0x91e   : > { %v11325_v17 = vpop.f32.mrb[31].mxu1  ;;  %v2837_v18 = vsel %vm1402_vm2, %v2830_v16, -inf }
 0x91f   : > { %2838 = vmax.xlane.f32.xlu1 %v2837_v18  ;;  %v9912_v17 = vld [vmem:[%s12597_s22 + $0x3] ss:$0 sm:$0xff] }
 0x93b   : > { %v3279_v0 = vpop.f32.mrb[32].mxu0 }
 0x93c   : > { %v3280_v6 = vadd.f32 %v9938_v62, %v3279_v0  ;;  %v11380_v7 = vpop.f32.mrb[33].mxu0  ;;  %v11951_v0 = vld [vmem:[%s12587_s18 + $0x128] sm:$0xff]  }
 0x93d   : > { %v3282_v8 = vpop.f32.mrb[34].mxu0  ;;  %v11955_v7 = vld [vmem:[%s12587_s18 + $0x138] sm:$0xff]  }
 0x93e   : > { %v3283_v9 = vadd.f32 %v9938_v62, %v3282_v8  ;;  %v11381_v10 = vpop.f32.mrb[35].mxu0  ;;  %11403 = vmatpush3.xpose.msk.msra.mxu0 %vm1249_vm1, %v3280_v6  ;;  %v11949_v62 = vld [vmem:[%s12587_s18 + $0x120] sm:$0xff]   ;;  %v11953_v6 = vld [vmem:[%s12587_s18 + $0x130] sm:$0xff]  }
 0x93f   : > { %11407 = vmatprep.subr.mxu0 %v12361_v3 }
 0x9a8   : > { %v2836_v19 = vpop.xlane.xlu0 %2835 }
 0x9a9   : > { %v2840_v20 = vsub.f32 %v2754_v13, %v2836_v19 }
 0x9ab   : > { %v2842_v22 = vmul.f32 1.442695, %v2840_v20 }
 0x9ac   : > { %v2839_v23 = vpop.xlane.xlu1 %2838 }
 0x9ad   : > { %12186 = vpow2.f32 %v2842_v22  ;;  %v2841_v24 = vsub.f32 %v2830_v16, %v2839_v23 }
 0x9af   : > { %v2844_v25 = vmul.f32 1.442695, %v2841_v24  ;;  %v11934_v24 = vld [vmem:[%s13907_s7 + $0xc8] sm:$0xff]  }
 0x9b1   : > { %12188 = vpow2.f32 %v2844_v25  ;;  %v11935_v25 = vld [vmem:[%s13907_s7 + $0xd0] sm:$0xff]  }
 0x9b7   : > { %v12187_v26 = vpop.eup %12186 }
 0x9b8   : > { %v2846_v27 = vsel %vm1402_vm2, %v12187_v26, 0.0 }
 0x9b9   : > { %2847 = vadd.xlane.f32.xlu0 %v2846_v27  ;;  %v11937_v27 = vld [vmem:[%s13907_s7 + $0xe0] sm:$0xff]  }
 0x9bb   : > { %v12189_v28 = vpop.eup %12188 }
 0x9bc   : > { %v2849_v29 = vsel %vm1402_vm2, %v12189_v28, 0.0 }
 0x9bd   : > { %2850 = vadd.xlane.f32.xlu1 %v2849_v29  ;;  %v11939_v29 = vld [vmem:[%s13907_s7 + $0xf0] sm:$0xff]  }
 0xa46   : > { %v2848_v37 = vpop.xlane.xlu0 %2847 }
 0xa47   : > { %12190 = vrcp.f32 %v2848_v37 }
 0xa4a   : > { %v2851_v38 = vpop.xlane.xlu1 %2850 }
 0xa4b   : > { %12192 = vrcp.f32 %v2851_v38 }
 0xa51   : > { %v12191_v39 = vpop.eup %12190 }
 0xa52   : > { %v2854_v40 = vmul.f32 %v12191_v39, %v12187_v26  ;;  %v11936_v26 = vld [vmem:[%s13907_s7 + $0xd8] sm:$0xff]  }
 0xa54   : > { %11329 = vmatmul.mubr.msk.f32.vlgmr.msra.gmra.mrb[32].mxu1 %vm1402_vm2, %v2854_v40 }
 0xa55   : > { %v12193_v41 = vpop.eup %12192  ;;  %11332 = vmatpush3.msra.mxu1 %v2679_v36  ;;  %11333 = vmatprep.mubr.msk.f32.mxu1 %vm12362_vm0, %v12361_v3 }
 0xa56   : > { %v2855_v42 = vmul.f32 %v12193_v41, %v12189_v28  ;;  %11336 = vmatprep.subr.bf16.mxu1 %v12361_v3  ;;  %v11938_v28 = vld [vmem:[%s13907_s7 + $0xe8] sm:$0xff]  }
 0xa58   : > { %11334 = vmatmul.mubr.msk.f32.vlgmr.msra.gmra.mrb[34].mxu1 %vm1402_vm2, %v2855_v42 }
 0xa59   : > { %11338 = vmatprep.mubr.msk.bf16.mxu1 %vm12362_vm0, %v12361_v3  ;;  %11337 = vmatpush3.bf16.msra.mxu1 %v11917_v44 }
 0xa5a   : > { %11342 = vmatprep.subr.bf16.mxu1 %v12361_v3 }
 0xb27   : > { %v2925_v52 = vpop.f32.mrb[32].mxu1 }
 0xb28   : > { %v11330_v53 = vpop.f32.mrb[33].mxu1 }
 0xb2b   : > { %v2998_v54 = vpop.f32.mrb[34].mxu1 }
 0xb2c   : > { %v3002_v57 = vpack.c.bf16 %v2998_v54, %v2925_v52  ;;  %v11335_v58 = vpop.f32.mrb[35].mxu1 }
 0xb2e   : > { %11339 = vmatmul.mubr.msk.bf16.vlgmr.msra.gmra.mrb[36].mxu1 %vm1249_vm1, %v3002_v57 }
 0xb2f   : > { %11343 = vmatpush3.bf16.msra.mxu1 %v11919_v55  ;;  %11358 = vmatprep.mubr.msk.bf16.mxu1 %vm12362_vm0, %v12361_v3 }
 0xb30   : > { %11344 = vmatprep.subr.bf16.mxu1 %v12361_v3 }
 0xb33   : > { %11345 = vmatpush3.bf16.msra.mxu1 %v11921_v60 }
 0xb34   : > { %11346 = vmatprep.subr.bf16.mxu1 %v12361_v3 }
 0xb37   : > { %11347 = vmatpush3.bf16.msra.mxu1 %v11923_v61 }
 0xb38   : > { %11348 = vmatprep.subr.bf16.mxu1 %v12361_v3 }
 0xb3b   : > { %11349 = vmatpush3.bf16.msra.mxu1 %v11925_v63  ;;  %v11941_v63 = vld [vmem:[%s12587_s18 + $0x100] sm:$0xff]  }
 0xb3c   : > { %11350 = vmatprep.subr.bf16.mxu1 %v12361_v3 }
 0xb3f   : > { %11351 = vmatpush3.bf16.msra.mxu1 %v11927_v1  ;;  %v11942_v1 = vld [vmem:[%s12617_s30 + $0x18] sm:$0xff]  }
 0xb40   : > { %11352 = vmatprep.subr.bf16.mxu1 %v12361_v3 }
 0xb43   : > { %11353 = vmatpush3.bf16.msra.mxu1 %v11929_v2  ;;  %v11943_v2 = vld [vmem:[%s12587_s18 + $0x108] sm:$0xff]  }
 0xb44   : > { %11354 = vmatprep.subr.bf16.mxu1 %v12361_v3 }
 0xb47   : > { %11355 = vmatpush3.bf16.msra.mxu1 %v11931_v4  ;;  %v11945_v4 = vld [vmem:[%s12587_s18 + $0x110] sm:$0xff]  }
 0xb48   : > { %11356 = vmatprep.subr.bf16.mxu1 %v12361_v3 }
 0xb4b   : > { %11357 = vmatpush3.bf16.msra.mxu1 %v11932_v5  ;;  %v11947_v5 = vld [vmem:[%s12587_s18 + $0x118] sm:$0xff]  }
 0xb4c   : > { %11382 = vmatprep.subr.bf16.mxu1 %v12361_v3 }
 0xb4e   : > { %11359 = vmatmul.mubr.bf16.vlgmr.msra.gmra.mrb[40].mxu1 %v12694_v21 }
 0xb4f   : > { %11398 = vmatprep.mubr.msk.bf16.mxu1 %vm12362_vm0, %v12361_v3 }
 0xc01   : > { %v3049_v11 = vpop.f32.mrb[36].mxu1 }
 0xc02   : > { %v12979_v12 = vadd.f32 %v3049_v11, %v12886_v56  ;;  %v11340_v13 = vpop.f32.mrb[37].mxu1  ;;  %v11944_v11 = vld [vmem:[%s12582_s26 + $0x100] sm:$0xff]  }
 0xc03   : > { %v3052_v14 = vpop.f32.mrb[38].mxu1 }
 0xc04   : > { %v12982_v15 = vadd.f32 %v3052_v14, %v12889_v59  ;;  %v11341_v16 = vpop.f32.mrb[39].mxu1  ;;  %v11933_v59 = vld [vmem:[%s13907_s7 + $0xc0] sm:$0xff]  }
 0xc05   : > { %11383 = vmatpush3.bf16.msra.mxu1 %v11933_v59  ;;  %v11946_v16 = vld [vmem:[%s12582_s26 + $0x108] sm:$0xff]  }
 0xc06   : > { %11384 = vmatprep.subr.bf16.mxu1 %v12361_v3 }
 0xc09   : > { %11385 = vmatpush3.bf16.msra.mxu1 %v11934_v24 }
 0xc0a   : > { %11386 = vmatprep.subr.bf16.mxu1 %v12361_v3 }
 0xc0d   : > { %11387 = vmatpush3.bf16.msra.mxu1 %v11935_v25 }
 0xc0e   : > { %11388 = vmatprep.subr.bf16.mxu1 %v12361_v3 }
 0xc11   : > { %11389 = vmatpush3.bf16.msra.mxu1 %v11936_v26 }
 0xc12   : > { %11390 = vmatprep.subr.bf16.mxu1 %v12361_v3 }
 0xc15   : > { %11391 = vmatpush3.bf16.msra.mxu1 %v11937_v27 }
 0xc16   : > { %11392 = vmatprep.subr.bf16.mxu1 %v12361_v3 }
 0xc19   : > { %11393 = vmatpush3.bf16.msra.mxu1 %v11938_v28 }
 0xc1a   : > { %11394 = vmatprep.subr.bf16.mxu1 %v12361_v3 }
 0xc1d   : > { %11395 = vmatpush3.bf16.msra.mxu1 %v11939_v29 }
 0xc1e   : > { %11396 = vmatprep.subr.bf16.mxu1 %v12361_v3 }
 0xc21   : > { %v3165_v18 = vpop.f32.mrb[40].mxu1  ;;  %11397 = vmatpush3.bf16.msra.mxu1 %v11940_v30 }
 0xc22   : > { %v3166_v19 = vadd.f32 %v9912_v17, %v3165_v18  ;;  %v11360_v20 = vpop.f32.mrb[41].mxu1  ;;  %11448 = vmatprep.subr.bf16.mxu1 %v12361_v3  ;;  %v11950_v18 = vld [vmem:[%s12582_s26 + $0x118] sm:$0xff]  }
 0xc23   : > { %v3168_v22 = vpop.f32.mrb[42].mxu1  ;;  %v11954_v20 = vld [vmem:[%s12582_s26 + $0x128] sm:$0xff]  }
 0xc24   : > { %11405 = vmatmul.mubr.msk.f32.vlgmr.msra.gmra.mrb[36].mxu0 %vm1249_vm1, %v3166_v19  ;;  %v11361_v23 = vpop.f32.mrb[43].mxu1  ;;  %v3169_v56 = vadd.f32 %v9912_v17, %v3168_v22  ;;  %11399 = vmatmul.mubr.bf16.vlgmr.msra.gmra.mrb[44].mxu1 %v12694_v21  ;;  %v11948_v17 = vld [vmem:[%s12582_s26 + $0x110] sm:$0xff]   ;;  %v11952_v19 = vld [vmem:[%s12582_s26 + $0x120] sm:$0xff]  }
 0xc25   : > { %11408 = vmatpush3.xpose.msk.msra.mxu0 %vm1249_vm1, %v3283_v9  ;;  %11409 = vmatprep.mubr.msk.f32.mxu0 %vm12362_vm0, %v12361_v3  ;;  %v11956_v22 = vld [vmem:[%s12582_s26 + $0x130] sm:$0xff]   ;;  %v11957_v23 = vld [vmem:[%s12582_s26 + $0x138] sm:$0xff]  }
 0xc26   : > { %11412 = vmatprep.subr.mxu0 %v12361_v3  ;;  %11464 = vmatprep.mubr.msk.bf16.mxu1 %vm12362_vm0, %v12361_v3 }
 0xc27   : > { %11449 = vmatpush3.bf16.msra.mxu1 %v11941_v63 }
 0xc28   : > { %11410 = vmatmul.mubr.msk.f32.vlgmr.msra.gmra.mrb[38].mxu0 %vm1249_vm1, %v3169_v56  ;;  %11450 = vmatprep.subr.bf16.mxu1 %v12361_v3  ;;  %v10026_v56 = vld [vmem:[%s12602_s17 + $0x4] ss:$0 sm:$0xff] }
 0xc29   : > { %11414 = vmatprep.mubr.msk.f32.mxu0 %vm12362_vm0, %v12361_v3 }
 0xc2b   : > { %11451 = vmatpush3.bf16.msra.mxu1 %v11943_v2 }
 0xc2c   : > { %11452 = vmatprep.subr.bf16.mxu1 %v12361_v3 }
 0xc2f   : > { %11453 = vmatpush3.bf16.msra.mxu1 %v11945_v4 }
 0xc30   : > { %11454 = vmatprep.subr.bf16.mxu1 %v12361_v3 }
 0xc33   : > { %11455 = vmatpush3.bf16.msra.mxu1 %v11947_v5 }
 0xc34   : > { %11456 = vmatprep.subr.bf16.mxu1 %v12361_v3 }
 0xc37   : > { %11457 = vmatpush3.bf16.msra.mxu1 %v11949_v62 }
 0xc38   : > { %11458 = vmatprep.subr.bf16.mxu1 %v12361_v3 }
 0xc3b   : > { %11459 = vmatpush3.bf16.msra.mxu1 %v11951_v0  ;;  %v10052_v0 = vld [vmem:[%s13908_s11 + $0x4] ss:$0 sm:$0xff] }
 0xc3c   : > { %11460 = vmatprep.subr.bf16.mxu1 %v12361_v3 }
 0xc3f   : > { %11461 = vmatpush3.bf16.msra.mxu1 %v11953_v6 }
 0xc40   : > { %11462 = vmatprep.subr.bf16.mxu1 %v12361_v3 }
 0xc43   : > { %11463 = vmatpush3.bf16.msra.mxu1 %v11955_v7 }
 0xc44   : > { %11488 = vmatprep.subr.mxu1 %v12361_v3 }
 0xc46   : > { %11465 = vmatmul.mubr.bf16.vlgmr.msra.gmra.mrb[48].mxu1 %v12694_v21 }
 0xc47   : > { %11490 = vmatprep.mubr.msk.f32.mxu1 %vm12362_vm0, %v12361_v3 }
 0xcf7   : > { %v3472_v31 = vpop.f32.mrb[36].mxu0  ;;  %v3393_v47 = vpop.f32.mrb[44].mxu1 }
 0xcf8   : > { %v3552_v32 = vsel %vm1402_vm2, %v3472_v31, -inf  ;;  %v11406_v33 = vpop.f32.mrb[37].mxu0  ;;  %v11400_v48 = vpop.f32.mrb[45].mxu1  ;;  %v3394_v51 = vadd.f32 %v9964_v49, %v3393_v47  ;;  %v11965_v47 = vld [vmem:[%s13907_s7 + $0x138] sm:$0xff]  }
 0xcf9   : > { %3553 = vmax.xlane.f32.xlu0 %v3552_v32  ;;  %v3396_v50 = vpop.f32.mrb[46].mxu1 }
 0xcfa   : > { %v11401_v52 = vpop.f32.mrb[47].mxu1  ;;  %v3397_v53 = vadd.f32 %v9964_v49, %v3396_v50  ;;  %11413 = vmatpush3.msra.mxu0 %v3394_v51 }
 0xcfb   : > { %v3548_v34 = vpop.f32.mrb[38].mxu0  ;;  %11417 = vmatprep.subr.mxu0 %v12361_v3 }
 0xcfc   : > { %v11411_v35 = vpop.f32.mrb[39].mxu0  ;;  %v3555_v36 = vsel %vm1402_vm2, %v3548_v34, -inf }
 0xcfd   : > { %3556 = vmax.xlane.f32.xlu1 %v3555_v36  ;;  %v10000_v35 = vld [vmem:[%s12597_s22 + $0x4] ss:$0 sm:$0xff] }
 0xd19   : > { %v3997_v59 = vpop.f32.mrb[48].mxu1 }
 0xd1a   : > { %v3998_v24 = vadd.f32 %v10026_v56, %v3997_v59  ;;  %v11466_v25 = vpop.f32.mrb[49].mxu1  ;;  %v11976_v59 = vld [vmem:[%s12587_s18 + $0x168] sm:$0xff]  }
 0xd1b   : > { %v4000_v26 = vpop.f32.mrb[50].mxu1  ;;  %v11980_v25 = vld [vmem:[%s12587_s18 + $0x178] sm:$0xff]  }
 0xd1c   : > { %v4001_v27 = vadd.f32 %v10026_v56, %v4000_v26  ;;  %v11467_v28 = vpop.f32.mrb[51].mxu1  ;;  %11489 = vmatpush3.xpose.msk.msra.mxu1 %vm1249_vm1, %v3998_v24  ;;  %v11974_v56 = vld [vmem:[%s12587_s18 + $0x160] sm:$0xff]   ;;  %v11978_v24 = vld [vmem:[%s12587_s18 + $0x170] sm:$0xff]  }
 0xd1d   : > { %11493 = vmatprep.subr.mxu1 %v12361_v3 }
 0xd86   : > { %v3554_v37 = vpop.xlane.xlu0 %3553 }
 0xd87   : > { %v3558_v38 = vsub.f32 %v3472_v31, %v3554_v37 }
 0xd89   : > { %v3560_v39 = vmul.f32 1.442695, %v3558_v38 }
 0xd8a   : > { %v3557_v40 = vpop.xlane.xlu1 %3556 }
 0xd8b   : > { %12194 = vpow2.f32 %v3560_v39  ;;  %v3559_v41 = vsub.f32 %v3548_v34, %v3557_v40 }
 0xd8d   : > { %v3562_v42 = vmul.f32 1.442695, %v3559_v41  ;;  %v11959_v41 = vld [vmem:[%s13907_s7 + $0x108] sm:$0xff]  }
 0xd8f   : > { %12196 = vpow2.f32 %v3562_v42  ;;  %v11960_v42 = vld [vmem:[%s13907_s7 + $0x110] sm:$0xff]  }
 0xd95   : > { %v12195_v43 = vpop.eup %12194 }
 0xd96   : > { %v3564_v44 = vsel %vm1402_vm2, %v12195_v43, 0.0 }
 0xd97   : > { %3565 = vadd.xlane.f32.xlu0 %v3564_v44  ;;  %v11962_v44 = vld [vmem:[%s13907_s7 + $0x120] sm:$0xff]  }
 0xd99   : > { %v12197_v45 = vpop.eup %12196 }
 0xd9a   : > { %v3567_v46 = vsel %vm1402_vm2, %v12197_v45, 0.0 }
 0xd9b   : > { %3568 = vadd.xlane.f32.xlu1 %v3567_v46  ;;  %v11964_v46 = vld [vmem:[%s13907_s7 + $0x130] sm:$0xff]  }
 0xe24   : > { %v3566_v54 = vpop.xlane.xlu0 %3565 }
 0xe25   : > { %12198 = vrcp.f32 %v3566_v54 }
 0xe28   : > { %v3569_v55 = vpop.xlane.xlu1 %3568 }
 0xe29   : > { %12200 = vrcp.f32 %v3569_v55 }
 0xe2f   : > { %v12199_v57 = vpop.eup %12198 }
 0xe30   : > { %v3572_v58 = vmul.f32 %v12199_v57, %v12195_v43  ;;  %v11961_v43 = vld [vmem:[%s13907_s7 + $0x118] sm:$0xff]  }
 0xe32   : > { %11415 = vmatmul.mubr.msk.f32.vlgmr.msra.gmra.mrb[40].mxu0 %vm1402_vm2, %v3572_v58 }
 0xe33   : > { %v12201_v60 = vpop.eup %12200  ;;  %11418 = vmatpush3.msra.mxu0 %v3397_v53  ;;  %11419 = vmatprep.mubr.msk.f32.mxu0 %vm12362_vm0, %v12361_v3 }
 0xe34   : > { %v3573_v61 = vmul.f32 %v12201_v60, %v12197_v45  ;;  %11422 = vmatprep.subr.bf16.mxu0 %v12361_v3  ;;  %v11963_v45 = vld [vmem:[%s13907_s7 + $0x128] sm:$0xff]  }
 0xe36   : > { %11420 = vmatmul.mubr.msk.f32.vlgmr.msra.gmra.mrb[42].mxu0 %vm1402_vm2, %v3573_v61 }
 0xe37   : > { %11424 = vmatprep.mubr.msk.bf16.mxu0 %vm12362_vm0, %v12361_v3  ;;  %11423 = vmatpush3.bf16.msra.mxu0 %v11942_v1 }
 0xe38   : > { %11428 = vmatprep.subr.bf16.mxu0 %v12361_v3 }
 0xf05   : > { %v3643_v8 = vpop.f32.mrb[40].mxu0 }
 0xf06   : > { %v11416_v9 = vpop.f32.mrb[41].mxu0 }
 0xf09   : > { %v3716_v10 = vpop.f32.mrb[42].mxu0 }
 0xf0a   : > { %v3720_v13 = vpack.c.bf16 %v3716_v10, %v3643_v8  ;;  %v11421_v14 = vpop.f32.mrb[43].mxu0 }
 0xf0c   : > { %11425 = vmatmul.mubr.msk.bf16.vlgmr.msra.gmra.mrb[44].mxu0 %vm1249_vm1, %v3720_v13 }
 0xf0d   : > { %11429 = vmatpush3.bf16.msra.mxu0 %v11944_v11  ;;  %11444 = vmatprep.mubr.msk.bf16.mxu0 %vm12362_vm0, %v12361_v3 }
 0xf0e   : > { %11430 = vmatprep.subr.bf16.mxu0 %v12361_v3 }
 0xf11   : > { %11431 = vmatpush3.bf16.msra.mxu0 %v11946_v16 }
 0xf12   : > { %11432 = vmatprep.subr.bf16.mxu0 %v12361_v3 }
 0xf15   : > { %11433 = vmatpush3.bf16.msra.mxu0 %v11948_v17 }
 0xf16   : > { %11434 = vmatprep.subr.bf16.mxu0 %v12361_v3 }
 0xf19   : > { %11435 = vmatpush3.bf16.msra.mxu0 %v11950_v18  ;;  %v11966_v18 = vld [vmem:[%s12587_s18 + $0x140] sm:$0xff]  }
 0xf1a   : > { %11436 = vmatprep.subr.bf16.mxu0 %v12361_v3 }
 0xf1d   : > { %11437 = vmatpush3.bf16.msra.mxu0 %v11952_v19  ;;  %v11967_v19 = vld [vmem:[%s12617_s30 + $0x20] sm:$0xff]  }
 0xf1e   : > { %11438 = vmatprep.subr.bf16.mxu0 %v12361_v3 }
 0xf21   : > { %11439 = vmatpush3.bf16.msra.mxu0 %v11954_v20  ;;  %v11968_v20 = vld [vmem:[%s12587_s18 + $0x148] sm:$0xff]  }
 0xf22   : > { %11440 = vmatprep.subr.bf16.mxu0 %v12361_v3 }
 0xf25   : > { %11441 = vmatpush3.bf16.msra.mxu0 %v11956_v22  ;;  %v11970_v22 = vld [vmem:[%s12587_s18 + $0x150] sm:$0xff]  }
 0xf26   : > { %11442 = vmatprep.subr.bf16.mxu0 %v12361_v3 }
 0xf29   : > { %11443 = vmatpush3.bf16.msra.mxu0 %v11957_v23  ;;  %v11972_v23 = vld [vmem:[%s12587_s18 + $0x158] sm:$0xff]  }
 0xf2a   : > { %11468 = vmatprep.subr.bf16.mxu0 %v12361_v3 }
 0xf2c   : > { %11445 = vmatmul.mubr.bf16.vlgmr.msra.gmra.mrb[48].mxu0 %v12694_v21 }
 0xf2d   : > { %11484 = vmatprep.mubr.msk.bf16.mxu0 %vm12362_vm0, %v12361_v3 }
 0xfdf   : > { %v3767_v29 = vpop.f32.mrb[44].mxu0 }
 0xfe0   : > { %v13072_v30 = vadd.f32 %v3767_v29, %v12979_v12  ;;  %v11426_v31 = vpop.f32.mrb[45].mxu0  ;;  %v11969_v29 = vld [vmem:[%s12582_s26 + $0x140] sm:$0xff]  }
 0xfe1   : > { %v3770_v32 = vpop.f32.mrb[46].mxu0 }
 0xfe2   : > { %v13075_v33 = vadd.f32 %v3770_v32, %v12982_v15  ;;  %v11427_v34 = vpop.f32.mrb[47].mxu0  ;;  %v11958_v15 = vld [vmem:[%s13907_s7 + $0x100] sm:$0xff]  }
 0xfe3   : > { %11469 = vmatpush3.bf16.msra.mxu0 %v11958_v15  ;;  %v11971_v34 = vld [vmem:[%s12582_s26 + $0x148] sm:$0xff]  }
 0xfe4   : > { %11470 = vmatprep.subr.bf16.mxu0 %v12361_v3 }
 0xfe7   : > { %11471 = vmatpush3.bf16.msra.mxu0 %v11959_v41 }
 0xfe8   : > { %11472 = vmatprep.subr.bf16.mxu0 %v12361_v3 }
 0xfeb   : > { %11473 = vmatpush3.bf16.msra.mxu0 %v11960_v42 }
 0xfec   : > { %11474 = vmatprep.subr.bf16.mxu0 %v12361_v3 }
 0xfef   : > { %11475 = vmatpush3.bf16.msra.mxu0 %v11961_v43 }
 0xff0   : > { %11476 = vmatprep.subr.bf16.mxu0 %v12361_v3 }
 0xff3   : > { %11477 = vmatpush3.bf16.msra.mxu0 %v11962_v44 }
 0xff4   : > { %11478 = vmatprep.subr.bf16.mxu0 %v12361_v3 }
 0xff7   : > { %11479 = vmatpush3.bf16.msra.mxu0 %v11963_v45 }
 0xff8   : > { %11480 = vmatprep.subr.bf16.mxu0 %v12361_v3 }
 0xffb   : > { %11481 = vmatpush3.bf16.msra.mxu0 %v11964_v46 }
 0xffc   : > { %11482 = vmatprep.subr.bf16.mxu0 %v12361_v3 }
 0xfff   : > { %v3883_v36 = vpop.f32.mrb[48].mxu0  ;;  %11483 = vmatpush3.bf16.msra.mxu0 %v11965_v47 }
0x1000   : > { %v3884_v37 = vadd.f32 %v10000_v35, %v3883_v36  ;;  %v11446_v38 = vpop.f32.mrb[49].mxu0  ;;  %11534 = vmatprep.subr.bf16.mxu0 %v12361_v3  ;;  %v11975_v36 = vld [vmem:[%s12582_s26 + $0x158] sm:$0xff]  }
0x1001   : > { %v3886_v39 = vpop.f32.mrb[50].mxu0  ;;  %v11979_v38 = vld [vmem:[%s12582_s26 + $0x168] sm:$0xff]  }
0x1002   : > { %11491 = vmatmul.mubr.msk.f32.vlgmr.msra.gmra.mrb[52].mxu1 %vm1249_vm1, %v3884_v37  ;;  %v11447_v40 = vpop.f32.mrb[51].mxu0  ;;  %v3887_v12 = vadd.f32 %v10000_v35, %v3886_v39  ;;  %11485 = vmatmul.mubr.bf16.vlgmr.msra.gmra.mrb[52].mxu0 %v12694_v21  ;;  %v11973_v35 = vld [vmem:[%s12582_s26 + $0x150] sm:$0xff]   ;;  %v11977_v37 = vld [vmem:[%s12582_s26 + $0x160] sm:$0xff]  }
0x1003   : > { %11494 = vmatpush3.xpose.msk.msra.mxu1 %vm1249_vm1, %v4001_v27  ;;  %11495 = vmatprep.mubr.msk.f32.mxu1 %vm12362_vm0, %v12361_v3  ;;  %v11981_v39 = vld [vmem:[%s12582_s26 + $0x170] sm:$0xff]   ;;  %v11982_v40 = vld [vmem:[%s12582_s26 + $0x178] sm:$0xff]  }
0x1004   : > { %11498 = vmatprep.subr.mxu1 %v12361_v3  ;;  %11550 = vmatprep.mubr.msk.bf16.mxu0 %vm12362_vm0, %v12361_v3 }
0x1005   : > { %11535 = vmatpush3.bf16.msra.mxu0 %v11966_v18 }
0x1006   : > { %11496 = vmatmul.mubr.msk.f32.vlgmr.msra.gmra.mrb[54].mxu1 %vm1249_vm1, %v3887_v12  ;;  %11536 = vmatprep.subr.bf16.mxu0 %v12361_v3  ;;  %v10114_v12 = vld [vmem:[%s12602_s17 + $0x5] ss:$0 sm:$0xff] }
0x1007   : > { %11500 = vmatprep.mubr.msk.f32.mxu1 %vm12362_vm0, %v12361_v3 }
0x1009   : > { %11537 = vmatpush3.bf16.msra.mxu0 %v11968_v20 }
0x100a   : > { %11538 = vmatprep.subr.bf16.mxu0 %v12361_v3 }
0x100d   : > { %11539 = vmatpush3.bf16.msra.mxu0 %v11970_v22 }
0x100e   : > { %11540 = vmatprep.subr.bf16.mxu0 %v12361_v3 }
0x1011   : > { %11541 = vmatpush3.bf16.msra.mxu0 %v11972_v23 }
0x1012   : > { %11542 = vmatprep.subr.bf16.mxu0 %v12361_v3 }
0x1015   : > { %11543 = vmatpush3.bf16.msra.mxu0 %v11974_v56 }
0x1016   : > { %11544 = vmatprep.subr.bf16.mxu0 %v12361_v3 }
0x1019   : > { %11545 = vmatpush3.bf16.msra.mxu0 %v11976_v59  ;;  %v10140_v59 = vld [vmem:[%s13908_s11 + $0x5] ss:$0 sm:$0xff] }
0x101a   : > { %11546 = vmatprep.subr.bf16.mxu0 %v12361_v3 }
0x101d   : > { %11547 = vmatpush3.bf16.msra.mxu0 %v11978_v24 }
0x101e   : > { %11548 = vmatprep.subr.bf16.mxu0 %v12361_v3 }
0x1021   : > { %11549 = vmatpush3.bf16.msra.mxu0 %v11980_v25 }
0x1022   : > { %11574 = vmatprep.subr.mxu0 %v12361_v3 }
0x1024   : > { %11551 = vmatmul.mubr.bf16.vlgmr.msra.gmra.mrb[56].mxu0 %v12694_v21 }
0x1025   : > { %11576 = vmatprep.mubr.msk.f32.mxu0 %vm12362_vm0, %v12361_v3 }
0x10d5   : > { %v4190_v48 = vpop.f32.mrb[52].mxu1  ;;  %v4111_v5 = vpop.f32.mrb[52].mxu0 }
0x10d6   : > { %v4270_v49 = vsel %vm1402_vm2, %v4190_v48, -inf  ;;  %v11492_v50 = vpop.f32.mrb[53].mxu1  ;;  %v11486_v62 = vpop.f32.mrb[53].mxu0  ;;  %v4112_v7 = vadd.f32 %v10052_v0, %v4111_v5  ;;  %v11990_v5 = vld [vmem:[%s13907_s7 + $0x178] sm:$0xff]  }
0x10d7   : > { %4271 = vmax.xlane.f32.xlu0 %v4270_v49  ;;  %v4114_v6 = vpop.f32.mrb[54].mxu0 }
0x10d8   : > { %v11487_v8 = vpop.f32.mrb[55].mxu0  ;;  %v4115_v9 = vadd.f32 %v10052_v0, %v4114_v6  ;;  %11499 = vmatpush3.msra.mxu1 %v4112_v7 }
0x10d9   : > { %v4266_v51 = vpop.f32.mrb[54].mxu1  ;;  %11503 = vmatprep.subr.mxu1 %v12361_v3 }
0x10da   : > { %v11497_v52 = vpop.f32.mrb[55].mxu1  ;;  %v4273_v53 = vsel %vm1402_vm2, %v4266_v51, -inf }
0x10db   : > { %4274 = vmax.xlane.f32.xlu1 %v4273_v53  ;;  %v10088_v52 = vld [vmem:[%s12597_s22 + $0x5] ss:$0 sm:$0xff] }
0x10f7   : > { %v4715_v15 = vpop.f32.mrb[56].mxu0 }
0x10f8   : > { %v4716_v41 = vadd.f32 %v10114_v12, %v4715_v15  ;;  %v11552_v42 = vpop.f32.mrb[57].mxu0  ;;  %v12001_v15 = vld [vmem:[%s12587_s18 + $0x1a8] sm:$0xff]  }
0x10f9   : > { %v4718_v43 = vpop.f32.mrb[58].mxu0  ;;  %v12005_v42 = vld [vmem:[%s12587_s18 + $0x1b8] sm:$0xff]  }
0x10fa   : > { %v4719_v44 = vadd.f32 %v10114_v12, %v4718_v43  ;;  %v11553_v45 = vpop.f32.mrb[59].mxu0  ;;  %11575 = vmatpush3.xpose.msk.msra.mxu0 %vm1249_vm1, %v4716_v41  ;;  %v11999_v12 = vld [vmem:[%s12587_s18 + $0x1a0] sm:$0xff]   ;;  %v12003_v41 = vld [vmem:[%s12587_s18 + $0x1b0] sm:$0xff]  }
0x10fb   : > { %11579 = vmatprep.subr.mxu0 %v12361_v3 }
0x1164   : > { %v4272_v54 = vpop.xlane.xlu0 %4271 }
0x1165   : > { %v4276_v55 = vsub.f32 %v4190_v48, %v4272_v54 }
0x1167   : > { %v4278_v57 = vmul.f32 1.442695, %v4276_v55 }
0x1168   : > { %v4275_v58 = vpop.xlane.xlu1 %4274 }
0x1169   : > { %12202 = vpow2.f32 %v4278_v57  ;;  %v4277_v60 = vsub.f32 %v4266_v51, %v4275_v58 }
0x116b   : > { %v4280_v61 = vmul.f32 1.442695, %v4277_v60  ;;  %v11984_v60 = vld [vmem:[%s13907_s7 + $0x148] sm:$0xff]  }
0x116d   : > { %12204 = vpow2.f32 %v4280_v61  ;;  %v11985_v61 = vld [vmem:[%s13907_s7 + $0x150] sm:$0xff]  }
0x1173   : > { %v12203_v63 = vpop.eup %12202 }
0x1174   : > { %v4282_v1 = vsel %vm1402_vm2, %v12203_v63, 0.0 }
0x1175   : > { %4283 = vadd.xlane.f32.xlu0 %v4282_v1  ;;  %v11987_v1 = vld [vmem:[%s13907_s7 + $0x160] sm:$0xff]  }
0x1177   : > { %v12205_v2 = vpop.eup %12204 }
0x1178   : > { %v4285_v4 = vsel %vm1402_vm2, %v12205_v2, 0.0 }
0x1179   : > { %4286 = vadd.xlane.f32.xlu1 %v4285_v4  ;;  %v11989_v4 = vld [vmem:[%s13907_s7 + $0x170] sm:$0xff]  }
0x1202   : > { %v4284_v10 = vpop.xlane.xlu0 %4283 }
0x1203   : > { %12206 = vrcp.f32 %v4284_v10 }
0x1206   : > { %v4287_v11 = vpop.xlane.xlu1 %4286 }
0x1207   : > { %12208 = vrcp.f32 %v4287_v11 }
0x120d   : > { %v12207_v13 = vpop.eup %12206 }
0x120e   : > { %v4290_v14 = vmul.f32 %v12207_v13, %v12203_v63  ;;  %v11986_v63 = vld [vmem:[%s13907_s7 + $0x158] sm:$0xff]  }
0x1210   : > { %11501 = vmatmul.mubr.msk.f32.vlgmr.msra.gmra.mrb[56].mxu1 %vm1402_vm2, %v4290_v14 }
0x1211   : > { %v12209_v16 = vpop.eup %12208  ;;  %11504 = vmatpush3.msra.mxu1 %v4115_v9  ;;  %11505 = vmatprep.mubr.msk.f32.mxu1 %vm12362_vm0, %v12361_v3 }
0x1212   : > { %v4291_v17 = vmul.f32 %v12209_v16, %v12205_v2  ;;  %11508 = vmatprep.subr.bf16.mxu1 %v12361_v3  ;;  %v11988_v2 = vld [vmem:[%s13907_s7 + $0x168] sm:$0xff]  }
0x1214   : > { %11506 = vmatmul.mubr.msk.f32.vlgmr.msra.gmra.mrb[58].mxu1 %vm1402_vm2, %v4291_v17 }
0x1215   : > { %11510 = vmatprep.mubr.msk.bf16.mxu1 %vm12362_vm0, %v12361_v3  ;;  %11509 = vmatpush3.bf16.msra.mxu1 %v11967_v19 }
0x1216   : > { %11514 = vmatprep.subr.bf16.mxu1 %v12361_v3 }
0x12e3   : > { %v4361_v26 = vpop.f32.mrb[56].mxu1 }
0x12e4   : > { %v11502_v27 = vpop.f32.mrb[57].mxu1 }
0x12e7   : > { %v4434_v28 = vpop.f32.mrb[58].mxu1 }
0x12e8   : > { %v4438_v31 = vpack.c.bf16 %v4434_v28, %v4361_v26  ;;  %v11507_v32 = vpop.f32.mrb[59].mxu1 }
0x12ea   : > { %11511 = vmatmul.mubr.msk.bf16.vlgmr.msra.gmra.mrb[60].mxu1 %vm1249_vm1, %v4438_v31 }
0x12eb   : > { %11515 = vmatpush3.bf16.msra.mxu1 %v11969_v29  ;;  %11530 = vmatprep.mubr.msk.bf16.mxu1 %vm12362_vm0, %v12361_v3 }
0x12ec   : > { %11516 = vmatprep.subr.bf16.mxu1 %v12361_v3 }
0x12ef   : > { %11517 = vmatpush3.bf16.msra.mxu1 %v11971_v34 }
0x12f0   : > { %11518 = vmatprep.subr.bf16.mxu1 %v12361_v3 }
0x12f3   : > { %11519 = vmatpush3.bf16.msra.mxu1 %v11973_v35 }
0x12f4   : > { %11520 = vmatprep.subr.bf16.mxu1 %v12361_v3 }
0x12f7   : > { %11521 = vmatpush3.bf16.msra.mxu1 %v11975_v36  ;;  %v11991_v36 = vld [vmem:[%s12587_s18 + $0x180] sm:$0xff]  }
0x12f8   : > { %11522 = vmatprep.subr.bf16.mxu1 %v12361_v3 }
0x12fb   : > { %11523 = vmatpush3.bf16.msra.mxu1 %v11977_v37  ;;  %v11992_v37 = vld [vmem:[%s12617_s30 + $0x28] sm:$0xff]  }
0x12fc   : > { %11524 = vmatprep.subr.bf16.mxu1 %v12361_v3 }
0x12ff   : > { %11525 = vmatpush3.bf16.msra.mxu1 %v11979_v38  ;;  %v11993_v38 = vld [vmem:[%s12587_s18 + $0x188] sm:$0xff]  }
0x1300   : > { %11526 = vmatprep.subr.bf16.mxu1 %v12361_v3 }
0x1303   : > { %11527 = vmatpush3.bf16.msra.mxu1 %v11981_v39  ;;  %v11995_v39 = vld [vmem:[%s12587_s18 + $0x190] sm:$0xff]  }
0x1304   : > { %11528 = vmatprep.subr.bf16.mxu1 %v12361_v3 }
0x1307   : > { %11529 = vmatpush3.bf16.msra.mxu1 %v11982_v40  ;;  %v11997_v40 = vld [vmem:[%s12587_s18 + $0x198] sm:$0xff]  }
0x1308   : > { %11554 = vmatprep.subr.bf16.mxu1 %v12361_v3 }
0x130a   : > { %11531 = vmatmul.mubr.bf16.vlgmr.msra.gmra.mrb[64].mxu1 %v12694_v21 }
0x130b   : > { %11570 = vmatprep.mubr.msk.bf16.mxu1 %vm12362_vm0, %v12361_v3 }
0x13bd   : > { %v4485_v46 = vpop.f32.mrb[60].mxu1 }
0x13be   : > { %v13165_v47 = vadd.f32 %v4485_v46, %v13072_v30  ;;  %v11512_v48 = vpop.f32.mrb[61].mxu1  ;;  %v11994_v46 = vld [vmem:[%s12582_s26 + $0x180] sm:$0xff]  }
0x13bf   : > { %v4488_v49 = vpop.f32.mrb[62].mxu1 }
0x13c0   : > { %v13168_v50 = vadd.f32 %v4488_v49, %v13075_v33  ;;  %v11513_v51 = vpop.f32.mrb[63].mxu1  ;;  %v11983_v33 = vld [vmem:[%s13907_s7 + $0x140] sm:$0xff]  }
0x13c1   : > { %11555 = vmatpush3.bf16.msra.mxu1 %v11983_v33  ;;  %v11996_v51 = vld [vmem:[%s12582_s26 + $0x188] sm:$0xff]  }
0x13c2   : > { %11556 = vmatprep.subr.bf16.mxu1 %v12361_v3 }
0x13c5   : > { %11557 = vmatpush3.bf16.msra.mxu1 %v11984_v60 }
0x13c6   : > { %11558 = vmatprep.subr.bf16.mxu1 %v12361_v3 }
0x13c9   : > { %11559 = vmatpush3.bf16.msra.mxu1 %v11985_v61 }
0x13ca   : > { %11560 = vmatprep.subr.bf16.mxu1 %v12361_v3 }
0x13cd   : > { %11561 = vmatpush3.bf16.msra.mxu1 %v11986_v63 }
0x13ce   : > { %11562 = vmatprep.subr.bf16.mxu1 %v12361_v3 }
0x13d1   : > { %11563 = vmatpush3.bf16.msra.mxu1 %v11987_v1 }
0x13d2   : > { %11564 = vmatprep.subr.bf16.mxu1 %v12361_v3 }
0x13d5   : > { %11565 = vmatpush3.bf16.msra.mxu1 %v11988_v2 }
0x13d6   : > { %11566 = vmatprep.subr.bf16.mxu1 %v12361_v3 }
0x13d9   : > { %11567 = vmatpush3.bf16.msra.mxu1 %v11989_v4 }
0x13da   : > { %11568 = vmatprep.subr.bf16.mxu1 %v12361_v3 }
0x13dd   : > { %v4601_v53 = vpop.f32.mrb[64].mxu1  ;;  %11569 = vmatpush3.bf16.msra.mxu1 %v11990_v5 }
0x13de   : > { %v4602_v54 = vadd.f32 %v10088_v52, %v4601_v53  ;;  %v11532_v55 = vpop.f32.mrb[65].mxu1  ;;  %11620 = vmatprep.subr.bf16.mxu1 %v12361_v3  ;;  %v12000_v53 = vld [vmem:[%s12582_s26 + $0x198] sm:$0xff]  }
0x13df   : > { %v4604_v57 = vpop.f32.mrb[66].mxu1  ;;  %v12004_v55 = vld [vmem:[%s12582_s26 + $0x1a8] sm:$0xff]  }
0x13e0   : > { %11577 = vmatmul.mubr.msk.f32.vlgmr.msra.gmra.mrb[60].mxu0 %vm1249_vm1, %v4602_v54  ;;  %v11533_v58 = vpop.f32.mrb[67].mxu1  ;;  %v4605_v30 = vadd.f32 %v10088_v52, %v4604_v57  ;;  %11571 = vmatmul.mubr.bf16.vlgmr.msra.gmra.mrb[68].mxu1 %v12694_v21  ;;  %v11998_v52 = vld [vmem:[%s12582_s26 + $0x190] sm:$0xff]   ;;  %v12002_v54 = vld [vmem:[%s12582_s26 + $0x1a0] sm:$0xff]  }
0x13e1   : > { %11580 = vmatpush3.xpose.msk.msra.mxu0 %vm1249_vm1, %v4719_v44  ;;  %11581 = vmatprep.mubr.msk.f32.mxu0 %vm12362_vm0, %v12361_v3  ;;  %v12006_v57 = vld [vmem:[%s12582_s26 + $0x1b0] sm:$0xff]   ;;  %v12007_v58 = vld [vmem:[%s12582_s26 + $0x1b8] sm:$0xff]  }
0x13e2   : > { %11584 = vmatprep.subr.mxu0 %v12361_v3  ;;  %11636 = vmatprep.mubr.msk.bf16.mxu1 %vm12362_vm0, %v12361_v3 }
0x13e3   : > { %11621 = vmatpush3.bf16.msra.mxu1 %v11991_v36 }
0x13e4   : > { %11582 = vmatmul.mubr.msk.f32.vlgmr.msra.gmra.mrb[62].mxu0 %vm1249_vm1, %v4605_v30  ;;  %11622 = vmatprep.subr.bf16.mxu1 %v12361_v3  ;;  %v10202_v30 = vld [vmem:[%s12602_s17 + $0x6] ss:$0 sm:$0xff] }
0x13e5   : > { %11586 = vmatprep.mubr.msk.f32.mxu0 %vm12362_vm0, %v12361_v3 }
0x13e7   : > { %11623 = vmatpush3.bf16.msra.mxu1 %v11993_v38 }
0x13e8   : > { %11624 = vmatprep.subr.bf16.mxu1 %v12361_v3 }
0x13eb   : > { %11625 = vmatpush3.bf16.msra.mxu1 %v11995_v39 }
0x13ec   : > { %11626 = vmatprep.subr.bf16.mxu1 %v12361_v3 }
0x13ef   : > { %11627 = vmatpush3.bf16.msra.mxu1 %v11997_v40 }
0x13f0   : > { %11628 = vmatprep.subr.bf16.mxu1 %v12361_v3 }
0x13f3   : > { %11629 = vmatpush3.bf16.msra.mxu1 %v11999_v12 }
0x13f4   : > { %11630 = vmatprep.subr.bf16.mxu1 %v12361_v3 }
0x13f7   : > { %11631 = vmatpush3.bf16.msra.mxu1 %v12001_v15  ;;  %v10228_v15 = vld [vmem:[%s13908_s11 + $0x6] ss:$0 sm:$0xff] }
0x13f8   : > { %11632 = vmatprep.subr.bf16.mxu1 %v12361_v3 }
0x13fb   : > { %11633 = vmatpush3.bf16.msra.mxu1 %v12003_v41 }
0x13fc   : > { %11634 = vmatprep.subr.bf16.mxu1 %v12361_v3 }
0x13ff   : > { %11635 = vmatpush3.bf16.msra.mxu1 %v12005_v42 }
0x1400   : > { %11660 = vmatprep.subr.mxu1 %v12361_v3 }
0x1402   : > { %11637 = vmatmul.mubr.bf16.vlgmr.msra.gmra.mrb[72].mxu1 %v12694_v21 }
0x1403   : > { %11662 = vmatprep.mubr.msk.f32.mxu1 %vm12362_vm0, %v12361_v3 }
0x14b3   : > { %v4908_v62 = vpop.f32.mrb[60].mxu0  ;;  %v4829_v23 = vpop.f32.mrb[68].mxu1 }
0x14b4   : > { %v4988_v0 = vsel %vm1402_vm2, %v4908_v62, -inf  ;;  %v11578_v6 = vpop.f32.mrb[61].mxu0  ;;  %v11572_v56 = vpop.f32.mrb[69].mxu1  ;;  %v4830_v25 = vadd.f32 %v10140_v59, %v4829_v23  ;;  %v12015_v23 = vld [vmem:[%s13907_s7 + $0x1b8] sm:$0xff]  }
0x14b5   : > { %4989 = vmax.xlane.f32.xlu0 %v4988_v0  ;;  %v4832_v24 = vpop.f32.mrb[70].mxu1 }
0x14b6   : > { %v11573_v26 = vpop.f32.mrb[71].mxu1  ;;  %v4833_v27 = vadd.f32 %v10140_v59, %v4832_v24  ;;  %11585 = vmatpush3.msra.mxu0 %v4830_v25 }
0x14b7   : > { %v4984_v7 = vpop.f32.mrb[62].mxu0  ;;  %11589 = vmatprep.subr.mxu0 %v12361_v3 }
0x14b8   : > { %v11583_v8 = vpop.f32.mrb[63].mxu0  ;;  %v4991_v9 = vsel %vm1402_vm2, %v4984_v7, -inf }
0x14b9   : > { %4992 = vmax.xlane.f32.xlu1 %v4991_v9  ;;  %v10176_v8 = vld [vmem:[%s12597_s22 + $0x6] ss:$0 sm:$0xff] }
0x14d5   : > { %v5433_v33 = vpop.f32.mrb[72].mxu1 }
0x14d6   : > { %v5434_v60 = vadd.f32 %v10202_v30, %v5433_v33  ;;  %v11638_v61 = vpop.f32.mrb[73].mxu1  ;;  %v12026_v33 = vld [vmem:[%s12587_s18 + $0x1e8] sm:$0xff]  }
0x14d7   : > { %v5436_v63 = vpop.f32.mrb[74].mxu1  ;;  %v12030_v61 = vld [vmem:[%s12587_s18 + $0x1f8] sm:$0xff]  }
0x14d8   : > { %v5437_v1 = vadd.f32 %v10202_v30, %v5436_v63  ;;  %v11639_v2 = vpop.f32.mrb[75].mxu1  ;;  %11661 = vmatpush3.xpose.msk.msra.mxu1 %vm1249_vm1, %v5434_v60  ;;  %v12024_v30 = vld [vmem:[%s12587_s18 + $0x1e0] sm:$0xff]   ;;  %v12028_v60 = vld [vmem:[%s12587_s18 + $0x1f0] sm:$0xff]  }
0x14d9   : > { %11665 = vmatprep.subr.mxu1 %v12361_v3 }
0x1542   : > { %v4990_v10 = vpop.xlane.xlu0 %4989 }
0x1543   : > { %v4994_v11 = vsub.f32 %v4908_v62, %v4990_v10 }
0x1545   : > { %v4996_v13 = vmul.f32 1.442695, %v4994_v11 }
0x1546   : > { %v4993_v14 = vpop.xlane.xlu1 %4992 }
0x1547   : > { %12210 = vpow2.f32 %v4996_v13  ;;  %v4995_v16 = vsub.f32 %v4984_v7, %v4993_v14 }
0x1549   : > { %v4998_v17 = vmul.f32 1.442695, %v4995_v16  ;;  %v12009_v16 = vld [vmem:[%s13907_s7 + $0x188] sm:$0xff]  }
0x154b   : > { %12212 = vpow2.f32 %v4998_v17  ;;  %v12010_v17 = vld [vmem:[%s13907_s7 + $0x190] sm:$0xff]  }
0x1551   : > { %v12211_v18 = vpop.eup %12210 }
0x1552   : > { %v5000_v19 = vsel %vm1402_vm2, %v12211_v18, 0.0 }
0x1553   : > { %5001 = vadd.xlane.f32.xlu0 %v5000_v19  ;;  %v12012_v19 = vld [vmem:[%s13907_s7 + $0x1a0] sm:$0xff]  }
0x1555   : > { %v12213_v20 = vpop.eup %12212 }
0x1556   : > { %v5003_v22 = vsel %vm1402_vm2, %v12213_v20, 0.0 }
0x1557   : > { %5004 = vadd.xlane.f32.xlu1 %v5003_v22  ;;  %v12014_v22 = vld [vmem:[%s13907_s7 + $0x1b0] sm:$0xff]  }
0x15e0   : > { %v5002_v28 = vpop.xlane.xlu0 %5001 }
0x15e1   : > { %12214 = vrcp.f32 %v5002_v28 }
0x15e4   : > { %v5005_v29 = vpop.xlane.xlu1 %5004 }
0x15e5   : > { %12216 = vrcp.f32 %v5005_v29 }
0x15eb   : > { %v12215_v31 = vpop.eup %12214 }
0x15ec   : > { %v5008_v32 = vmul.f32 %v12215_v31, %v12211_v18  ;;  %v12011_v18 = vld [vmem:[%s13907_s7 + $0x198] sm:$0xff]  }
0x15ee   : > { %11587 = vmatmul.mubr.msk.f32.vlgmr.msra.gmra.mrb[64].mxu0 %vm1402_vm2, %v5008_v32 }
0x15ef   : > { %v12217_v34 = vpop.eup %12216  ;;  %11590 = vmatpush3.msra.mxu0 %v4833_v27  ;;  %11591 = vmatprep.mubr.msk.f32.mxu0 %vm12362_vm0, %v12361_v3 }
0x15f0   : > { %v5009_v35 = vmul.f32 %v12217_v34, %v12213_v20  ;;  %11594 = vmatprep.subr.bf16.mxu0 %v12361_v3  ;;  %v12013_v20 = vld [vmem:[%s13907_s7 + $0x1a8] sm:$0xff]  }
0x15f2   : > { %11592 = vmatmul.mubr.msk.f32.vlgmr.msra.gmra.mrb[66].mxu0 %vm1402_vm2, %v5009_v35 }
0x15f3   : > { %11596 = vmatprep.mubr.msk.bf16.mxu0 %vm12362_vm0, %v12361_v3  ;;  %11595 = vmatpush3.bf16.msra.mxu0 %v11992_v37 }
0x15f4   : > { %11600 = vmatprep.subr.bf16.mxu0 %v12361_v3 }
0x16c1   : > { %v5079_v43 = vpop.f32.mrb[64].mxu0 }
0x16c2   : > { %v11588_v44 = vpop.f32.mrb[65].mxu0 }
0x16c5   : > { %v5152_v45 = vpop.f32.mrb[66].mxu0 }
0x16c6   : > { %v5156_v48 = vpack.c.bf16 %v5152_v45, %v5079_v43  ;;  %v11593_v49 = vpop.f32.mrb[67].mxu0 }
0x16c8   : > { %11597 = vmatmul.mubr.msk.bf16.vlgmr.msra.gmra.mrb[68].mxu0 %vm1249_vm1, %v5156_v48 }
0x16c9   : > { %11601 = vmatpush3.bf16.msra.mxu0 %v11994_v46  ;;  %11616 = vmatprep.mubr.msk.bf16.mxu0 %vm12362_vm0, %v12361_v3 }
0x16ca   : > { %11602 = vmatprep.subr.bf16.mxu0 %v12361_v3 }
0x16cd   : > { %11603 = vmatpush3.bf16.msra.mxu0 %v11996_v51 }
0x16ce   : > { %11604 = vmatprep.subr.bf16.mxu0 %v12361_v3 }
0x16d1   : > { %11605 = vmatpush3.bf16.msra.mxu0 %v11998_v52 }
0x16d2   : > { %11606 = vmatprep.subr.bf16.mxu0 %v12361_v3 }
0x16d5   : > { %11607 = vmatpush3.bf16.msra.mxu0 %v12000_v53  ;;  %v12016_v53 = vld [vmem:[%s12587_s18 + $0x1c0] sm:$0xff]  }
0x16d6   : > { %11608 = vmatprep.subr.bf16.mxu0 %v12361_v3 }
0x16d9   : > { %11609 = vmatpush3.bf16.msra.mxu0 %v12002_v54  ;;  %v12017_v54 = vld [vmem:[%s12617_s30 + $0x30] sm:$0xff]  }
0x16da   : > { %11610 = vmatprep.subr.bf16.mxu0 %v12361_v3 }
0x16dd   : > { %11611 = vmatpush3.bf16.msra.mxu0 %v12004_v55  ;;  %v12018_v55 = vld [vmem:[%s12587_s18 + $0x1c8] sm:$0xff]  }
0x16de   : > { %11612 = vmatprep.subr.bf16.mxu0 %v12361_v3 }
0x16e1   : > { %11613 = vmatpush3.bf16.msra.mxu0 %v12006_v57  ;;  %v12020_v57 = vld [vmem:[%s12587_s18 + $0x1d0] sm:$0xff]  }
0x16e2   : > { %11614 = vmatprep.subr.bf16.mxu0 %v12361_v3 }
0x16e5   : > { %11615 = vmatpush3.bf16.msra.mxu0 %v12007_v58  ;;  %v12022_v58 = vld [vmem:[%s12587_s18 + $0x1d8] sm:$0xff]   ;;  %s13909_s18 = scalar_lea.vmem %s13846_s8, %s12575_s16 }
0x16e6   : > { %11640 = vmatprep.subr.bf16.mxu0 %v12361_v3 }
0x16e8   : > { %11617 = vmatmul.mubr.bf16.vlgmr.msra.gmra.mrb[72].mxu0 %v12694_v21 }
0x16e9   : > { %11656 = vmatprep.mubr.msk.bf16.mxu0 %vm12362_vm0, %v12361_v3 }
0x179b   : > { %v5203_v4 = vpop.f32.mrb[68].mxu0 }
0x179c   : > { %v13258_v5 = vadd.f32 %v5203_v4, %v13165_v47  ;;  %v11598_v62 = vpop.f32.mrb[69].mxu0  ;;  %v12019_v4 = vld [vmem:[%s12582_s26 + $0x1c0] sm:$0xff]  }
0x179d   : > { %v5206_v0 = vpop.f32.mrb[70].mxu0 }
0x179e   : > { %v13261_v6 = vadd.f32 %v5206_v0, %v13168_v50  ;;  %v11599_v7 = vpop.f32.mrb[71].mxu0  ;;  %v12008_v50 = vld [vmem:[%s13907_s7 + $0x180] sm:$0xff]  }
0x179f   : > { %11641 = vmatpush3.bf16.msra.mxu0 %v12008_v50  ;;  %v12021_v7 = vld [vmem:[%s12582_s26 + $0x1c8] sm:$0xff]  }
0x17a0   : > { %11642 = vmatprep.subr.bf16.mxu0 %v12361_v3 }
0x17a3   : > { %11643 = vmatpush3.bf16.msra.mxu0 %v12009_v16 }
0x17a4   : > { %11644 = vmatprep.subr.bf16.mxu0 %v12361_v3 }
0x17a7   : > { %11645 = vmatpush3.bf16.msra.mxu0 %v12010_v17 }
0x17a8   : > { %11646 = vmatprep.subr.bf16.mxu0 %v12361_v3 }
0x17ab   : > { %11647 = vmatpush3.bf16.msra.mxu0 %v12011_v18 }
0x17ac   : > { %11648 = vmatprep.subr.bf16.mxu0 %v12361_v3 }
0x17af   : > { %11649 = vmatpush3.bf16.msra.mxu0 %v12012_v19 }
0x17b0   : > { %11650 = vmatprep.subr.bf16.mxu0 %v12361_v3 }
0x17b3   : > { %11651 = vmatpush3.bf16.msra.mxu0 %v12013_v20 }
0x17b4   : > { %11652 = vmatprep.subr.bf16.mxu0 %v12361_v3 }
0x17b7   : > { %11653 = vmatpush3.bf16.msra.mxu0 %v12014_v22 }
0x17b8   : > { %11654 = vmatprep.subr.bf16.mxu0 %v12361_v3 }
0x17bb   : > { %v5319_v9 = vpop.f32.mrb[72].mxu0  ;;  %11655 = vmatpush3.bf16.msra.mxu0 %v12015_v23 }
0x17bc   : > { %v5320_v10 = vadd.f32 %v10176_v8, %v5319_v9  ;;  %v11618_v11 = vpop.f32.mrb[73].mxu0  ;;  %11706 = vmatprep.subr.bf16.mxu0 %v12361_v3  ;;  %v12025_v9 = vld [vmem:[%s12582_s26 + $0x1d8] sm:$0xff]  }
0x17bd   : > { %v5322_v13 = vpop.f32.mrb[74].mxu0  ;;  %v12029_v11 = vld [vmem:[%s12582_s26 + $0x1e8] sm:$0xff]  }
0x17be   : > { %11663 = vmatmul.mubr.msk.f32.vlgmr.msra.gmra.mrb[76].mxu1 %vm1249_vm1, %v5320_v10  ;;  %v11619_v14 = vpop.f32.mrb[75].mxu0  ;;  %v5323_v47 = vadd.f32 %v10176_v8, %v5322_v13  ;;  %11657 = vmatmul.mubr.bf16.vlgmr.msra.gmra.mrb[76].mxu0 %v12694_v21  ;;  %v12023_v8 = vld [vmem:[%s12582_s26 + $0x1d0] sm:$0xff]   ;;  %v12027_v10 = vld [vmem:[%s12582_s26 + $0x1e0] sm:$0xff]  }
0x17bf   : > { %11666 = vmatpush3.xpose.msk.msra.mxu1 %vm1249_vm1, %v5437_v1  ;;  %11667 = vmatprep.mubr.msk.f32.mxu1 %vm12362_vm0, %v12361_v3  ;;  %v12031_v13 = vld [vmem:[%s12582_s26 + $0x1f0] sm:$0xff]   ;;  %v12032_v14 = vld [vmem:[%s12582_s26 + $0x1f8] sm:$0xff]  }
0x17c0   : > { %11670 = vmatprep.subr.mxu1 %v12361_v3  ;;  %11722 = vmatprep.mubr.msk.bf16.mxu0 %vm12362_vm0, %v12361_v3 }
0x17c1   : > { %11707 = vmatpush3.bf16.msra.mxu0 %v12016_v53 }
0x17c2   : > { %11668 = vmatmul.mubr.msk.f32.vlgmr.msra.gmra.mrb[78].mxu1 %vm1249_vm1, %v5323_v47  ;;  %11708 = vmatprep.subr.bf16.mxu0 %v12361_v3  ;;  %v10290_v47 = vld [vmem:[%s12602_s17 + $0x7] ss:$0 sm:$0xff] }
0x17c3   : > { %11672 = vmatprep.mubr.msk.f32.mxu1 %vm12362_vm0, %v12361_v3 }
0x17c5   : > { %11709 = vmatpush3.bf16.msra.mxu0 %v12018_v55 }
0x17c6   : > { %11710 = vmatprep.subr.bf16.mxu0 %v12361_v3 }
0x17c9   : > { %11711 = vmatpush3.bf16.msra.mxu0 %v12020_v57 }
0x17ca   : > { %11712 = vmatprep.subr.bf16.mxu0 %v12361_v3 }
0x17cd   : > { %11713 = vmatpush3.bf16.msra.mxu0 %v12022_v58 }
0x17ce   : > { %11714 = vmatprep.subr.bf16.mxu0 %v12361_v3 }
0x17d1   : > { %11715 = vmatpush3.bf16.msra.mxu0 %v12024_v30  ;;  %v10316_v30 = vld [vmem:[%s13908_s11 + $0x7] ss:$0 sm:$0xff] }
0x17d2   : > { %11716 = vmatprep.subr.bf16.mxu0 %v12361_v3 }
0x17d5   : > { %11717 = vmatpush3.bf16.msra.mxu0 %v12026_v33 }
0x17d6   : > { %11718 = vmatprep.subr.bf16.mxu0 %v12361_v3 }
0x17d9   : > { %11719 = vmatpush3.bf16.msra.mxu0 %v12028_v60 }
0x17da   : > { %11720 = vmatprep.subr.bf16.mxu0 %v12361_v3 }
0x17dd   : > { %11721 = vmatpush3.bf16.msra.mxu0 %v12030_v61 }
0x17de   : > { %11746 = vmatprep.subr.mxu0 %v12361_v3 }
0x17e0   : > { %11723 = vmatmul.mubr.bf16.vlgmr.msra.gmra.mrb[80].mxu0 %v12694_v21 }
0x17e1   : > { %11748 = vmatprep.mubr.msk.f32.mxu0 %vm12362_vm0, %v12361_v3 }
0x1891   : > { %v5626_v56 = vpop.f32.mrb[76].mxu1  ;;  %v5547_v40 = vpop.f32.mrb[76].mxu0 }
0x1892   : > { %v5706_v59 = vsel %vm1402_vm2, %v5626_v56, -inf  ;;  %v11664_v24 = vpop.f32.mrb[77].mxu1  ;;  %v11658_v12 = vpop.f32.mrb[77].mxu0  ;;  %v5548_v42 = vadd.f32 %v10228_v15, %v5547_v40  ;;  %v12040_v40 = vld [vmem:[%s13907_s7 + $0x1f8] sm:$0xff]  }
0x1893   : > { %5707 = vmax.xlane.f32.xlu0 %v5706_v59  ;;  %v5550_v41 = vpop.f32.mrb[78].mxu0 }
0x1894   : > { %v11659_v43 = vpop.f32.mrb[79].mxu0  ;;  %v5551_v44 = vadd.f32 %v10228_v15, %v5550_v41  ;;  %11671 = vmatpush3.msra.mxu1 %v5548_v42 }
0x1895   : > { %v5702_v25 = vpop.f32.mrb[78].mxu1  ;;  %11675 = vmatprep.subr.mxu1 %v12361_v3 }
0x1896   : > { %v11669_v26 = vpop.f32.mrb[79].mxu1  ;;  %v5709_v27 = vsel %vm1402_vm2, %v5702_v25, -inf }
0x1897   : > { %5710 = vmax.xlane.f32.xlu1 %v5709_v27  ;;  %v10264_v26 = vld [vmem:[%s12597_s22 + $0x7] ss:$0 sm:$0xff] }
0x18b3   : > { %v6151_v50 = vpop.f32.mrb[80].mxu0 }
0x18b4   : > { %v6152_v16 = vadd.f32 %v10290_v47, %v6151_v50  ;;  %v11724_v17 = vpop.f32.mrb[81].mxu0  ;;  %v10335_v50 = vld [vmem:[%s13909_s18] ss:$0 sm:$0xff] }
0x18b5   : > { %v6154_v18 = vpop.f32.mrb[82].mxu0 }
0x18b6   : > { %v6155_v19 = vadd.f32 %v10290_v47, %v6154_v18  ;;  %v11725_v20 = vpop.f32.mrb[83].mxu0  ;;  %11747 = vmatpush3.xpose.msk.msra.mxu0 %vm1249_vm1, %v6152_v16 }
0x18b7   : > { %11751 = vmatprep.subr.mxu0 %v12361_v3 }
0x1920   : > { %v5708_v28 = vpop.xlane.xlu0 %5707 }
0x1921   : > { %v5712_v29 = vsub.f32 %v5626_v56, %v5708_v28 }
0x1923   : > { %v5714_v31 = vmul.f32 1.442695, %v5712_v29 }
0x1924   : > { %v5711_v32 = vpop.xlane.xlu1 %5710 }
0x1925   : > { %12218 = vpow2.f32 %v5714_v31  ;;  %v5713_v34 = vsub.f32 %v5702_v25, %v5711_v32 }
0x1927   : > { %v5716_v35 = vmul.f32 1.442695, %v5713_v34  ;;  %v12034_v34 = vld [vmem:[%s13907_s7 + $0x1c8] sm:$0xff]  }
0x1929   : > { %12220 = vpow2.f32 %v5716_v35  ;;  %v12035_v35 = vld [vmem:[%s13907_s7 + $0x1d0] sm:$0xff]  }
0x192f   : > { %v12219_v36 = vpop.eup %12218 }
0x1930   : > { %v5718_v37 = vsel %vm1402_vm2, %v12219_v36, 0.0 }
0x1931   : > { %5719 = vadd.xlane.f32.xlu0 %v5718_v37  ;;  %v12037_v37 = vld [vmem:[%s13907_s7 + $0x1e0] sm:$0xff]  }
0x1933   : > { %v12221_v38 = vpop.eup %12220 }
0x1934   : > { %v5721_v39 = vsel %vm1402_vm2, %v12221_v38, 0.0 }
0x1935   : > { %5722 = vadd.xlane.f32.xlu1 %v5721_v39  ;;  %v12039_v39 = vld [vmem:[%s13907_s7 + $0x1f0] sm:$0xff]  }
0x19be   : > { %v5720_v45 = vpop.xlane.xlu0 %5719 }
0x19bf   : > { %12222 = vrcp.f32 %v5720_v45 }
0x19c2   : > { %v5723_v46 = vpop.xlane.xlu1 %5722 }
0x19c3   : > { %12224 = vrcp.f32 %v5723_v46 }
0x19c9   : > { %v12223_v48 = vpop.eup %12222 }
0x19ca   : > { %v5726_v49 = vmul.f32 %v12223_v48, %v12219_v36  ;;  %v12036_v36 = vld [vmem:[%s13907_s7 + $0x1d8] sm:$0xff]  }
0x19cc   : > { %11673 = vmatmul.mubr.msk.f32.vlgmr.msra.gmra.mrb[80].mxu1 %vm1402_vm2, %v5726_v49 }
0x19cd   : > { %v12225_v51 = vpop.eup %12224  ;;  %11676 = vmatpush3.msra.mxu1 %v5551_v44  ;;  %11677 = vmatprep.mubr.msk.f32.mxu1 %vm12362_vm0, %v12361_v3 }
0x19ce   : > { %v5727_v52 = vmul.f32 %v12225_v51, %v12221_v38  ;;  %11680 = vmatprep.subr.bf16.mxu1 %v12361_v3  ;;  %v12038_v38 = vld [vmem:[%s13907_s7 + $0x1e8] sm:$0xff]  }
0x19d0   : > { %11678 = vmatmul.mubr.msk.f32.vlgmr.msra.gmra.mrb[82].mxu1 %vm1402_vm2, %v5727_v52 }
0x19d1   : > { %11682 = vmatprep.mubr.msk.bf16.mxu1 %vm12362_vm0, %v12361_v3  ;;  %11681 = vmatpush3.bf16.msra.mxu1 %v12017_v54 }
0x19d2   : > { %11686 = vmatprep.subr.bf16.mxu1 %v12361_v3 }
0x1a9f   : > { %v5797_v63 = vpop.f32.mrb[80].mxu1 }
0x1aa0   : > { %v11674_v1 = vpop.f32.mrb[81].mxu1 }
0x1aa3   : > { %v5870_v2 = vpop.f32.mrb[82].mxu1 }
0x1aa4   : > { %v5874_v62 = vpack.c.bf16 %v5870_v2, %v5797_v63  ;;  %v11679_v0 = vpop.f32.mrb[83].mxu1 }
0x1aa6   : > { %11683 = vmatmul.mubr.msk.bf16.vlgmr.msra.gmra.mrb[84].mxu1 %vm1249_vm1, %v5874_v62 }
0x1aa7   : > { %11687 = vmatpush3.bf16.msra.mxu1 %v12019_v4  ;;  %11702 = vmatprep.mubr.msk.bf16.mxu1 %vm12362_vm0, %v12361_v3 }
0x1aa8   : > { %11688 = vmatprep.subr.bf16.mxu1 %v12361_v3 }
0x1aab   : > { %11689 = vmatpush3.bf16.msra.mxu1 %v12021_v7 }
0x1aac   : > { %11690 = vmatprep.subr.bf16.mxu1 %v12361_v3 }
0x1aaf   : > { %11691 = vmatpush3.bf16.msra.mxu1 %v12023_v8  ;;  %v12041_v8 = vld [vmem:[%s12617_s30 + $0x38] sm:$0xff]  }
0x1ab0   : > { %11692 = vmatprep.subr.bf16.mxu1 %v12361_v3 }
0x1ab3   : > { %11693 = vmatpush3.bf16.msra.mxu1 %v12025_v9 }
0x1ab4   : > { %11694 = vmatprep.subr.bf16.mxu1 %v12361_v3 }
0x1ab7   : > { %11695 = vmatpush3.bf16.msra.mxu1 %v12027_v10 }
0x1ab8   : > { %11696 = vmatprep.subr.bf16.mxu1 %v12361_v3 }
0x1abb   : > { %11697 = vmatpush3.bf16.msra.mxu1 %v12029_v11 }
0x1abc   : > { %11698 = vmatprep.subr.bf16.mxu1 %v12361_v3 }
0x1abf   : > { %11699 = vmatpush3.bf16.msra.mxu1 %v12031_v13 }
0x1ac0   : > { %11700 = vmatprep.subr.bf16.mxu1 %v12361_v3 }
0x1ac3   : > { %11701 = vmatpush3.bf16.msra.mxu1 %v12032_v14 }
0x1ac4   : > { %11726 = vmatprep.subr.bf16.mxu1 %v12361_v3 }
0x1ac6   : > { %11703 = vmatmul.mubr.bf16.vlgmr.msra.gmra.mrb[88].mxu1 %v12694_v21 }
0x1ac7   : > { %11742 = vmatprep.mubr.msk.bf16.mxu1 %vm12362_vm0, %v12361_v3 }
0x1b79   : > { %v5921_v22 = vpop.f32.mrb[84].mxu1 }
0x1b7a   : > { %v13351_v23 = vadd.f32 %v5921_v22, %v13258_v5  ;;  %v11684_v56 = vpop.f32.mrb[85].mxu1 }
0x1b7b   : > { %v5924_v59 = vpop.f32.mrb[86].mxu1  ;;  %v12242_v56 = vld [vmem:[#allocation2] sm:$0xff] }
0x1b7c   : > { %v13354_v24 = vadd.f32 %v5924_v59, %v13261_v6  ;;  %v11685_v25 = vpop.f32.mrb[87].mxu1  ;;  %v12033_v6 = vld [vmem:[%s13907_s7 + $0x1c0] sm:$0xff]   ;;  %s13915_s7 = sld [smem:[#allocation30_spill]] (!%p10597_p9) }
0x1b7d   : > { %11727 = vmatpush3.bf16.msra.mxu1 %v12033_v6  ;;  %v12243_v25 = vld [vmem:[#allocation2 + $0x8] sm:$0xff]  ;;  %v6725_v6 = vld [vmem:[%s12631_s28 + $0xc0] sm:$0xff] }
0x1b7e   : > { %11728 = vmatprep.subr.bf16.mxu1 %v12361_v3 }
0x1b81   : > { %11729 = vmatpush3.bf16.msra.mxu1 %v12034_v34 }
0x1b82   : > { %11730 = vmatprep.subr.bf16.mxu1 %v12361_v3 }
0x1b85   : > { %11731 = vmatpush3.bf16.msra.mxu1 %v12035_v35 }
0x1b86   : > { %11732 = vmatprep.subr.bf16.mxu1 %v12361_v3 }
0x1b89   : > { %11733 = vmatpush3.bf16.msra.mxu1 %v12036_v36  ;;  %v6718_v36 = vld [vmem:[%s12631_s28 + $0x88] sm:$0xff] }
0x1b8a   : > { %11734 = vmatprep.subr.bf16.mxu1 %v12361_v3 }
0x1b8d   : > { %11735 = vmatpush3.bf16.msra.mxu1 %v12037_v37  ;;  %v6726_v37 = vld [vmem:[%s12631_s28 + $0xc8] sm:$0xff] }
0x1b8e   : > { %11736 = vmatprep.subr.bf16.mxu1 %v12361_v3 }
0x1b91   : > { %11737 = vmatpush3.bf16.msra.mxu1 %v12038_v38  ;;  %v10357_v38 = vcombine.high %v6718_v36, %v6726_v37 }
0x1b92   : > { %11738 = vmatprep.subr.bf16.mxu1 %v12361_v3 }
0x1b95   : > { %11739 = vmatpush3.bf16.msra.mxu1 %v12039_v39 }
0x1b96   : > { %11740 = vmatprep.subr.bf16.mxu1 %v12361_v3 }
0x1b99   : > { %v6037_v27 = vpop.f32.mrb[88].mxu1  ;;  %11741 = vmatpush3.bf16.msra.mxu1 %v12040_v40  ;;  %v10356_v40 = vcombine.low %v6718_v36, %v6726_v37 }
0x1b9a   : > { %v6038_v28 = vadd.f32 %v10264_v26, %v6037_v27  ;;  %v11704_v29 = vpop.f32.mrb[89].mxu1  ;;  %v6701_v27 = vld [vmem:[%s12631_s28] sm:$0xff] }
0x1b9b   : > { %v6040_v31 = vpop.f32.mrb[90].mxu1 }
0x1b9c   : > { %11749 = vmatmul.mubr.msk.f32.vlgmr.msra.gmra.mrb[84].mxu0 %vm1249_vm1, %v6038_v28  ;;  %v11705_v32 = vpop.f32.mrb[91].mxu1  ;;  %v6041_v5 = vadd.f32 %v10264_v26, %v6040_v31  ;;  %11743 = vmatmul.mubr.bf16.vlgmr.msra.gmra.mrb[92].mxu1 %v12694_v21  ;;  %v6702_v28 = vld [vmem:[%s12631_s28 + $0x8] sm:$0xff] }
0x1b9d   : > { %11752 = vmatpush3.xpose.msk.msra.mxu0 %vm1249_vm1, %v6155_v19  ;;  %11753 = vmatprep.mubr.msk.f32.mxu0 %vm12362_vm0, %v12361_v3  ;;  %v6710_v32 = vld [vmem:[%s12631_s28 + $0x48] sm:$0xff] }
0x1b9e   : > { %11756 = vmatprep.subr.mxu0 %v12361_v3  ;;  %v10341_v34 = vcombine.high %v6702_v28, %v6710_v32 }
0x1ba0   : > { %11754 = vmatmul.mubr.msk.f32.vlgmr.msra.gmra.mrb[86].mxu0 %vm1249_vm1, %v6041_v5  ;;  %v6717_v5 = vld [vmem:[%s12631_s28 + $0x80] sm:$0xff]  ;;  %7596 = vmatprep.subr.bf16.mxu1 %v10341_v34  ;;  %v6711_v34 = vld [vmem:[%s12631_s28 + $0x50] sm:$0xff] }
0x1ba1   : > { %11758 = vmatprep.mubr.msk.f32.mxu0 %vm12362_vm0, %v12361_v3  ;;  %v10355_v35 = vcombine.high %v6717_v5, %v6725_v6  ;;  %v10354_v39 = vcombine.low %v6717_v5, %v6725_v6 }
0x1c6f   : > { %v6344_v12 = vpop.f32.mrb[84].mxu0  ;;  %v6265_v57 = vpop.f32.mrb[92].mxu1 }
0x1c70   : > { %v6424_v15 = vsel %vm1402_vm2, %v6344_v12, -inf  ;;  %v11750_v41 = vpop.f32.mrb[85].mxu0  ;;  %v11744_v58 = vpop.f32.mrb[93].mxu1  ;;  %v6266_v60 = vadd.f32 %v10316_v30, %v6265_v57  ;;  %v6749_v57 = vld [vmem:[%s12631_s28 + $0x180] sm:$0xff] }
0x1c71   : > { %6425 = vmax.xlane.f32.xlu0 %v6424_v15  ;;  %v6268_v33 = vpop.f32.mrb[94].mxu1  ;;  %v6757_v58 = vld [vmem:[%s12631_s28 + $0x1c0] sm:$0xff] }
0x1c72   : > { %v11745_v61 = vpop.f32.mrb[95].mxu1  ;;  %v6269_v63 = vadd.f32 %v10316_v30, %v6268_v33  ;;  %11757 = vmatpush3.msra.mxu0 %v6266_v60  ;;  %v6750_v30 = vld [vmem:[%s12631_s28 + $0x188] sm:$0xff]  ;;  %v10387_v33 = vcombine.high %v6749_v57, %v6757_v58 }
0x1c73   : > { %v6420_v42 = vpop.f32.mrb[86].mxu0  ;;  %11761 = vmatprep.subr.mxu0 %v12361_v3  ;;  %v6758_v60 = vld [vmem:[%s12631_s28 + $0x1c8] sm:$0xff]  ;;  %v10386_v61 = vcombine.low %v6749_v57, %v6757_v58  ;;  %v6719_v58 = vld [vmem:[%s12631_s28 + $0x90] sm:$0xff] }
0x1c74   : > { %v11755_v43 = vpop.f32.mrb[87].mxu0  ;;  %v6427_v44 = vsel %vm1402_vm2, %v6420_v42, -inf }
0x1c75   : > { %6428 = vmax.xlane.f32.xlu1 %v6427_v44 }
0x1cfe   : > { %v6426_v45 = vpop.xlane.xlu0 %6425 }
0x1cff   : > { %v6430_v46 = vsub.f32 %v6344_v12, %v6426_v45 }
0x1d01   : > { %v6432_v48 = vmul.f32 1.442695, %v6430_v46 }
0x1d02   : > { %v6429_v49 = vpop.xlane.xlu1 %6428 }
0x1d03   : > { %12226 = vpow2.f32 %v6432_v48  ;;  %v6431_v51 = vsub.f32 %v6420_v42, %v6429_v49  ;;  %v6733_v48 = vld [vmem:[%s12631_s28 + $0x100] sm:$0xff] }
0x1d04   : > { %v6741_v49 = vld [vmem:[%s12631_s28 + $0x140] sm:$0xff] }
0x1d05   : > { %v6434_v52 = vmul.f32 1.442695, %v6431_v51  ;;  %v6734_v51 = vld [vmem:[%s12631_s28 + $0x108] sm:$0xff] }
0x1d07   : > { %12228 = vpow2.f32 %v6434_v52  ;;  %v10371_v52 = vcombine.high %v6733_v48, %v6741_v49 }
0x1d0d   : > { %v12227_v21 = vpop.eup %12226 }
0x1d0e   : > { %v6436_v53 = vsel %vm1402_vm2, %v12227_v21, 0.0 }
0x1d0f   : > { %6437 = vadd.xlane.f32.xlu0 %v6436_v53  ;;  %v10370_v53 = vcombine.low %v6733_v48, %v6741_v49 }
0x1d11   : > { %v12229_v54 = vpop.eup %12228 }
0x1d12   : > { %v6439_v55 = vsel %vm1402_vm2, %v12229_v54, 0.0 }
0x1d13   : > { %6440 = vadd.xlane.f32.xlu1 %v6439_v55 }
0x1d9c   : > { %v6438_v1 = vpop.xlane.xlu0 %6437 }
0x1d9d   : > { %12230 = vrcp.f32 %v6438_v1  ;;  %v10389_v1 = vcombine.high %v6750_v30, %v6758_v60 }
0x1da0   : > { %v6441_v2 = vpop.xlane.xlu1 %6440 }
0x1da1   : > { %12232 = vrcp.f32 %v6441_v2  ;;  %v6765_v2 = vld [vmem:[%s12631_s28 + $0x200] sm:$0xff] }
0x1da7   : > { %v12231_v4 = vpop.eup %12230 }
0x1da8   : > { %v6444_v62 = vmul.f32 %v12231_v4, %v12227_v21  ;;  %v6742_v21 = vld [vmem:[%s12631_s28 + $0x148] sm:$0xff]  ;;  %v6773_v4 = vld [vmem:[%s12631_s28 + $0x240] sm:$0xff] }
0x1da9   : > { %v10373_v55 = vcombine.high %v6734_v51, %v6742_v21 }
0x1daa   : > { %11759 = vmatmul.mubr.msk.f32.vlgmr.msra.gmra.mrb[88].mxu0 %vm1402_vm2, %v6444_v62  ;;  %v6766_v62 = vld [vmem:[%s12631_s28 + $0x208] sm:$0xff] }
0x1dab   : > { %v12233_v0 = vpop.eup %12232  ;;  %11762 = vmatpush3.msra.mxu0 %v6269_v63  ;;  %11763 = vmatprep.mubr.msk.f32.mxu0 %vm12362_vm0, %v12361_v3  ;;  %v10388_v63 = vcombine.low %v6750_v30, %v6758_v60  ;;  %v6727_v30 = vld [vmem:[%s12631_s28 + $0xd0] sm:$0xff]  ;;  %v6728_v60 = vld [vmem:[%s12631_s28 + $0xd8] sm:$0xff] }
0x1dac   : > { %v6445_v7 = vmul.f32 %v12233_v0, %v12229_v54  ;;  %11766 = vmatprep.subr.bf16.mxu0 %v12361_v3  ;;  %v10372_v54 = vcombine.low %v6734_v51, %v6742_v21  ;;  %v10403_v0 = vcombine.high %v6765_v2, %v6773_v4  ;;  %v10336_v51 = vld [vmem:[%s13910_s24] ss:$0 sm:$0xff] }
0x1dae   : > { %11764 = vmatmul.mubr.msk.f32.vlgmr.msra.gmra.mrb[90].mxu0 %vm1402_vm2, %v6445_v7  ;;  %v6774_v7 = vld [vmem:[%s12631_s28 + $0x248] sm:$0xff] }
0x1daf   : > { %11768 = vmatprep.mubr.msk.bf16.mxu0 %vm12362_vm0, %v12361_v3  ;;  %11767 = vmatpush3.bf16.msra.mxu0 %v12041_v8  ;;  %v10402_v8 = vcombine.low %v6765_v2, %v6773_v4  ;;  %v6735_v2 = vld [vmem:[%s12631_s28 + $0x110] sm:$0xff] }
0x1db0   : > { %v6743_v4 = vld [vmem:[%s12631_s28 + $0x150] sm:$0xff] }
0x1e7d   : > { %v6515_v9 = vpop.f32.mrb[88].mxu0 }
0x1e7e   : > { %v11760_v10 = vpop.f32.mrb[89].mxu0 }
0x1e7f   : > { %v10405_v10 = vcombine.high %v6766_v62, %v6774_v7 }
0x1e81   : > { %v6588_v11 = vpop.f32.mrb[90].mxu0 }
0x1e82   : > { %v6592_v13 = vpack.c.bf16 %v6588_v11, %v6515_v9  ;;  %v11765_v14 = vpop.f32.mrb[91].mxu0  ;;  %v10404_v9 = vcombine.low %v6766_v62, %v6774_v7  ;;  %v6781_v11 = vld [vmem:[%s12631_s28 + $0x280] sm:$0xff]  ;;  %v6736_v62 = vld [vmem:[%s12631_s28 + $0x118] sm:$0xff]  ;;  %v10358_v7 = vcombine.low %v6719_v58, %v6727_v30 }
0x1e83   : > { %v6782_v14 = vld [vmem:[%s12631_s28 + $0x288] sm:$0xff] }
0x1e84   : > { %11769 = vmatmul.mubr.msk.bf16.vlgmr.msra.gmra.mrb[92].mxu0 %vm1249_vm1, %v6592_v13  ;;  %v6789_v13 = vld [vmem:[%s12631_s28 + $0x2c0] sm:$0xff] }
0x1f57   : > { %v6639_v47 = vpop.f32.mrb[92].mxu0 }
0x1f58   : > { %v6646_v3 = vadd.f32 %v6639_v47, %v13351_v23  ;;  %v11770_v16 = vpop.f32.mrb[93].mxu0  ;;  %v6709_v23 = vld [vmem:[%s12631_s28 + $0x40] sm:$0xff]  ;;  %v10419_v47 = vcombine.high %v6781_v11, %v6789_v13 }
0x1f59   : > { %v6642_v17 = vpop.f32.mrb[94].mxu0  ;;  %v10338_v29 = vcombine.low %v6701_v27, %v6709_v23  ;;  %v10339_v31 = vcombine.high %v6701_v27, %v6709_v23  ;;  %v6813_v27 = vld [vmem:[%s12631_s28 + $0x380] sm:$0xff] }
0x1f5a   : > { %v6655_v18 = vadd.f32 %v10335_v50, %v6646_v3  ;;  %v6647_v19 = vadd.f32 %v6642_v17, %v13354_v24  ;;  %v11771_v20 = vpop.f32.mrb[95].mxu0  ;;  %v10340_v24 = vcombine.low %v6702_v28, %v6710_v32  ;;  %v10418_v3 = vcombine.low %v6781_v11, %v6789_v13  ;;  %v6821_v23 = vld [vmem:[%s12631_s28 + $0x3c0] sm:$0xff]  ;;  %v6814_v28 = vld [vmem:[%s12631_s28 + $0x388] sm:$0xff]  ;;  %v6751_v11 = vld [vmem:[%s12631_s28 + $0x190] sm:$0xff] }
0x1f5b   : > { %7553 = vmatprep.subr.bf16.mxu0 %v10339_v31  ;;  %v6798_v20 = vld [vmem:[%s12631_s28 + $0x308] sm:$0xff]  ;;  %v10450_v32 = vcombine.low %v6813_v27, %v6821_v23  ;;  %v6759_v13 = vld [vmem:[%s12631_s28 + $0x1d0] sm:$0xff] }
0x1f5c   : > { %v6656_v22 = vadd.f32 %v10335_v50, %v6647_v19  ;;  %v6657_v59 = vadd.f32 %v12242_v56, %v6655_v18  ;;  %7554 = vmatpush1.bf16.msra.mxu0 %v10338_v29  ;;  %7597 = vmatpush1.bf16.msra.mxu1 %v10340_v24  ;;  %v6790_v50 = vld [vmem:[%s12631_s28 + $0x2c8] sm:$0xff]  ;;  %v6797_v18 = vld [vmem:[%s12631_s28 + $0x300] sm:$0xff]  ;;  %v10451_v29 = vcombine.high %v6813_v27, %v6821_v23  ;;  %v6703_v24 = vld [vmem:[%s12631_s28 + $0x10] sm:$0xff] }
0x1f5d   : > { %7555 = vmatprep.subr.bf16.mxu0 %v10355_v35  ;;  %7598 = vmatprep.subr.bf16.mxu1 %v10357_v38  ;;  %v10420_v16 = vcombine.low %v6782_v14, %v6790_v50  ;;  %v10421_v17 = vcombine.high %v6782_v14, %v6790_v50  ;;  %v6805_v19 = vld [vmem:[%s12631_s28 + $0x340] sm:$0xff]  ;;  %v6806_v56 = vld [vmem:[%s12631_s28 + $0x348] sm:$0xff]  ;;  %v6704_v35 = vld [vmem:[%s12631_s28 + $0x18] sm:$0xff]  ;;  %v10342_v36 = vcombine.low %v6703_v24, %v6711_v34 }
0x1f5e   : > { %6661 = vadd.xlane.f32.xlu0 %v6657_v59  ;;  %v6658_v26 = vadd.f32 %v12243_v25, %v6656_v22  ;;  %v10435_v22 = vcombine.high %v6797_v18, %v6805_v19  ;;  %v10436_v25 = vcombine.low %v6798_v20, %v6806_v56  ;;  %v6822_v31 = vld [vmem:[%s12631_s28 + $0x3c8] sm:$0xff]  ;;  %v10343_v37 = vcombine.high %v6703_v24, %v6711_v34  ;;  %v6712_v38 = vld [vmem:[%s12631_s28 + $0x58] sm:$0xff]  ;;  %v6783_v27 = vld [vmem:[%s12631_s28 + $0x290] sm:$0xff] }
0x1f5f   : > { %v10452_v5 = vcombine.low %v6814_v28, %v6822_v31  ;;  %v10453_v6 = vcombine.high %v6814_v28, %v6822_v31  ;;  %v6752_v14 = vld [vmem:[%s12631_s28 + $0x198] sm:$0xff]  ;;  %v10374_v50 = vcombine.low %v6735_v2, %v6743_v4  ;;  %v6791_v23 = vld [vmem:[%s12631_s28 + $0x2d0] sm:$0xff] }
0x1f60   : > { %6663 = vadd.xlane.f32.xlu1 %v6658_v26  ;;  %7556 = vmatpush1.bf16.msra.mxu0 %v10354_v39  ;;  %v12363_v39 = vmov 0   ;;  %v6784_v28 = vld [vmem:[%s12631_s28 + $0x298] sm:$0xff]  ;;  %v6799_v24 = vld [vmem:[%s12631_s28 + $0x310] sm:$0xff] }
0x1f61   : > { %7599 = vmatpush1.bf16.msra.mxu1 %v10356_v40  ;;  %7557 = vmatprep.subr.bf16.mxu0 %v10371_v52  ;;  %v10344_v40 = vcombine.low %v6704_v35, %v6712_v38  ;;  %v6807_v34 = vld [vmem:[%s12631_s28 + $0x350] sm:$0xff] }
0x1f62   : > { %7600 = vmatprep.subr.bf16.mxu1 %v10373_v55  ;;  %7585 = vmatprep.mubr.bf16.mxu0 %v12363_v39  ;;  %v10337_v55 = vld [vmem:[%s13911_s2] ss:$0 sm:$0xff] }
0x1f63   : > { %7628 = vmatprep.mubr.bf16.mxu1 %v12363_v39 }
0x1f64   : > { %7558 = vmatpush1.bf16.msra.mxu0 %v10370_v53 }
0x1f65   : > { %7601 = vmatpush1.bf16.msra.mxu1 %v10372_v54  ;;  %7559 = vmatprep.subr.bf16.mxu0 %v10387_v33  ;;  %v6720_v33 = vld [vmem:[%s12631_s28 + $0x98] sm:$0xff] }
0x1f66   : > { %7602 = vmatprep.subr.bf16.mxu1 %v10389_v1  ;;  %v10359_v1 = vcombine.high %v6719_v58, %v6727_v30 }
0x1f68   : > { %7560 = vmatpush1.bf16.msra.mxu0 %v10386_v61 }
0x1f69   : > { %7603 = vmatpush1.bf16.msra.mxu1 %v10388_v63  ;;  %7561 = vmatprep.subr.bf16.mxu0 %v10403_v0  ;;  %v6744_v0 = vld [vmem:[%s12631_s28 + $0x158] sm:$0xff] }
0x1f6a   : > { %7604 = vmatprep.subr.bf16.mxu1 %v10405_v10  ;;  %v10377_v10 = vcombine.high %v6736_v62, %v6744_v0 }
0x1f6c   : > { %7562 = vmatpush1.bf16.msra.mxu0 %v10402_v8  ;;  %v10360_v8 = vcombine.low %v6720_v33, %v6728_v60 }
0x1f6d   : > { %7605 = vmatpush1.bf16.msra.mxu1 %v10404_v9  ;;  %7563 = vmatprep.subr.bf16.mxu0 %v10419_v47  ;;  %v10375_v9 = vcombine.high %v6735_v2, %v6743_v4  ;;  %v6760_v47 = vld [vmem:[%s12631_s28 + $0x1d8] sm:$0xff] }
0x1f6e   : > { %7606 = vmatprep.subr.bf16.mxu1 %v10421_v17  ;;  %v10393_v17 = vcombine.high %v6752_v14, %v6760_v47 }
0x1f70   : > { %7564 = vmatpush1.bf16.msra.mxu0 %v10418_v3  ;;  %v10376_v3 = vcombine.low %v6736_v62, %v6744_v0 }
0x1f71   : > { %7607 = vmatpush1.bf16.msra.mxu1 %v10420_v16  ;;  %7565 = vmatprep.subr.bf16.mxu0 %v10435_v22  ;;  %v10391_v16 = vcombine.high %v6751_v11, %v6759_v13  ;;  %v6776_v22 = vld [vmem:[%s12631_s28 + $0x258] sm:$0xff] }
0x1feb   : > { %v6662_v12 = vpop.xlane.xlu0 %6661 }
0x1fec   : > { %v6666_v15 = vmul.f32 0.0078125, %v6662_v12  ;;  %v10345_v12 = vcombine.high %v6704_v35, %v6712_v38  ;;  %v6800_v35 = vld [vmem:[%s12631_s28 + $0x318] sm:$0xff] }
0x1fed   : > { %v6664_v41 = vpop.xlane.xlu1 %6663 }
0x1fee   : > { %v13411_v42 = vsub.f32 %v6657_v59, %v6666_v15  ;;  %v6667_v43 = vmul.f32 0.0078125, %v6664_v41  ;;  %v10434_v59 = vcombine.low %v6797_v18, %v6805_v19  ;;  %v6767_v18 = vld [vmem:[%s12631_s28 + $0x210] sm:$0xff] }
0x1fef   : > { %v6775_v19 = vld [vmem:[%s12631_s28 + $0x250] sm:$0xff] }
0x1ff0   : > { %v13413_v44 = vsub.f32 %v6658_v26, %v6667_v43  ;;  %v6670_v45 = vmul.f32 %v13411_v42, %v13411_v42  ;;  %v10437_v26 = vcombine.high %v6798_v20, %v6806_v56  ;;  %7566 = vmatpush1.bf16.msra.mxu0 %v10434_v59  ;;  %v6768_v20 = vld [vmem:[%s12631_s28 + $0x218] sm:$0xff]  ;;  %v10390_v56 = vcombine.low %v6751_v11, %v6759_v13 }
0x1ff1   : > { %7567 = vmatprep.subr.bf16.mxu0 %v10451_v29  ;;  %v10392_v59 = vcombine.low %v6752_v14, %v6760_v47  ;;  %v6792_v29 = vld [vmem:[%s12631_s28 + $0x2d8] sm:$0xff]  ;;  %v10406_v31 = vcombine.low %v6767_v18, %v6775_v19 }
0x1ff2   : > { %6672 = vadd.xlane.f32.xlu0 %v6670_v45  ;;  %v6671_v46 = vmul.f32 %v13413_v44, %v13413_v44  ;;  %7608 = vmatprep.subr.bf16.mxu1 %v10437_v26  ;;  %v10409_v26 = vcombine.high %v6768_v20, %v6776_v22  ;;  %v10424_v38 = vcombine.low %v6784_v28, %v6792_v29 }
0x1ff3   : > { %7609 = vmatpush1.bf16.msra.mxu1 %v10436_v25  ;;  %v10407_v25 = vcombine.high %v6767_v18, %v6775_v19 }
0x1ff4   : > { %6674 = vadd.xlane.f32.xlu1 %v6671_v46  ;;  %7610 = vmatprep.subr.bf16.mxu1 %v10453_v6  ;;  %v10425_v6 = vcombine.high %v6784_v28, %v6792_v29 }
0x1ff5   : > { %7568 = vmatpush1.bf16.msra.mxu0 %v10450_v32  ;;  %v10408_v32 = vcombine.low %v6768_v20, %v6776_v22 }
0x1ff6   : > { %7639 = vmatprep.subr.bf16.mxu0 %v10343_v37  ;;  %v10422_v37 = vcombine.low %v6783_v27, %v6791_v23 }
0x1ff7   : > { %7611 = vmatpush1.bf16.msra.mxu1 %v10452_v5  ;;  %v10423_v5 = vcombine.high %v6783_v27, %v6791_v23 }
0x1ff8   : > { %7682 = vmatprep.subr.bf16.mxu1 %v10345_v12 }
0x207f   : > { %v6673_v15 = vpop.xlane.xlu0 %6672 }
0x2080   : > { %v6676_v41 = vmul.f32 0.0078125, %v6673_v15  ;;  %v6815_v15 = vld [vmem:[%s12631_s28 + $0x390] sm:$0xff] }
0x2081   : > { %v6675_v43 = vpop.xlane.xlu1 %6674 }
0x2082   : > { %v6678_v45 = vadd.f32 1e-05, %v6676_v41  ;;  %v6677_v46 = vmul.f32 0.0078125, %v6675_v43  ;;  %v6823_v41 = vld [vmem:[%s12631_s28 + $0x3d0] sm:$0xff]  ;;  %v6816_v43 = vld [vmem:[%s12631_s28 + $0x398] sm:$0xff] }
0x2084   : > { %12234 = vrsqrt.f32 %v6678_v45  ;;  %v6679_v48 = vadd.f32 1e-05, %v6677_v46  ;;  %v6824_v45 = vld [vmem:[%s12631_s28 + $0x3d8] sm:$0xff]  ;;  %v10438_v46 = vcombine.low %v6799_v24, %v6807_v34 }
0x2086   : > { %12236 = vrsqrt.f32 %v6679_v48 }
0x208e   : > { %v12235_v49 = vpop.eup %12234 }
0x208f   : > { %v6682_v52 = vmul.f32 %v12235_v49, %v13411_v42  ;;  %v10455_v49 = vcombine.high %v6815_v15, %v6823_v41 }
0x2090   : > { %v12237_v21 = vpop.eup %12236 }
0x2091   : > { %v6690_v53 = vmul.f32 %v10336_v51, %v6682_v52  ;;  %v6683_v54 = vmul.f32 %v12237_v21, %v13413_v44  ;;  %v10361_v44 = vcombine.high %v6720_v33, %v6728_v60  ;;  %v6705_v52 = vld [vmem:[%s12631_s28 + $0x20] sm:$0xff] }
0x2092   : > { %v6713_v21 = vld [vmem:[%s12631_s28 + $0x60] sm:$0xff] }
0x2093   : > { %v6691_v57 = vmul.f32 %v10336_v51, %v6683_v54  ;;  %v13465_v61 = vadd.f32 %v10337_v55, %v6690_v53  ;;  %v10457_v51 = vcombine.high %v6816_v43, %v6824_v45  ;;  %v6706_v53 = vld [vmem:[%s12631_s28 + $0x28] sm:$0xff]  ;;  %v10347_v58 = vcombine.high %v6705_v52, %v6713_v21  ;;  %v6721_v33 = vld [vmem:[%s12631_s28 + $0xa0] sm:$0xff] }
0x2094   : > { %v6714_v54 = vld [vmem:[%s12631_s28 + $0x68] sm:$0xff]  ;;  %v6729_v60 = vld [vmem:[%s12631_s28 + $0xe0] sm:$0xff]  ;;  %v10346_v2 = vcombine.low %v6705_v52, %v6713_v21 }
0x2095   : > { %v13467_v42 = vadd.f32 %v10337_v55, %v6691_v57  ;;  %v10454_v55 = vcombine.low %v6815_v15, %v6823_v41  ;;  %v10456_v57 = vcombine.low %v6816_v43, %v6824_v45  ;;  %v10349_v30 = vcombine.high %v6706_v53, %v6714_v54 }
0x2096   : > { %v10348_v4 = vcombine.low %v6706_v53, %v6714_v54  ;;  %v10363_v62 = vcombine.high %v6721_v33, %v6729_v60  ;;  %v10362_v11 = vcombine.low %v6721_v33, %v6729_v60 }
0x2097   : > { %v13471_v63 = vpack.c.bf16 %v13467_v42, %v13465_v61 }
0x2099   : > { %7586 = vmatmul.mubr.bf16.vlgmr.msra.gmra.mrb[96].mxu0 %v13471_v63  ;;  %7629 = vmatmul.mubr.bf16.vlgmr.msra.gmra.mrb[96].mxu1 %v13471_v63 }
0x209a   : > { %7640 = vmatpush1.bf16.msra.mxu0 %v10342_v36  ;;  %7683 = vmatpush1.bf16.msra.mxu1 %v10344_v40  ;;  %v6808_v36 = vld [vmem:[%s12631_s28 + $0x358] sm:$0xff]  ;;  %v10439_v40 = vcombine.high %v6799_v24, %v6807_v34 }
0x209b   : > { %7641 = vmatprep.subr.bf16.mxu0 %v10359_v1  ;;  %7684 = vmatprep.subr.bf16.mxu1 %v10361_v44  ;;  %v10441_v12 = vcombine.high %v6800_v35, %v6808_v36  ;;  %v10440_v48 = vcombine.low %v6800_v35, %v6808_v36  ;;  %v6722_v1 = vld [vmem:[%s12631_s28 + $0xa8] sm:$0xff] }
0x209c   : > { %7671 = vmatprep.mubr.bf16.mxu0 %v12363_v39  ;;  %7714 = vmatprep.mubr.bf16.mxu1 %v12363_v39  ;;  %v6730_v44 = vld [vmem:[%s12631_s28 + $0xe8] sm:$0xff] }
0x209d   : > { %v10365_v0 = vcombine.high %v6722_v1, %v6730_v44  ;;  %v10364_v13 = vcombine.low %v6722_v1, %v6730_v44 }
0x209e   : > { %7642 = vmatpush1.bf16.msra.mxu0 %v10358_v7  ;;  %7685 = vmatpush1.bf16.msra.mxu1 %v10360_v8  ;;  %v6737_v7 = vld [vmem:[%s12631_s28 + $0x120] sm:$0xff] }
0x209f   : > { %7643 = vmatprep.subr.bf16.mxu0 %v10375_v9  ;;  %7686 = vmatprep.subr.bf16.mxu1 %v10377_v10  ;;  %v6745_v8 = vld [vmem:[%s12631_s28 + $0x160] sm:$0xff]  ;;  %v6738_v9 = vld [vmem:[%s12631_s28 + $0x128] sm:$0xff] }
0x20a0   : > { %v6746_v10 = vld [vmem:[%s12631_s28 + $0x168] sm:$0xff]  ;;  %v10379_v14 = vcombine.high %v6737_v7, %v6745_v8  ;;  %v10378_v18 = vcombine.low %v6737_v7, %v6745_v8 }
0x20a1   : > { %v10381_v47 = vcombine.high %v6738_v9, %v6746_v10  ;;  %v10380_v19 = vcombine.low %v6738_v9, %v6746_v10 }
0x20a2   : > { %7644 = vmatpush1.bf16.msra.mxu0 %v10374_v50  ;;  %7687 = vmatpush1.bf16.msra.mxu1 %v10376_v3  ;;  %v6753_v50 = vld [vmem:[%s12631_s28 + $0x1a0] sm:$0xff] }
0x20a3   : > { %7645 = vmatprep.subr.bf16.mxu0 %v10391_v16  ;;  %7688 = vmatprep.subr.bf16.mxu1 %v10393_v17  ;;  %v6761_v3 = vld [vmem:[%s12631_s28 + $0x1e0] sm:$0xff]  ;;  %v6754_v16 = vld [vmem:[%s12631_s28 + $0x1a8] sm:$0xff] }
0x20a4   : > { %v6762_v17 = vld [vmem:[%s12631_s28 + $0x1e8] sm:$0xff]  ;;  %v10395_v20 = vcombine.high %v6753_v50, %v6761_v3  ;;  %v10394_v27 = vcombine.low %v6753_v50, %v6761_v3 }
0x20a5   : > { %v10397_v22 = vcombine.high %v6754_v16, %v6762_v17  ;;  %v10396_v23 = vcombine.low %v6754_v16, %v6762_v17 }
0x20a6   : > { %7646 = vmatpush1.bf16.msra.mxu0 %v10390_v56  ;;  %7689 = vmatpush1.bf16.msra.mxu1 %v10392_v59  ;;  %v6769_v56 = vld [vmem:[%s12631_s28 + $0x220] sm:$0xff] }
0x20a7   : > { %7647 = vmatprep.subr.bf16.mxu0 %v10407_v25  ;;  %7690 = vmatprep.subr.bf16.mxu1 %v10409_v26  ;;  %v6777_v59 = vld [vmem:[%s12631_s28 + $0x260] sm:$0xff]  ;;  %v6770_v25 = vld [vmem:[%s12631_s28 + $0x228] sm:$0xff] }
0x20a8   : > { %v6778_v26 = vld [vmem:[%s12631_s28 + $0x268] sm:$0xff]  ;;  %v10411_v28 = vcombine.high %v6769_v56, %v6777_v59  ;;  %v10410_v24 = vcombine.low %v6769_v56, %v6777_v59 }
0x20a9   : > { %v10413_v29 = vcombine.high %v6770_v25, %v6778_v26  ;;  %v10412_v34 = vcombine.low %v6770_v25, %v6778_v26 }
0x20aa   : > { %7648 = vmatpush1.bf16.msra.mxu0 %v10406_v31  ;;  %7691 = vmatpush1.bf16.msra.mxu1 %v10408_v32  ;;  %v6785_v31 = vld [vmem:[%s12631_s28 + $0x2a0] sm:$0xff] }
0x20ab   : > { %7649 = vmatprep.subr.bf16.mxu0 %v10423_v5  ;;  %7692 = vmatprep.subr.bf16.mxu1 %v10425_v6  ;;  %v6793_v32 = vld [vmem:[%s12631_s28 + $0x2e0] sm:$0xff]  ;;  %v6786_v5 = vld [vmem:[%s12631_s28 + $0x2a8] sm:$0xff] }
0x20ac   : > { %v6794_v6 = vld [vmem:[%s12631_s28 + $0x2e8] sm:$0xff]  ;;  %v10427_v35 = vcombine.high %v6785_v31, %v6793_v32  ;;  %v10426_v15 = vcombine.low %v6785_v31, %v6793_v32 }
0x20ad   : > { %v10429_v36 = vcombine.high %v6786_v5, %v6794_v6  ;;  %v10428_v41 = vcombine.low %v6786_v5, %v6794_v6  ;;  %v6787_v6 = vld [vmem:[%s12631_s28 + $0x2b0] sm:$0xff] }
0x20ae   : > { %7650 = vmatpush1.bf16.msra.mxu0 %v10422_v37  ;;  %7693 = vmatpush1.bf16.msra.mxu1 %v10424_v38  ;;  %v6801_v37 = vld [vmem:[%s12631_s28 + $0x320] sm:$0xff] }
0x20af   : > { %7651 = vmatprep.subr.bf16.mxu0 %v10439_v40  ;;  %7694 = vmatprep.subr.bf16.mxu1 %v10441_v12  ;;  %v6809_v38 = vld [vmem:[%s12631_s28 + $0x360] sm:$0xff]  ;;  %v6802_v40 = vld [vmem:[%s12631_s28 + $0x328] sm:$0xff] }
0x20b0   : > { %v6810_v12 = vld [vmem:[%s12631_s28 + $0x368] sm:$0xff]  ;;  %v10443_v43 = vcombine.high %v6801_v37, %v6809_v38  ;;  %v10442_v52 = vcombine.low %v6801_v37, %v6809_v38 }
0x20b1   : > { %v10445_v45 = vcombine.high %v6802_v40, %v6810_v12  ;;  %v10444_v21 = vcombine.low %v6802_v40, %v6810_v12  ;;  %v6803_v12 = vld [vmem:[%s12631_s28 + $0x330] sm:$0xff] }
0x20b2   : > { %7652 = vmatpush1.bf16.msra.mxu0 %v10438_v46  ;;  %7695 = vmatpush1.bf16.msra.mxu1 %v10440_v48  ;;  %v6817_v46 = vld [vmem:[%s12631_s28 + $0x3a0] sm:$0xff] }
0x20b3   : > { %7653 = vmatprep.subr.bf16.mxu0 %v10455_v49  ;;  %7696 = vmatprep.subr.bf16.mxu1 %v10457_v51  ;;  %v6825_v48 = vld [vmem:[%s12631_s28 + $0x3e0] sm:$0xff]  ;;  %v6818_v49 = vld [vmem:[%s12631_s28 + $0x3a8] sm:$0xff] }
0x20b4   : > { %v6826_v51 = vld [vmem:[%s12631_s28 + $0x3e8] sm:$0xff]  ;;  %v10459_v53 = vcombine.high %v6817_v46, %v6825_v48  ;;  %v10458_v33 = vcombine.low %v6817_v46, %v6825_v48 }
0x20b5   : > { %v10461_v54 = vcombine.high %v6818_v49, %v6826_v51  ;;  %v10460_v60 = vcombine.low %v6818_v49, %v6826_v51  ;;  %v6819_v51 = vld [vmem:[%s12631_s28 + $0x3b0] sm:$0xff] }
0x20b6   : > { %7654 = vmatpush1.bf16.msra.mxu0 %v10454_v55  ;;  %7697 = vmatpush1.bf16.msra.mxu1 %v10456_v57  ;;  %v6707_v55 = vld [vmem:[%s12631_s28 + $0x30] sm:$0xff] }
0x20b7   : > { %7725 = vmatprep.subr.bf16.mxu0 %v10347_v58  ;;  %7768 = vmatprep.subr.bf16.mxu1 %v10349_v30  ;;  %v6715_v57 = vld [vmem:[%s12631_s28 + $0x70] sm:$0xff]  ;;  %v6708_v58 = vld [vmem:[%s12631_s28 + $0x38] sm:$0xff] }
0x20b8   : > { %v6716_v30 = vld [vmem:[%s12631_s28 + $0x78] sm:$0xff]  ;;  %v10351_v1 = vcombine.high %v6707_v55, %v6715_v57  ;;  %v10350_v7 = vcombine.low %v6707_v55, %v6715_v57 }
0x20b9   : > { %7672 = vmatmul.mubr.bf16.vlgmr.msra.gmra.mrb[100].mxu0 %v13471_v63  ;;  %7715 = vmatmul.mubr.bf16.vlgmr.msra.gmra.mrb[100].mxu1 %v13471_v63  ;;  %v10353_v44 = vcombine.high %v6708_v58, %v6716_v30  ;;  %v10352_v8 = vcombine.low %v6708_v58, %v6716_v30 }
0x20ba   : > { %7726 = vmatpush1.bf16.msra.mxu0 %v10346_v2  ;;  %7769 = vmatpush1.bf16.msra.mxu1 %v10348_v4  ;;  %v6723_v2 = vld [vmem:[%s12631_s28 + $0xb0] sm:$0xff] }
0x20bb   : > { %7727 = vmatprep.subr.bf16.mxu0 %v10363_v62  ;;  %7770 = vmatprep.subr.bf16.mxu1 %v10365_v0  ;;  %v6731_v4 = vld [vmem:[%s12631_s28 + $0xf0] sm:$0xff]  ;;  %v6724_v62 = vld [vmem:[%s12631_s28 + $0xb8] sm:$0xff] }
0x20bc   : > { %7757 = vmatprep.mubr.bf16.mxu0 %v12363_v39  ;;  %7800 = vmatprep.mubr.bf16.mxu1 %v12363_v39  ;;  %v6732_v0 = vld [vmem:[%s12631_s28 + $0xf8] sm:$0xff]  ;;  %v10367_v9 = vcombine.high %v6723_v2, %v6731_v4  ;;  %v10366_v50 = vcombine.low %v6723_v2, %v6731_v4  ;;  %v12045_v2 = vld [vmem:[%s13912_s20 + $0x80] sm:$0xff]   ;;  %v12046_v4 = vld [vmem:[%s13912_s20 + $0x48] sm:$0xff]  }
0x20bd   : > { %v10369_v10 = vcombine.high %v6724_v62, %v6732_v0  ;;  %v10368_v3 = vcombine.low %v6724_v62, %v6732_v0  ;;  %v12047_v62 = vld [vmem:[%s13912_s20 + $0xc8] sm:$0xff]  }
0x20be   : > { %7728 = vmatpush1.bf16.msra.mxu0 %v10362_v11  ;;  %7771 = vmatpush1.bf16.msra.mxu1 %v10364_v13  ;;  %v6739_v11 = vld [vmem:[%s12631_s28 + $0x130] sm:$0xff]  ;;  %v12048_v0 = vld [vmem:[%s13912_s20 + $0x8] sm:$0xff]  }
0x20bf   : > { %7729 = vmatprep.subr.bf16.mxu0 %v10379_v14  ;;  %7772 = vmatprep.subr.bf16.mxu1 %v10381_v47  ;;  %v6747_v13 = vld [vmem:[%s12631_s28 + $0x170] sm:$0xff]  ;;  %v6740_v14 = vld [vmem:[%s12631_s28 + $0x138] sm:$0xff] }
0x20c0   : > { %v6748_v47 = vld [vmem:[%s12631_s28 + $0x178] sm:$0xff]  ;;  %v10383_v16 = vcombine.high %v6739_v11, %v6747_v13  ;;  %v10382_v56 = vcombine.low %v6739_v11, %v6747_v13  ;;  %v12053_v11 = vld [vmem:[%s13912_s20 + $0x90] sm:$0xff]  }
0x20c1   : > { %v10385_v17 = vcombine.high %v6740_v14, %v6748_v47  ;;  %v10384_v59 = vcombine.low %v6740_v14, %v6748_v47  ;;  %v12055_v13 = vld [vmem:[%s13912_s20 + $0xd8] sm:$0xff]  }
0x20c2   : > { %7730 = vmatpush1.bf16.msra.mxu0 %v10378_v18  ;;  %7773 = vmatpush1.bf16.msra.mxu1 %v10380_v19  ;;  %v6755_v18 = vld [vmem:[%s12631_s28 + $0x1b0] sm:$0xff]  ;;  %v12056_v14 = vld [vmem:[%s13912_s20 + $0x18] sm:$0xff]  }
0x20c3   : > { %7731 = vmatprep.subr.bf16.mxu0 %v10395_v20  ;;  %7774 = vmatprep.subr.bf16.mxu1 %v10397_v22  ;;  %v6763_v19 = vld [vmem:[%s12631_s28 + $0x1f0] sm:$0xff]  ;;  %v6756_v20 = vld [vmem:[%s12631_s28 + $0x1b8] sm:$0xff] }
0x20c4   : > { %v6764_v22 = vld [vmem:[%s12631_s28 + $0x1f8] sm:$0xff]  ;;  %v10399_v25 = vcombine.high %v6755_v18, %v6763_v19  ;;  %v10398_v31 = vcombine.low %v6755_v18, %v6763_v19  ;;  %v12062_v18 = vld [vmem:[%s13912_s20 + $0x68] sm:$0xff]  }
0x20c5   : > { %v10401_v26 = vcombine.high %v6756_v20, %v6764_v22  ;;  %v12057_v47 = vld [vmem:[%s13912_s20 + $0x98] sm:$0xff]   ;;  %v12063_v19 = vld [vmem:[%s13912_s20 + $0xe8] sm:$0xff]  }
0x20c6   : > { %7732 = vmatpush1.bf16.msra.mxu0 %v10394_v27  ;;  %7775 = vmatpush1.bf16.msra.mxu1 %v10396_v23  ;;  %v6771_v27 = vld [vmem:[%s12631_s28 + $0x230] sm:$0xff] }
0x20c7   : > { %7733 = vmatprep.subr.bf16.mxu0 %v10411_v28  ;;  %7776 = vmatprep.subr.bf16.mxu1 %v10413_v29  ;;  %v6779_v23 = vld [vmem:[%s12631_s28 + $0x270] sm:$0xff]  ;;  %v6772_v28 = vld [vmem:[%s12631_s28 + $0x238] sm:$0xff] }
0x20c8   : > { %v6780_v29 = vld [vmem:[%s12631_s28 + $0x278] sm:$0xff]  ;;  %v10415_v32 = vcombine.high %v6771_v27, %v6779_v23 }
0x20c9   : > { %v10417_v5 = vcombine.high %v6772_v28, %v6780_v29  ;;  %v10416_v37 = vcombine.low %v6772_v28, %v6780_v29  ;;  %v12072_v28 = vld [vmem:[%s13912_s20 + $0x38] sm:$0xff]  }
0x20ca   : > { %7734 = vmatpush1.bf16.msra.mxu0 %v10410_v24  ;;  %7777 = vmatpush1.bf16.msra.mxu1 %v10412_v34  ;;  %v6795_v24 = vld [vmem:[%s12631_s28 + $0x2f0] sm:$0xff]  ;;  %v6788_v34 = vld [vmem:[%s12631_s28 + $0x2b8] sm:$0xff] }
0x20cb   : > { %7735 = vmatprep.subr.bf16.mxu0 %v10427_v35  ;;  %7778 = vmatprep.subr.bf16.mxu1 %v10429_v36  ;;  %v6796_v35 = vld [vmem:[%s12631_s28 + $0x2f8] sm:$0xff]  ;;  %v10414_v36 = vcombine.low %v6771_v27, %v6779_v23  ;;  %v10431_v38 = vcombine.high %v6787_v6, %v6795_v24 }
0x20cc   : > { %v10433_v40 = vcombine.high %v6788_v34, %v6796_v35  ;;  %v10432_v46 = vcombine.low %v6788_v34, %v6796_v35  ;;  %v12070_v27 = vld [vmem:[%s13912_s20 + $0x78] sm:$0xff]   ;;  %v13614_v34 = vld [vmem:[%s12637_s27] sm:$0xff] }
0x20cd   : > { %v12071_v23 = vld [vmem:[%s13912_s20 + $0xf8] sm:$0xff]  }
0x20ce   : > { %7736 = vmatpush1.bf16.msra.mxu0 %v10426_v15  ;;  %7779 = vmatpush1.bf16.msra.mxu1 %v10428_v41  ;;  %v6811_v15 = vld [vmem:[%s12631_s28 + $0x370] sm:$0xff]  ;;  %v6804_v41 = vld [vmem:[%s12631_s28 + $0x338] sm:$0xff] }
0x20cf   : > { %7737 = vmatprep.subr.bf16.mxu0 %v10443_v43  ;;  %7780 = vmatprep.subr.bf16.mxu1 %v10445_v45  ;;  %v6812_v43 = vld [vmem:[%s12631_s28 + $0x378] sm:$0xff]  ;;  %v10430_v45 = vcombine.low %v6787_v6, %v6795_v24  ;;  %v10447_v48 = vcombine.high %v6803_v12, %v6811_v15 }
0x20d0   : > { %v10449_v49 = vcombine.high %v6804_v41, %v6812_v43  ;;  %v10448_v55 = vcombine.low %v6804_v41, %v6812_v43  ;;  %v12073_v29 = vld [vmem:[%s13912_s20 + $0xb8] sm:$0xff]  }
0x20d2   : > { %7738 = vmatpush1.bf16.msra.mxu0 %v10442_v52  ;;  %7781 = vmatpush1.bf16.msra.mxu1 %v10444_v21  ;;  %v6827_v52 = vld [vmem:[%s12631_s28 + $0x3f0] sm:$0xff]  ;;  %v6820_v21 = vld [vmem:[%s12631_s28 + $0x3b8] sm:$0xff] }
0x20d3   : > { %7739 = vmatprep.subr.bf16.mxu0 %v10459_v53  ;;  %7782 = vmatprep.subr.bf16.mxu1 %v10461_v54  ;;  %v6828_v53 = vld [vmem:[%s12631_s28 + $0x3f8] sm:$0xff]  ;;  %v10446_v54 = vcombine.low %v6803_v12, %v6811_v15  ;;  %v10463_v57 = vcombine.high %v6819_v51, %v6827_v52  ;;  %v10462_v30 = vcombine.low %v6819_v51, %v6827_v52 }
0x20d4   : > { %v10465_v58 = vcombine.high %v6820_v21, %v6828_v53 }
0x20d6   : > { %7740 = vmatpush1.bf16.msra.mxu0 %v10458_v33  ;;  %7783 = vmatpush1.bf16.msra.mxu1 %v10460_v60  ;;  %v10464_v33 = vcombine.low %v6820_v21, %v6828_v53  ;;  %v12042_v60 = vld [vmem:[%s13912_s20 + $0x40] sm:$0xff]  }
0x20d7   : > { %7811 = vmatprep.subr.bf16.mxu0 %v10351_v1  ;;  %7854 = vmatprep.subr.bf16.mxu1 %v10353_v44  ;;  %v12043_v1 = vld [vmem:[%s13912_s20 + $0xc0] sm:$0xff]  }
0x20d8   : > { %v12044_v44 = vld [vmem:[%s13912_s20] sm:$0xff]  }
0x20d9   : > { %7758 = vmatmul.mubr.bf16.vlgmr.msra.gmra.mrb[104].mxu0 %v13471_v63  ;;  %7801 = vmatmul.mubr.bf16.vlgmr.msra.gmra.mrb[104].mxu1 %v13471_v63 }
0x20da   : > { %7812 = vmatpush1.bf16.msra.mxu0 %v10350_v7  ;;  %7855 = vmatpush1.bf16.msra.mxu1 %v10352_v8  ;;  %v12049_v7 = vld [vmem:[%s13912_s20 + $0x88] sm:$0xff]   ;;  %v12050_v8 = vld [vmem:[%s13912_s20 + $0x50] sm:$0xff]  }
0x20db   : > { %7813 = vmatprep.subr.bf16.mxu0 %v10367_v9  ;;  %7856 = vmatprep.subr.bf16.mxu1 %v10369_v10  ;;  %v12051_v9 = vld [vmem:[%s13912_s20 + $0xd0] sm:$0xff]  }
0x20dc   : > { %7843 = vmatprep.mubr.bf16.mxu0 %v12363_v39  ;;  %7886 = vmatprep.mubr.bf16.mxu1 %v12363_v39  ;;  %v10400_v39 = vcombine.low %v6756_v20, %v6764_v22  ;;  %v12052_v10 = vld [vmem:[%s13912_s20 + $0x10] sm:$0xff]   ;;  %v12064_v20 = vld [vmem:[%s13912_s20 + $0x28] sm:$0xff]  }
0x20dd   : > { %v12065_v22 = vld [vmem:[%s13912_s20 + $0xa8] sm:$0xff]  }
0x20de   : > { %7814 = vmatpush1.bf16.msra.mxu0 %v10366_v50  ;;  %7857 = vmatpush1.bf16.msra.mxu1 %v10368_v3  ;;  %v12058_v50 = vld [vmem:[%s13912_s20 + $0x60] sm:$0xff]  }
0x20df   : > { %7815 = vmatprep.subr.bf16.mxu0 %v10383_v16  ;;  %7858 = vmatprep.subr.bf16.mxu1 %v10385_v17  ;;  %v12059_v3 = vld [vmem:[%s13912_s20 + $0xe0] sm:$0xff]  }
0x20e0   : > { %v12060_v16 = vld [vmem:[%s13912_s20 + $0x20] sm:$0xff]  }
0x20e1   : > { %v12061_v17 = vld [vmem:[%s13912_s20 + $0xa0] sm:$0xff]  }
0x20e2   : > { %7816 = vmatpush1.bf16.msra.mxu0 %v10382_v56  ;;  %7859 = vmatpush1.bf16.msra.mxu1 %v10384_v59  ;;  %v12066_v56 = vld [vmem:[%s13912_s20 + $0x70] sm:$0xff]  }
0x20e3   : > { %7817 = vmatprep.subr.bf16.mxu0 %v10399_v25  ;;  %7860 = vmatprep.subr.bf16.mxu1 %v10401_v26  ;;  %v12067_v59 = vld [vmem:[%s13912_s20 + $0xf0] sm:$0xff]  }
0x20e4   : > { %v12068_v25 = vld [vmem:[%s13912_s20 + $0x30] sm:$0xff]  }
0x20e5   : > { %v12069_v26 = vld [vmem:[%s13912_s20 + $0xb0] sm:$0xff]  }
0x20e6   : > { %7818 = vmatpush1.bf16.msra.mxu0 %v10398_v31  ;;  %7861 = vmatpush1.bf16.msra.mxu1 %v10400_v39  ;;  %v12074_v31 = vld [vmem:[%s13912_s20 + $0x140] sm:$0xff]  }
0x20e7   : > { %7819 = vmatprep.subr.bf16.mxu0 %v10415_v32  ;;  %7862 = vmatprep.subr.bf16.mxu1 %v10417_v5  ;;  %v12075_v39 = vld [vmem:[%s13912_s20 + $0x1c0] sm:$0xff]   ;;  %v6833_v32 = vlaneseq }
0x20e9   : > { %v13609_v5 = vshrl.u32 %v6833_v32, 7 }
0x20ea   : > { %7820 = vmatpush1.bf16.msra.mxu0 %v10414_v36  ;;  %7863 = vmatpush1.bf16.msra.mxu1 %v10416_v37 }
0x20eb   : > { %7821 = vmatprep.subr.bf16.mxu0 %v10431_v38  ;;  %7864 = vmatprep.subr.bf16.mxu1 %v10433_v40  ;;  %v6835_v6 = vsub.s32 0, %v13609_v5  ;;  %v6843_v24 = vsub.s32 2, %v13609_v5  ;;  %v6839_v35 = vsub.s32 1, %v13609_v5  ;;  %v6847_v36 = vsub.s32 3, %v13609_v5 }
0x20ec   : > { %v6863_v32 = vsub.s32 7, %v13609_v5 }
0x20ed   : > { %v6836_v37 = vrot.slane %v13614_v34, %v6835_v6  ;;  %v6844_v38 = vrot.slane %v13614_v34, %v6843_v24  ;;  %v6840_v40 = vrot.slane %v13614_v34, %v6839_v35  ;;  %v6848_v12 = vrot.slane %v13614_v34, %v6847_v36 }
0x20ee   : > { %7822 = vmatpush1.bf16.msra.mxu0 %v10430_v45  ;;  %7865 = vmatpush1.bf16.msra.mxu1 %v10432_v46 }
0x20ef   : > { %7823 = vmatprep.subr.bf16.mxu0 %v10447_v48  ;;  %7866 = vmatprep.subr.bf16.mxu1 %v10449_v49 }
0x20f2   : > { %7824 = vmatpush1.bf16.msra.mxu0 %v10446_v54  ;;  %7867 = vmatpush1.bf16.msra.mxu1 %v10448_v55 }
0x20f3   : > { %7825 = vmatprep.subr.bf16.mxu0 %v10463_v57  ;;  %7868 = vmatprep.subr.bf16.mxu1 %v10465_v58 }
0x20f6   : > { %7826 = vmatpush1.bf16.msra.mxu0 %v10462_v30  ;;  %7869 = vmatpush1.bf16.msra.mxu1 %v10464_v33 }
0x20f7   : > { %10908 = vmatprep.subr.bf16.mxu0 %v12042_v60  ;;  %10930 = vmatprep.subr.bf16.mxu1 %v12043_v1 }
0x20f9   : > { %7844 = vmatmul.mubr.bf16.vlgmr.msra.gmra.mrb[108].mxu0 %v13471_v63  ;;  %7887 = vmatmul.mubr.bf16.vlgmr.msra.gmra.mrb[108].mxu1 %v13471_v63  ;;  %v12054_v63 = vld [vmem:[%s13912_s20 + $0x58] sm:$0xff]  }
0x20fa   : > { %10909 = vmatpush3.bf16.msra.mxu0 %v12044_v44  ;;  %10931 = vmatpush3.bf16.msra.mxu1 %v12045_v2 }
0x20fb   : > { %10910 = vmatprep.subr.bf16.mxu0 %v12046_v4  ;;  %10932 = vmatprep.subr.bf16.mxu1 %v12047_v62 }
0x20fe   : > { %10911 = vmatpush3.bf16.msra.mxu0 %v12048_v0  ;;  %10933 = vmatpush3.bf16.msra.mxu1 %v12049_v7 }
0x20ff   : > { %10912 = vmatprep.subr.bf16.mxu0 %v12050_v8  ;;  %10934 = vmatprep.subr.bf16.mxu1 %v12051_v9 }
0x2102   : > { %10913 = vmatpush3.bf16.msra.mxu0 %v12052_v10  ;;  %10935 = vmatpush3.bf16.msra.mxu1 %v12053_v11  ;;  %v12076_v11 = vld [vmem:[%s13912_s20 + $0x100] sm:$0xff]  }
0x2103   : > { %10914 = vmatprep.subr.bf16.mxu0 %v12054_v63  ;;  %10936 = vmatprep.subr.bf16.mxu1 %v12055_v13  ;;  %v12077_v63 = vld [vmem:[%s13912_s20 + $0x180] sm:$0xff]   ;;  %v12078_v13 = vld [vmem:[%s13912_s20 + $0x148] sm:$0xff]  }
0x2106   : > { %10915 = vmatpush3.bf16.msra.mxu0 %v12056_v14  ;;  %10937 = vmatpush3.bf16.msra.mxu1 %v12057_v47  ;;  %v12079_v14 = vld [vmem:[%s13912_s20 + $0x1c8] sm:$0xff]  }
0x2107   : > { %10916 = vmatprep.subr.bf16.mxu0 %v12058_v50  ;;  %10938 = vmatprep.subr.bf16.mxu1 %v12059_v3  ;;  %v12080_v47 = vld [vmem:[%s13912_s20 + $0x108] sm:$0xff]   ;;  %v12082_v3 = vld [vmem:[%s13912_s20 + $0x150] sm:$0xff]  }
0x2108   : > { %v12081_v50 = vld [vmem:[%s13912_s20 + $0x188] sm:$0xff]  }
0x210a   : > { %10917 = vmatpush3.bf16.msra.mxu0 %v12060_v16  ;;  %10939 = vmatpush3.bf16.msra.mxu1 %v12061_v17  ;;  %v12083_v16 = vld [vmem:[%s13912_s20 + $0x1d0] sm:$0xff]  }
0x210b   : > { %10918 = vmatprep.subr.bf16.mxu0 %v12062_v18  ;;  %10940 = vmatprep.subr.bf16.mxu1 %v12063_v19  ;;  %v12084_v17 = vld [vmem:[%s13912_s20 + $0x110] sm:$0xff]   ;;  %v12086_v19 = vld [vmem:[%s13912_s20 + $0x158] sm:$0xff]  }
0x210c   : > { %v12085_v18 = vld [vmem:[%s13912_s20 + $0x190] sm:$0xff]  }
0x210e   : > { %10919 = vmatpush3.bf16.msra.mxu0 %v12064_v20  ;;  %10941 = vmatpush3.bf16.msra.mxu1 %v12065_v22  ;;  %v12087_v20 = vld [vmem:[%s13912_s20 + $0x1d8] sm:$0xff]  }
0x210f   : > { %10920 = vmatprep.subr.bf16.mxu0 %v12066_v56  ;;  %10942 = vmatprep.subr.bf16.mxu1 %v12067_v59  ;;  %v12088_v22 = vld [vmem:[%s13912_s20 + $0x118] sm:$0xff]   ;;  %v12090_v59 = vld [vmem:[%s13912_s20 + $0x160] sm:$0xff]  }
0x2110   : > { %v12089_v56 = vld [vmem:[%s13912_s20 + $0x198] sm:$0xff]  }
0x2112   : > { %10921 = vmatpush3.bf16.msra.mxu0 %v12068_v25  ;;  %10943 = vmatpush3.bf16.msra.mxu1 %v12069_v26  ;;  %v12091_v25 = vld [vmem:[%s13912_s20 + $0x1e0] sm:$0xff]  }
0x2113   : > { %10922 = vmatprep.subr.bf16.mxu0 %v12070_v27  ;;  %10944 = vmatprep.subr.bf16.mxu1 %v12071_v23  ;;  %v12092_v26 = vld [vmem:[%s13912_s20 + $0x120] sm:$0xff]   ;;  %v12094_v23 = vld [vmem:[%s13912_s20 + $0x168] sm:$0xff]  }
0x2114   : > { %v12093_v27 = vld [vmem:[%s13912_s20 + $0x1a0] sm:$0xff]  }
0x2116   : > { %10923 = vmatpush3.bf16.msra.mxu0 %v12072_v28  ;;  %10945 = vmatpush3.bf16.msra.mxu1 %v12073_v29  ;;  %v12095_v28 = vld [vmem:[%s13912_s20 + $0x1e8] sm:$0xff]   ;;  %v6851_v29 = vsub.s32 4, %v13609_v5 }
0x2117   : > { %10952 = vmatprep.subr.bf16.mxu0 %v12074_v31  ;;  %10974 = vmatprep.subr.bf16.mxu1 %v12075_v39  ;;  %v6859_v31 = vsub.s32 6, %v13609_v5  ;;  %v6855_v39 = vsub.s32 5, %v13609_v5 }
0x216c   : > { %v7587_v15 = vpop.f32.mrb[96].mxu0  ;;  %v7630_v41 = vpop.f32.mrb[96].mxu1 }
0x216d   : > { %v7588_v43 = vadd.f32 %v7587_v15, %v6836_v37  ;;  %v7631_v45 = vadd.f32 %v7630_v41, %v6844_v38  ;;  %v7589_v46 = vpop.f32.mrb[97].mxu0  ;;  %v7632_v48 = vpop.f32.mrb[97].mxu1  ;;  %v12098_v15 = vld [vmem:[%s13912_s20 + $0x170] sm:$0xff]  }
0x216e   : > { %v7590_v49 = vadd.f32 %v7589_v46, %v6840_v40  ;;  %v7633_v51 = vadd.f32 %v7632_v48, %v6848_v12  ;;  %v7591_v52 = vpop.f32.mrb[98].mxu0  ;;  %v7634_v21 = vpop.f32.mrb[98].mxu1  ;;  %v12099_v41 = vld [vmem:[%s13912_s20 + $0x1f0] sm:$0xff]  }
0x216f   : > { %v7592_v53 = vadd.f32 %v7591_v52, %v6836_v37  ;;  %v7635_v54 = vadd.f32 %v7634_v21, %v6844_v38  ;;  %v7593_v55 = vpop.f32.mrb[99].mxu0  ;;  %v7636_v57 = vpop.f32.mrb[99].mxu1  ;;  %v7897_v33 = vmax.f32 %v7588_v43, 0.0  ;;  %v7899_v60 = vmax.f32 %v7631_v45, 0.0  ;;  %v12096_v37 = vld [vmem:[%s13912_s20 + $0x128] sm:$0xff]  }
0x2170   : > { %v7594_v58 = vadd.f32 %v7593_v55, %v6840_v40  ;;  %v7637_v30 = vadd.f32 %v7636_v57, %v6848_v12  ;;  %v7898_v2 = vmax.f32 %v7590_v49, 0.0  ;;  %v7900_v4 = vmax.f32 %v7633_v51, 0.0  ;;  %v12097_v38 = vld [vmem:[%s13912_s20 + $0x1a8] sm:$0xff]   ;;  %v12100_v49 = vld [vmem:[%s13912_s20 + $0x130] sm:$0xff]   ;;  %v12102_v55 = vld [vmem:[%s13912_s20 + $0x178] sm:$0xff]  }
0x2171   : > { %v7913_v1 = vmax.f32 %v7592_v53, 0.0  ;;  %v7915_v44 = vmax.f32 %v7635_v54, 0.0  ;;  %v6852_v40 = vrot.slane %v13614_v34, %v6851_v29  ;;  %v6860_v12 = vrot.slane %v13614_v34, %v6859_v31  ;;  %v12101_v51 = vld [vmem:[%s13912_s20 + $0x1b0] sm:$0xff]   ;;  %v12103_v57 = vld [vmem:[%s13912_s20 + $0x1f8] sm:$0xff]  }
0x2172   : > { %v7914_v62 = vmax.f32 %v7594_v58, 0.0  ;;  %v7916_v0 = vmax.f32 %v7637_v30, 0.0  ;;  %v6856_v43 = vrot.slane %v13614_v34, %v6855_v39  ;;  %v6864_v45 = vrot.slane %v13614_v34, %v6863_v32 }
0x2173   : > { %v7929_v7 = vpack.c.bf16 %v7913_v1, %v7897_v33  ;;  %v7931_v8 = vpack.c.bf16 %v7915_v44, %v7899_v60 }
0x2174   : > { %v7930_v9 = vpack.c.bf16 %v7914_v62, %v7898_v2  ;;  %v7932_v10 = vpack.c.bf16 %v7916_v0, %v7900_v4  ;;  %v12104_v0 = vld [vmem:[%s13912_s20 + $0x138] sm:$0xff]  }
0x2176   : > { %9008 = vmatprep.mubr.bf16.mxu0 %v7930_v9  ;;  %9049 = vmatprep.mubr.bf16.mxu1 %v7932_v10 }
0x2177   : > { %9009 = vmatmul.mubr.bf16.vlgmr.msra.gmra.mrb[112].mxu0 %v7929_v7  ;;  %9050 = vmatmul.mubr.bf16.vlgmr.msra.gmra.mrb[112].mxu1 %v7931_v8  ;;  %v12105_v7 = vld [vmem:[%s13912_s20 + $0x1b8] sm:$0xff]  }
0x2178   : > { %10953 = vmatpush3.bf16.msra.mxu0 %v12076_v11  ;;  %10975 = vmatpush3.bf16.msra.mxu1 %v12077_v63  ;;  %v12106_v63 = vld [vmem:[%s13912_s20 + $0x240] sm:$0xff]  }
0x2179   : > { %10954 = vmatprep.subr.bf16.mxu0 %v12078_v13  ;;  %10976 = vmatprep.subr.bf16.mxu1 %v12079_v14  ;;  %v12107_v13 = vld [vmem:[%s13912_s20 + $0x2c0] sm:$0xff]  }
0x217c   : > { %10955 = vmatpush3.bf16.msra.mxu0 %v12080_v47  ;;  %10977 = vmatpush3.bf16.msra.mxu1 %v12081_v50 }
0x217d   : > { %10956 = vmatprep.subr.bf16.mxu0 %v12082_v3  ;;  %10978 = vmatprep.subr.bf16.mxu1 %v12083_v16 }
0x2180   : > { %10957 = vmatpush3.bf16.msra.mxu0 %v12084_v17  ;;  %10979 = vmatpush3.bf16.msra.mxu1 %v12085_v18 }
0x2181   : > { %10958 = vmatprep.subr.bf16.mxu0 %v12086_v19  ;;  %10980 = vmatprep.subr.bf16.mxu1 %v12087_v20  ;;  %v12108_v20 = vld [vmem:[%s13912_s20 + $0x200] sm:$0xff]  }
0x2184   : > { %10959 = vmatpush3.bf16.msra.mxu0 %v12088_v22  ;;  %10981 = vmatpush3.bf16.msra.mxu1 %v12089_v56  ;;  %v12109_v22 = vld [vmem:[%s13912_s20 + $0x280] sm:$0xff]   ;;  %v12110_v56 = vld [vmem:[%s13912_s20 + $0x248] sm:$0xff]  }
0x2185   : > { %10960 = vmatprep.subr.bf16.mxu0 %v12090_v59  ;;  %10982 = vmatprep.subr.bf16.mxu1 %v12091_v25  ;;  %v12111_v59 = vld [vmem:[%s13912_s20 + $0x2c8] sm:$0xff]  }
0x2186   : > { %v12112_v25 = vld [vmem:[%s13912_s20 + $0x208] sm:$0xff]  }
0x2188   : > { %10961 = vmatpush3.bf16.msra.mxu0 %v12092_v26  ;;  %10983 = vmatpush3.bf16.msra.mxu1 %v12093_v27  ;;  %v12113_v26 = vld [vmem:[%s13912_s20 + $0x288] sm:$0xff]   ;;  %v12114_v27 = vld [vmem:[%s13912_s20 + $0x250] sm:$0xff]  }
0x2189   : > { %10962 = vmatprep.subr.bf16.mxu0 %v12094_v23  ;;  %10984 = vmatprep.subr.bf16.mxu1 %v12095_v28  ;;  %v12115_v23 = vld [vmem:[%s13912_s20 + $0x2d0] sm:$0xff]  }
0x218a   : > { %v12116_v28 = vld [vmem:[%s13912_s20 + $0x210] sm:$0xff]  }
0x218c   : > { %v7673_v46 = vpop.f32.mrb[100].mxu0  ;;  %v7716_v48 = vpop.f32.mrb[100].mxu1  ;;  %10963 = vmatpush3.bf16.msra.mxu0 %v12096_v37  ;;  %10985 = vmatpush3.bf16.msra.mxu1 %v12097_v38  ;;  %v12117_v37 = vld [vmem:[%s13912_s20 + $0x290] sm:$0xff]   ;;  %v12118_v38 = vld [vmem:[%s13912_s20 + $0x258] sm:$0xff]  }
0x218d   : > { %v7674_v52 = vadd.f32 %v7673_v46, %v6852_v40  ;;  %v7717_v21 = vadd.f32 %v7716_v48, %v6860_v12  ;;  %v7675_v53 = vpop.f32.mrb[101].mxu0  ;;  %v7718_v54 = vpop.f32.mrb[101].mxu1  ;;  %10964 = vmatprep.subr.bf16.mxu0 %v12098_v15  ;;  %10986 = vmatprep.subr.bf16.mxu1 %v12099_v41  ;;  %v12121_v15 = vld [vmem:[%s13912_s20 + $0x298] sm:$0xff]   ;;  %v12122_v41 = vld [vmem:[%s13912_s20 + $0x260] sm:$0xff]   ;;  %v12126_v48 = vld [vmem:[%s13912_s20 + $0x268] sm:$0xff]  }
0x218e   : > { %v7676_v58 = vadd.f32 %v7675_v53, %v6856_v43  ;;  %v7719_v30 = vadd.f32 %v7718_v54, %v6864_v45  ;;  %v7677_v33 = vpop.f32.mrb[102].mxu0  ;;  %v7720_v34 = vpop.f32.mrb[102].mxu1  ;;  %v12125_v46 = vld [vmem:[%s13912_s20 + $0x2a0] sm:$0xff]  }
0x218f   : > { %v7678_v60 = vadd.f32 %v7677_v33, %v6852_v40  ;;  %v7721_v1 = vadd.f32 %v7720_v34, %v6860_v12  ;;  %v7679_v44 = vpop.f32.mrb[103].mxu0  ;;  %v7722_v2 = vpop.f32.mrb[103].mxu1  ;;  %v7901_v8 = vmax.f32 %v7674_v52, 0.0  ;;  %v7903_v9 = vmax.f32 %v7717_v21, 0.0  ;;  %v12119_v40 = vld [vmem:[%s13912_s20 + $0x2d8] sm:$0xff]   ;;  %v12128_v52 = vld [vmem:[%s13912_s20 + $0x228] sm:$0xff]  }
0x2190   : > { %v7680_v4 = vadd.f32 %v7679_v44, %v6856_v43  ;;  %v7723_v62 = vadd.f32 %v7722_v2, %v6864_v45  ;;  %10965 = vmatpush3.bf16.msra.mxu0 %v12100_v49  ;;  %10987 = vmatpush3.bf16.msra.mxu1 %v12101_v51  ;;  %v7902_v14 = vmax.f32 %v7676_v58, 0.0  ;;  %v7904_v47 = vmax.f32 %v7719_v30, 0.0  ;;  %v12120_v12 = vld [vmem:[%s13912_s20 + $0x218] sm:$0xff]   ;;  %v12123_v43 = vld [vmem:[%s13912_s20 + $0x2e0] sm:$0xff]   ;;  %v12127_v49 = vld [vmem:[%s13912_s20 + $0x2e8] sm:$0xff]  }
0x2191   : > { %v7917_v10 = vmax.f32 %v7678_v60, 0.0  ;;  %v7919_v11 = vmax.f32 %v7721_v1, 0.0  ;;  %10966 = vmatprep.subr.bf16.mxu0 %v12102_v55  ;;  %10988 = vmatprep.subr.bf16.mxu1 %v12103_v57  ;;  %v12124_v45 = vld [vmem:[%s13912_s20 + $0x220] sm:$0xff]   ;;  %v13699_v51 = vld [vmem:[%s12637_s27 + $0x8] sm:$0xff]  ;;  %v12130_v55 = vld [vmem:[%s13912_s20 + $0x270] sm:$0xff]  }
0x2192   : > { %v7918_v50 = vmax.f32 %v7680_v4, 0.0  ;;  %v7920_v3 = vmax.f32 %v7723_v62, 0.0  ;;  %v12129_v21 = vld [vmem:[%s13912_s20 + $0x2a8] sm:$0xff]   ;;  %v6868_v53 = vrot.slane %v13699_v51, %v6835_v6  ;;  %v6876_v54 = vrot.slane %v13699_v51, %v6843_v24  ;;  %v12131_v57 = vld [vmem:[%s13912_s20 + $0x2f0] sm:$0xff]   ;;  %v12134_v4 = vld [vmem:[%s13912_s20 + $0x278] sm:$0xff]  }
0x2193   : > { %v7933_v16 = vpack.c.bf16 %v7917_v10, %v7901_v8  ;;  %v7935_v17 = vpack.c.bf16 %v7919_v11, %v7903_v9  ;;  %v6872_v58 = vrot.slane %v13699_v51, %v6839_v35  ;;  %v6880_v30 = vrot.slane %v13699_v51, %v6847_v36  ;;  %v12132_v6 = vld [vmem:[%s13912_s20 + $0x230] sm:$0xff]   ;;  %v12135_v35 = vld [vmem:[%s13912_s20 + $0x2f8] sm:$0xff]  }
0x2194   : > { %v7934_v18 = vpack.c.bf16 %v7918_v50, %v7902_v14  ;;  %v7936_v19 = vpack.c.bf16 %v7920_v3, %v7904_v47  ;;  %10967 = vmatpush3.bf16.msra.mxu0 %v12104_v0  ;;  %10989 = vmatpush3.bf16.msra.mxu1 %v12105_v7  ;;  %v12133_v60 = vld [vmem:[%s13912_s20 + $0x2b0] sm:$0xff]   ;;  %v12136_v14 = vld [vmem:[%s13912_s20 + $0x238] sm:$0xff]  }
0x2195   : > { %10996 = vmatprep.subr.bf16.mxu0 %v12106_v63  ;;  %11018 = vmatprep.subr.bf16.mxu1 %v12107_v13  ;;  %v12137_v47 = vld [vmem:[%s13912_s20 + $0x2b8] sm:$0xff]  }
0x2196   : > { %9090 = vmatprep.mubr.bf16.mxu0 %v7934_v18  ;;  %9131 = vmatprep.mubr.bf16.mxu1 %v7936_v19  ;;  %v12138_v18 = vld [vmem:[%s13912_s20 + $0x340] sm:$0xff]  }
0x2197   : > { %9091 = vmatmul.mubr.bf16.vlgmr.msra.gmra.mrb[116].mxu0 %v7933_v16  ;;  %9132 = vmatmul.mubr.bf16.vlgmr.msra.gmra.mrb[116].mxu1 %v7935_v17  ;;  %v12139_v19 = vld [vmem:[%s13912_s20 + $0x3c0] sm:$0xff]  }
0x2198   : > { %10997 = vmatpush3.bf16.msra.mxu0 %v12108_v20  ;;  %11019 = vmatpush3.bf16.msra.mxu1 %v12109_v22 }
0x2199   : > { %10998 = vmatprep.subr.bf16.mxu0 %v12110_v56  ;;  %11020 = vmatprep.subr.bf16.mxu1 %v12111_v59 }
0x219c   : > { %10999 = vmatpush3.bf16.msra.mxu0 %v12112_v25  ;;  %11021 = vmatpush3.bf16.msra.mxu1 %v12113_v26 }
0x219d   : > { %11000 = vmatprep.subr.bf16.mxu0 %v12114_v27  ;;  %11022 = vmatprep.subr.bf16.mxu1 %v12115_v23 }
0x21a0   : > { %11001 = vmatpush3.bf16.msra.mxu0 %v12116_v28  ;;  %11023 = vmatpush3.bf16.msra.mxu1 %v12117_v37  ;;  %v12140_v28 = vld [vmem:[%s13912_s20 + $0x300] sm:$0xff]  }
0x21a1   : > { %11002 = vmatprep.subr.bf16.mxu0 %v12118_v38  ;;  %11024 = vmatprep.subr.bf16.mxu1 %v12119_v40  ;;  %v12141_v37 = vld [vmem:[%s13912_s20 + $0x380] sm:$0xff]   ;;  %v12142_v38 = vld [vmem:[%s13912_s20 + $0x348] sm:$0xff]  }
0x21a2   : > { %v12143_v40 = vld [vmem:[%s13912_s20 + $0x3c8] sm:$0xff]  }
0x21a4   : > { %11003 = vmatpush3.bf16.msra.mxu0 %v12120_v12  ;;  %11025 = vmatpush3.bf16.msra.mxu1 %v12121_v15  ;;  %v12144_v12 = vld [vmem:[%s13912_s20 + $0x308] sm:$0xff]  }
0x21a5   : > { %11004 = vmatprep.subr.bf16.mxu0 %v12122_v41  ;;  %11026 = vmatprep.subr.bf16.mxu1 %v12123_v43  ;;  %v12145_v15 = vld [vmem:[%s13912_s20 + $0x388] sm:$0xff]   ;;  %v12146_v41 = vld [vmem:[%s13912_s20 + $0x350] sm:$0xff]  }
0x21a6   : > { %v12147_v43 = vld [vmem:[%s13912_s20 + $0x3d0] sm:$0xff]  }
0x21a8   : > { %11005 = vmatpush3.bf16.msra.mxu0 %v12124_v45  ;;  %11027 = vmatpush3.bf16.msra.mxu1 %v12125_v46  ;;  %v12148_v45 = vld [vmem:[%s13912_s20 + $0x310] sm:$0xff]  }
0x21a9   : > { %11006 = vmatprep.subr.bf16.mxu0 %v12126_v48  ;;  %11028 = vmatprep.subr.bf16.mxu1 %v12127_v49  ;;  %v12149_v46 = vld [vmem:[%s13912_s20 + $0x390] sm:$0xff]   ;;  %v12150_v48 = vld [vmem:[%s13912_s20 + $0x358] sm:$0xff]  }
0x21aa   : > { %v12151_v49 = vld [vmem:[%s13912_s20 + $0x3d8] sm:$0xff]  }
0x21ac   : > { %v7759_v33 = vpop.f32.mrb[104].mxu0  ;;  %v7802_v34 = vpop.f32.mrb[104].mxu1  ;;  %11007 = vmatpush3.bf16.msra.mxu0 %v12128_v52  ;;  %11029 = vmatpush3.bf16.msra.mxu1 %v12129_v21  ;;  %v12152_v52 = vld [vmem:[%s13912_s20 + $0x318] sm:$0xff]  }
0x21ad   : > { %v7760_v1 = vadd.f32 %v7759_v33, %v6868_v53  ;;  %v7803_v24 = vadd.f32 %v7802_v34, %v6876_v54  ;;  %v7761_v44 = vpop.f32.mrb[105].mxu0  ;;  %v7804_v2 = vpop.f32.mrb[105].mxu1  ;;  %11008 = vmatprep.subr.bf16.mxu0 %v12130_v55  ;;  %11030 = vmatprep.subr.bf16.mxu1 %v12131_v57  ;;  %v12153_v21 = vld [vmem:[%s13912_s20 + $0x398] sm:$0xff]   ;;  %v12156_v55 = vld [vmem:[%s13912_s20 + $0x320] sm:$0xff]   ;;  %v12160_v33 = vld [vmem:[%s13912_s20 + $0x328] sm:$0xff]  }
0x21ae   : > { %v7762_v62 = vadd.f32 %v7761_v44, %v6872_v58  ;;  %v7805_v0 = vadd.f32 %v7804_v2, %v6880_v30  ;;  %v7763_v7 = vpop.f32.mrb[106].mxu0  ;;  %v7806_v36 = vpop.f32.mrb[106].mxu1  ;;  %v12157_v57 = vld [vmem:[%s13912_s20 + $0x3a0] sm:$0xff]   ;;  %v12161_v34 = vld [vmem:[%s13912_s20 + $0x3a8] sm:$0xff]   ;;  %v6888_v44 = vrot.slane %v13699_v51, %v6855_v39  ;;  %v6896_v2 = vrot.slane %v13699_v51, %v6863_v32  ;;  %v12167_v39 = vld [vmem:[%s13912_s20 + $0x3f8] sm:$0xff]  }
0x21af   : > { %v7764_v8 = vadd.f32 %v7763_v7, %v6868_v53  ;;  %v7807_v9 = vadd.f32 %v7806_v36, %v6876_v54  ;;  %v7765_v10 = vpop.f32.mrb[107].mxu0  ;;  %v7808_v11 = vpop.f32.mrb[107].mxu1  ;;  %v7905_v50 = vmax.f32 %v7760_v1, 0.0  ;;  %v7907_v3 = vmax.f32 %v7803_v24, 0.0  ;;  %v12154_v53 = vld [vmem:[%s13912_s20 + $0x360] sm:$0xff]   ;;  %v12162_v1 = vld [vmem:[%s13912_s20 + $0x370] sm:$0xff]  }
0x21b0   : > { %v7766_v63 = vadd.f32 %v7765_v10, %v6872_v58  ;;  %v7809_v13 = vadd.f32 %v7808_v11, %v6880_v30  ;;  %11009 = vmatpush3.bf16.msra.mxu0 %v12132_v6  ;;  %11031 = vmatpush3.bf16.msra.mxu1 %v12133_v60  ;;  %v7906_v20 = vmax.f32 %v7762_v62, 0.0  ;;  %v7908_v22 = vmax.f32 %v7805_v0, 0.0  ;;  %v12155_v54 = vld [vmem:[%s13912_s20 + $0x3e0] sm:$0xff]   ;;  %v12158_v58 = vld [vmem:[%s13912_s20 + $0x368] sm:$0xff]   ;;  %v12163_v24 = vld [vmem:[%s13912_s20 + $0x3f0] sm:$0xff]  }
0x21b1   : > { %v7921_v16 = vmax.f32 %v7764_v8, 0.0  ;;  %v7923_v17 = vmax.f32 %v7807_v9, 0.0  ;;  %11010 = vmatprep.subr.bf16.mxu0 %v12134_v4  ;;  %11032 = vmatprep.subr.bf16.mxu1 %v12135_v35  ;;  %v12159_v30 = vld [vmem:[%s13912_s20 + $0x3e8] sm:$0xff]   ;;  %v6884_v6 = vrot.slane %v13699_v51, %v6851_v29  ;;  %v6892_v60 = vrot.slane %v13699_v51, %v6859_v31  ;;  %v12164_v29 = vld [vmem:[%s13912_s20 + $0x330] sm:$0xff]   ;;  %v12166_v8 = vld [vmem:[%s13912_s20 + $0x378] sm:$0xff]  }
0x21b2   : > { %v7922_v56 = vmax.f32 %v7766_v63, 0.0  ;;  %v7924_v59 = vmax.f32 %v7809_v13, 0.0  ;;  %v12165_v62 = vld [vmem:[%s13912_s20 + $0x3b0] sm:$0xff]  }
0x21b3   : > { %v7937_v25 = vpack.c.bf16 %v7921_v16, %v7905_v50  ;;  %v7939_v26 = vpack.c.bf16 %v7923_v17, %v7907_v3  ;;  %v12168_v3 = vld [vmem:[%s13912_s20 + $0x338] sm:$0xff]  }
0x21b4   : > { %v7938_v27 = vpack.c.bf16 %v7922_v56, %v7906_v20  ;;  %v7940_v23 = vpack.c.bf16 %v7924_v59, %v7908_v22  ;;  %11011 = vmatpush3.bf16.msra.mxu0 %v12136_v14  ;;  %11033 = vmatpush3.bf16.msra.mxu1 %v12137_v47  ;;  %v12169_v16 = vld [vmem:[%s13912_s20 + $0x3b8] sm:$0xff]  }
0x21b5   : > { %11040 = vmatprep.subr.bf16.mxu0 %v12138_v18  ;;  %11062 = vmatprep.subr.bf16.mxu1 %v12139_v19 }
0x21b6   : > { %9172 = vmatprep.mubr.bf16.mxu0 %v7938_v27  ;;  %9213 = vmatprep.mubr.bf16.mxu1 %v7940_v23 }
0x21b7   : > { %9173 = vmatmul.mubr.bf16.vlgmr.msra.gmra.mrb[120].mxu0 %v7937_v25  ;;  %9214 = vmatmul.mubr.bf16.vlgmr.msra.gmra.mrb[120].mxu1 %v7939_v26 }
0x21b8   : > { %11041 = vmatpush3.bf16.msra.mxu0 %v12140_v28  ;;  %11063 = vmatpush3.bf16.msra.mxu1 %v12141_v37 }
0x21b9   : > { %11042 = vmatprep.subr.bf16.mxu0 %v12142_v38  ;;  %11064 = vmatprep.subr.bf16.mxu1 %v12143_v40  ;;  %v10466_v40 = vld [vmem:[%s893_s4] ss:$0 sm:$0xff] }
0x21bc   : > { %11043 = vmatpush3.bf16.msra.mxu0 %v12144_v12  ;;  %11065 = vmatpush3.bf16.msra.mxu1 %v12145_v15 }
0x21bd   : > { %11044 = vmatprep.subr.bf16.mxu0 %v12146_v41  ;;  %11066 = vmatprep.subr.bf16.mxu1 %v12147_v43 }
0x21c0   : > { %11045 = vmatpush3.bf16.msra.mxu0 %v12148_v45  ;;  %11067 = vmatpush3.bf16.msra.mxu1 %v12149_v46 }
0x21c1   : > { %11046 = vmatprep.subr.bf16.mxu0 %v12150_v48  ;;  %11068 = vmatprep.subr.bf16.mxu1 %v12151_v49 }
0x21c4   : > { %11047 = vmatpush3.bf16.msra.mxu0 %v12152_v52  ;;  %11069 = vmatpush3.bf16.msra.mxu1 %v12153_v21 }
0x21c5   : > { %11048 = vmatprep.subr.bf16.mxu0 %v12154_v53  ;;  %11070 = vmatprep.subr.bf16.mxu1 %v12155_v54 }
0x21c8   : > { %11049 = vmatpush3.bf16.msra.mxu0 %v12156_v55  ;;  %11071 = vmatpush3.bf16.msra.mxu1 %v12157_v57 }
0x21c9   : > { %11050 = vmatprep.subr.bf16.mxu0 %v12158_v58  ;;  %11072 = vmatprep.subr.bf16.mxu1 %v12159_v30 }
0x21cc   : > { %v7845_v4 = vpop.f32.mrb[108].mxu0  ;;  %v7888_v35 = vpop.f32.mrb[108].mxu1  ;;  %11051 = vmatpush3.bf16.msra.mxu0 %v12160_v33  ;;  %11073 = vmatpush3.bf16.msra.mxu1 %v12161_v34 }
0x21cd   : > { %v7846_v0 = vadd.f32 %v7845_v4, %v6884_v6  ;;  %v7889_v31 = vadd.f32 %v7888_v35, %v6892_v60  ;;  %v7847_v7 = vpop.f32.mrb[109].mxu0  ;;  %v7890_v36 = vpop.f32.mrb[109].mxu1  ;;  %11052 = vmatprep.subr.bf16.mxu0 %v12162_v1  ;;  %11074 = vmatprep.subr.bf16.mxu1 %v12163_v24 }
0x21ce   : > { %v7848_v9 = vadd.f32 %v7847_v7, %v6888_v44  ;;  %v7891_v10 = vadd.f32 %v7890_v36, %v6896_v2  ;;  %v7849_v11 = vpop.f32.mrb[110].mxu0  ;;  %v7892_v32 = vpop.f32.mrb[110].mxu1 }
0x21cf   : > { %v7850_v51 = vadd.f32 %v7849_v11, %v6884_v6  ;;  %v7893_v63 = vadd.f32 %v7892_v32, %v6892_v60  ;;  %v7851_v13 = vpop.f32.mrb[111].mxu0  ;;  %v7894_v14 = vpop.f32.mrb[111].mxu1  ;;  %v7909_v17 = vmax.f32 %v7846_v0, 0.0  ;;  %v7911_v18 = vmax.f32 %v7889_v31, 0.0 }
0x21d0   : > { %v7852_v47 = vadd.f32 %v7851_v13, %v6888_v44  ;;  %v7895_v50 = vadd.f32 %v7894_v14, %v6896_v2  ;;  %11053 = vmatpush3.bf16.msra.mxu0 %v12164_v29  ;;  %11075 = vmatpush3.bf16.msra.mxu1 %v12165_v62  ;;  %v7910_v22 = vmax.f32 %v7848_v9, 0.0  ;;  %v7912_v56 = vmax.f32 %v7891_v10, 0.0 }
0x21d1   : > { %v7925_v19 = vmax.f32 %v7850_v51, 0.0  ;;  %v7927_v20 = vmax.f32 %v7893_v63, 0.0  ;;  %11054 = vmatprep.subr.bf16.mxu0 %v12166_v8  ;;  %11076 = vmatprep.subr.bf16.mxu1 %v12167_v39 }
0x21d2   : > { %v7926_v59 = vmax.f32 %v7852_v47, 0.0  ;;  %v7928_v25 = vmax.f32 %v7895_v50, 0.0 }
0x21d3   : > { %v7941_v26 = vpack.c.bf16 %v7925_v19, %v7909_v17  ;;  %v7943_v27 = vpack.c.bf16 %v7927_v20, %v7911_v18 }
0x21d4   : > { %v7942_v23 = vpack.c.bf16 %v7926_v59, %v7910_v22  ;;  %v7944_v28 = vpack.c.bf16 %v7928_v25, %v7912_v56  ;;  %11055 = vmatpush3.bf16.msra.mxu0 %v12168_v3  ;;  %11077 = vmatpush3.bf16.msra.mxu1 %v12169_v16 }
0x21d6   : > { %9254 = vmatprep.mubr.bf16.mxu0 %v7942_v23  ;;  %9295 = vmatprep.mubr.bf16.mxu1 %v7944_v28 }
0x21d7   : > { %9255 = vmatmul.mubr.bf16.vlgmr.msra.gmra.mrb[124].mxu0 %v7941_v26  ;;  %9296 = vmatmul.mubr.bf16.vlgmr.msra.gmra.mrb[124].mxu1 %v7943_v27 }
0x224a   : > { %v10924_v37 = vpop.f32.mrb[112].mxu0  ;;  %v10946_v38 = vpop.f32.mrb[112].mxu1 }
0x224b   : > { %v10925_v12 = vpop.f32.mrb[113].mxu0  ;;  %v10947_v15 = vpop.f32.mrb[113].mxu1 }
0x224c   : > { %v10926_v41 = vadd.f32 %v10925_v12, %v10924_v37  ;;  %v10948_v43 = vadd.f32 %v10947_v15, %v10946_v38  ;;  %v10927_v45 = vpop.f32.mrb[114].mxu0  ;;  %v10949_v46 = vpop.f32.mrb[114].mxu1 }
0x224d   : > { %v10928_v48 = vpop.f32.mrb[115].mxu0  ;;  %v10950_v49 = vpop.f32.mrb[115].mxu1 }
0x224e   : > { %v9011_v52 = vadd.f32 %v10926_v41, %v10466_v40  ;;  %v10929_v21 = vadd.f32 %v10928_v48, %v10927_v45  ;;  %v10951_v53 = vadd.f32 %v10950_v49, %v10949_v46 }
0x2250   : > { %v9052_v54 = vadd.f32 %v10948_v43, %v9011_v52  ;;  %v9014_v55 = vadd.f32 %v10929_v21, %v10466_v40 }
0x2252   : > { %v9055_v57 = vadd.f32 %v10951_v53, %v9014_v55 }
0x226a   : > { %v10968_v58 = vpop.f32.mrb[116].mxu0  ;;  %v10990_v30 = vpop.f32.mrb[116].mxu1 }
0x226b   : > { %v10969_v33 = vpop.f32.mrb[117].mxu0  ;;  %v10991_v34 = vpop.f32.mrb[117].mxu1 }
0x226c   : > { %v10970_v6 = vadd.f32 %v10969_v33, %v10968_v58  ;;  %v10992_v60 = vadd.f32 %v10991_v34, %v10990_v30  ;;  %v10971_v1 = vpop.f32.mrb[118].mxu0  ;;  %v10993_v24 = vpop.f32.mrb[118].mxu1  ;;  %v10595_v33 = vld [vmem:[%s896_s5] ss:$0 sm:$0xff]  ;;  %s13914_s5 = sld [smem:[#allocation29_spill]] (!%p10597_p9) }
0x226d   : > { %v10972_v44 = vpop.f32.mrb[119].mxu0  ;;  %v10994_v2 = vpop.f32.mrb[119].mxu1 }
0x226e   : > { %v9093_v4 = vadd.f32 %v10970_v6, %v9052_v54  ;;  %v10973_v35 = vadd.f32 %v10972_v44, %v10971_v1  ;;  %v10995_v29 = vadd.f32 %v10994_v2, %v10993_v24 }
0x2270   : > { %v9134_v62 = vadd.f32 %v10992_v60, %v9093_v4  ;;  %v9096_v0 = vadd.f32 %v10973_v35, %v9055_v57  ;;  %v10596_v60 = vld [vmem:[%s899_s6] ss:$0 sm:$0xff] }
0x2272   : > { %v9137_v31 = vadd.f32 %v10995_v29, %v9096_v0 }
0x228a   : > { %v11012_v7 = vpop.f32.mrb[120].mxu0  ;;  %v11034_v36 = vpop.f32.mrb[120].mxu1 }
0x228b   : > { %v11013_v8 = vpop.f32.mrb[121].mxu0  ;;  %v11035_v39 = vpop.f32.mrb[121].mxu1 }
0x228c   : > { %v11014_v9 = vadd.f32 %v11013_v8, %v11012_v7  ;;  %v11036_v10 = vadd.f32 %v11035_v39, %v11034_v36  ;;  %v11015_v11 = vpop.f32.mrb[122].mxu0  ;;  %v11037_v32 = vpop.f32.mrb[122].mxu1 }
0x228d   : > { %v11016_v51 = vpop.f32.mrb[123].mxu0  ;;  %v11038_v63 = vpop.f32.mrb[123].mxu1 }
0x228e   : > { %v9175_v13 = vadd.f32 %v11014_v9, %v9134_v62  ;;  %v11017_v14 = vadd.f32 %v11016_v51, %v11015_v11  ;;  %v11039_v47 = vadd.f32 %v11038_v63, %v11037_v32  ;;  %v10598_v63 = vld [vmem:[%s13914_s5] ss:$0 sm:$0xff] (!%p10597_p9) }
0x2290   : > { %v9216_v50 = vadd.f32 %v11036_v10, %v9175_v13  ;;  %v9178_v3 = vadd.f32 %v11017_v14, %v9137_v31  ;;  %v12364_v10 = vmov (!%p10597_p9), 1966171168   ;;  %v10599_v14 = vld [vmem:[%s13915_s7] ss:$0 sm:$0xff] (!%p10597_p9) }
0x2291   : > { %v9385_v11 = vunpack.c.l.s4 (!%p10597_p9), %v12364_v10 }
0x2292   : > { %v9219_v16 = vadd.f32 %v11039_v47, %v9178_v3 }
0x2293   : > { %v9386_v32 = vunpack.c.0.s8 (!%p10597_p9), %v9385_v11 }
0x2295   : > { %v9389_v47 = vsub.s32 (!%p10597_p9), %v9386_v32, %v13609_v5 }
0x22aa   : > { %v11056_v17 = vpop.f32.mrb[124].mxu0  ;;  %v11078_v18 = vpop.f32.mrb[124].mxu1 }
0x22ab   : > { %v11057_v19 = vpop.f32.mrb[125].mxu0  ;;  %v11079_v20 = vpop.f32.mrb[125].mxu1 }
0x22ac   : > { %v11058_v22 = vadd.f32 %v11057_v19, %v11056_v17  ;;  %v11080_v56 = vadd.f32 %v11079_v20, %v11078_v18  ;;  %v11059_v59 = vpop.f32.mrb[126].mxu0  ;;  %v11081_v25 = vpop.f32.mrb[126].mxu1 }
0x22ad   : > { %v11060_v26 = vpop.f32.mrb[127].mxu0  ;;  %v11082_v27 = vpop.f32.mrb[127].mxu1 }
0x22ae   : > { %v9257_v23 = vadd.f32 %v11058_v22, %v9216_v50  ;;  %v11061_v28 = vadd.f32 %v11060_v26, %v11059_v59  ;;  %v11083_v37 = vadd.f32 %v11082_v27, %v11081_v25 }
0x22b0   : > { %v9298_v38 = vadd.f32 %v11080_v56, %v9257_v23  ;;  %v9260_v40 = vadd.f32 %v11061_v28, %v9219_v16 }
0x22b2   : > { %v9301_v12 = vadd.f32 %v11083_v37, %v9260_v40  ;;  %v9304_v15 = vadd.f32 %v9298_v38, %v13465_v61 }
0x22b4   : > { %9308 = vadd.xlane.f32.xlu0 %v9304_v15  ;;  %v9305_v41 = vadd.f32 %v9301_v12, %v13467_v42 }
0x22b6   : > { %9310 = vadd.xlane.f32.xlu1 %v9305_v41 }
0x2341   : > { %v9309_v43 = vpop.xlane.xlu0 %9308 }
0x2342   : > { %v9312_v45 = vmul.f32 0.0078125, %v9309_v43 }
0x2343   : > { %v9311_v46 = vpop.xlane.xlu1 %9310 }
0x2344   : > { %v9314_v48 = vsub.f32 %v9304_v15, %v9312_v45  ;;  %v9313_v49 = vmul.f32 0.0078125, %v9311_v46 }
0x2346   : > { %v9315_v52 = vsub.f32 %v9305_v41, %v9313_v49  ;;  %v9316_v21 = vmul.f32 %v9314_v48, %v9314_v48 }
0x2348   : > { %9318 = vadd.xlane.f32.xlu0 %v9316_v21  ;;  %v9317_v53 = vmul.f32 %v9315_v52, %v9315_v52 }
0x234a   : > { %9320 = vadd.xlane.f32.xlu1 %v9317_v53 }
0x23d5   : > { %v9319_v54 = vpop.xlane.xlu0 %9318 }
0x23d6   : > { %v9322_v55 = vmul.f32 0.0078125, %v9319_v54 }
0x23d7   : > { %v9321_v57 = vpop.xlane.xlu1 %9320 }
0x23d8   : > { %v9324_v61 = vadd.f32 1e-05, %v9322_v55  ;;  %v9323_v58 = vmul.f32 0.0078125, %v9321_v57 }
0x23da   : > { %12238 = vrsqrt.f32 %v9324_v61  ;;  %v9325_v42 = vadd.f32 1e-05, %v9323_v58 }
0x23dc   : > { %12240 = vrsqrt.f32 %v9325_v42 }
0x23e4   : > { %v12239_v30 = vpop.eup %12238 }
0x23e5   : > { %v9328_v34 = vmul.f32 %v12239_v30, %v9314_v48 }
0x23e6   : > { %v12241_v6 = vpop.eup %12240 }
0x23e7   : > { %v9336_v1 = vmul.f32 %v10595_v33, %v9328_v34  ;;  %v9329_v24 = vmul.f32 %v12241_v6, %v9315_v52  ;;  %9351 = sbr.rel (%p10597_p9) target bundleno = 9523 (0x2533), region = 108 }
0x23e9   : > { %v9344_v44 = vadd.f32 %v10596_v60, %v9336_v1  ;;  %v9337_v2 = vmul.f32 %v10595_v33, %v9329_v24 }
0x23eb   : > { %9346 = vst [vmem:[#allocation2] sm:$0xff] %v9344_v44  ;;  %v9345_v4 = vadd.f32 %v10596_v60, %v9337_v2 }
0x23ed   : > { %9347 = vst [vmem:[#allocation2 + $0x8] sm:$0xff] %v9345_v4 }
0x23f4   : > { %v9352_v35 = vld [vmem:[#allocation2] ss:$8 sm:$0x3] }
0x23f5   : > { %v9354_v29 = vsel %vm9353_vm3, %v9352_v35, 0.0 }
0x23f6   : > { %9355 = vadd.xlane.f32.xlu0 %v9354_v29 }
0x2483   : > { %v9356_v62 = vpop.xlane.xlu0 %9355 }
0x2484   : > { %v9357_v0 = vmul.f32 0.0078125, %v9356_v62 }
0x2486   : > { %v9358_v31 = vsub.f32 %v9352_v35, %v9357_v0 }
0x2488   : > { %v9359_v7 = vmul.f32 %v9358_v31, %v9358_v31 }
0x248a   : > { %v9360_v36 = vsel %vm9353_vm3, %v9359_v7, 0.0 }
0x248b   : > { %9361 = vadd.xlane.f32.xlu0 %v9360_v36 }
0x2518   : > { %v9362_v8 = vpop.xlane.xlu0 %9361 }
0x2519   : > { %v9363_v39 = vmul.f32 0.0078125, %v9362_v8 }
0x251b   : > { %v9364_v9 = vadd.f32 1e-05, %v9363_v39 }
0x251d   : > { %12244 = vrsqrt.f32 %v9364_v9 }
0x2527   : > { %v12245_v51 = vpop.eup %12244 }
0x2528   : > { %v9366_v13 = vmul.f32 %v12245_v51, %v9358_v31 }
0x252a   : > { %v9374_v50 = vmul.f32 %v10598_v63, %v9366_v13 }
0x252c   : > { %v9382_v3 = vadd.f32 %v10599_v14, %v9374_v50 }
0x252e   : > { %v9390_v16 = vrot.slane %v9382_v3, %v9389_v47 }
0x2530   : > { %v9391_v17 = vcombine.high %v9390_v16, %v9390_v16  ;;  %10600 = vst.sshfl [vmem:[#allocation6] sm:$0x1 pattern:$0x73625140] %v9390_v16 }
0x2532   : > { %10601 = vst.sshfl [vmem:[#allocation6 + $0x1] sm:$0x1 pattern:$0x73625140] %v9391_v17 }
0x2533 PF: > { %s13916_s11 = sld [smem:[#allocation12_spill]]  ;;  %s12365_s18 = smov [#allocation6]  }
0x2534   : > { %s9419_s17 = sshll.u32 %s12365_s18, 4  ;;  %s9420_s17 = int_to_ptr.vmem [resolvable:$true] %s9419_s17 }
0x2535   : > { %s12276_s30 = scalar_lea.vmem %s9420_s17, 32  ;;  %p12283_p12 = scmp.lt.s32.totalorder %s9420_s17, %s9420_s17 }
0x2536   : > { %p12277_p6 = scmp.ne.s32.totalorder %s9420_s17, %s12276_s30  ;;  %p12284_p0 = scmp.lt.s32.totalorder %s12276_s30, %s12276_s30 }
0x2538   : > { %p12285_p1 = por %p12284_p0, %p12283_p12 }
0x2539   : > { %s13917_s22 = sadd.s32 4294967295, %s13916_s11  }
0x253a   : > { %p13794_p5 = scmp.eq.s32.totalorder %s13917_s22, 1 }
0x253c   : > { %p12278_p8 = pnand %p12277_p6, %p13794_p5 }
0x253e   : > { %p12279_p10 = pneg %p12278_p8 }
0x2540   : > { %p12286_p2 = pnand %p12285_p1, %p12279_p10 }
0x2542   : > { %12289 = shalt.err (!%p12286_p2)
}
0x2543   : > { %s13919_s19 = sld [smem:[#allocation31_spill]] }
0x2549   : > { %s12290_s2 = scalar_lea.hbm %s13919_s19, 32 }
0x254a   : > { %p12291_p11 = scmp.ne.s32.totalorder %s13919_s19, %s12290_s2  ;;  %p12296_p4 = scmp.lt.u32.totalorder %s12290_s2, %s13919_s19 }
0x254c   : > { %p12292_p13 = pnand %p12291_p11, %p13794_p5 }
0x254e   : > { %p12293_p3 = pneg %p12292_p13 }
0x2550   : > { %p12298_p7 = pnand %p12296_p4, %p12293_p3 }
0x2552   : > { %12301 = shalt.err (!%p12298_p7)
}
0x2553   : > { %s12366_s29 = smov 16   ;;  %s12367_s3 = smov 1  }
0x2554   : > { %11775 = dma.vmem_to_hbm [thread:$0]  (%p13794_p5), %s9420_s17, 32, %s13919_s19, [#allocation5], %s12366_s29, %s12366_s29, %s12367_s3  }
0x2555   : > { %12331 = dma.done.wait (%p13794_p5), [#allocation5], 32  }
0x2556   : > { %12333 = vsyncadd (%p13794_p5), [#allocation5], 4294967264 }
0x2557 PF: > { %s13920_s21 = sld [smem:[#allocation12_spill]]  ;;  %s13921_s0 = sld [smem:[#allocation9_spill]] }
0x2558   : > { %s13922_s30 = sld [smem:[#allocation10_spill]]  ;;  %s13923_s20 = sld [smem:[#allocation14_spill]] }
0x2559   : > { %s13925_s1 = sld [smem:[#allocation13_spill]] }
0x255d   : > { %s33_s22 = sadd.s32 1, %s13920_s21   ;;  %s13924_s21 = sld [smem:[#allocation11_spill]] }
0x255e   : > { %p30_p9 = scmp.ge.s32.totalorder %s33_s22, 4  }
0x2560   :  { %32 = sbr.rel (!%p30_p9) target bundleno = 20 (0x14), region = 239 }
0x2567   :  { %9435 = vsyncpa [#allocation4], 1 }
0x2568   :  { %9437 = vsyncpa [#allocation4 + $0x1], 1 }
0x2569   :  { %9438 = vsyncpa [#allocation5], 1 }
0x256a   :  { %9440 = vsyncpa [#allocation5 + $0x1], 1 }

</bundles_post_ra>
